<compile_context>
chip_gen: v7x
topology: tpu7x:2x2x1
jax: 0.10.0
libtpu: 0.0.40
codegen_flags: <defaults>
</compile_context>

<pallas_src>
import math
import functools

import jax
import jax.numpy as jnp
from jax.experimental import pallas as pl
from jax.experimental.pallas import tpu as pltpu

EPS = 1e-5                        # nn.LayerNorm default
NEG_INF = -1e9                    # masked_fill value in the reference attention
VMEM_LIMIT = 64 * 1024 * 1024     # explicit scoped-VMEM limit (fits v5e/v6e/v7x)
ROW_BUDGET = 8 * 1024 * 1024      # per-row-tile activation budget (bytes)


# ----------------------------------------------------------------------------
# Helpers
# ----------------------------------------------------------------------------
def _row_tile(M, row_bytes):
    """Largest row tile (<=1024, multiple of 8) dividing M with >=2 grid steps
    whose per-tile activation working set stays under ROW_BUDGET."""
    for t in (1024, 512, 256, 128, 64, 32, 16, 8):
        if M % t == 0 and M // t >= 2 and t * max(row_bytes, 1) <= ROW_BUDGET:
            return t
    return M


def _col_tile(F):
    """Tile for the FFN hidden axis: full extent if small, else a multiple of 128."""
    if F <= 512:
        return F
    for t in (1024, 512, 256, 128):
        if F % t == 0:
            return t
    return F


def _rep(shape):
    """Replicated operand (weights / bias): same block every grid step.
    Single-buffered (block index never changes) to halve weight VMEM."""
    idx = lambda *_: (0,) * len(shape)
    buffered = getattr(pl, "Buffered", None)
    if buffered is not None:
        try:
            return pl.BlockSpec(shape, idx, pipeline_mode=buffered(1))
        except TypeError:   # older BlockSpec without pipeline_mode
            pass
    return pl.BlockSpec(shape, idx)


def _row_spec(tm, n):
    return pl.BlockSpec((tm, n), lambda i: (i, 0))


def _cparams(*sem):
    return pltpu.CompilerParams(dimension_semantics=sem,
                                vmem_limit_bytes=VMEM_LIMIT)


def _ln_f32(x, g, b):
    mean = jnp.mean(x, axis=-1, keepdims=True)
    var = jnp.mean(jnp.square(x - mean), axis=-1, keepdims=True)
    return (x - mean) * jax.lax.rsqrt(var + EPS) * g + b


# ----------------------------------------------------------------------------
# Row-tiled kernels: LayerNorm, Linear, fused LN+Linear, Linear+residual,
# fused LN+FFN+residual (hidden-axis tiled with an f32 accumulator)
# ----------------------------------------------------------------------------
def _layernorm_kernel(x_ref, g_ref, b_ref, o_ref):
    x = x_ref[...].astype(jnp.float32)
    o_ref[...] = _ln_f32(x, g_ref[...], b_ref[...]).astype(o_ref.dtype)


def layernorm(x2d, gamma, beta):
    M, D = x2d.shape
    TM = _row_tile(M, 8 * D)
    return pl.pallas_call(
        _layernorm_kernel,
        out_shape=jax.ShapeDtypeStruct((M, D), x2d.dtype),
        grid=(M // TM,),
        in_specs=[_row_spec(TM, D), _rep((1, D)), _rep((1, D))],
        out_specs=_row_spec(TM, D),
        compiler_params=_cparams("parallel"),
    )(x2d, gamma.reshape(1, D), beta.reshape(1, D))


def _linear_kernel(x_ref, w_ref, b_ref, o_ref):
    x = x_ref[...].astype(jnp.bfloat16)
    acc = jnp.dot(x, w_ref[...], preferred_element_type=jnp.float32)
    o_ref[...] = (acc + b_ref[...]).astype(o_ref.dtype)


def linear(x2d, w, bias, out_dtype=jnp.bfloat16):
    M, K = x2d.shape
    N = w.shape[1]
    TM = _row_tile(M, 4 * (K + N))
    return pl.pallas_call(
        _linear_kernel,
        out_shape=jax.ShapeDtypeStruct((M, N), out_dtype),
        grid=(M // TM,),
        in_specs=[_row_spec(TM, K), _rep((K, N)), _rep((1, N))],
        out_specs=_row_spec(TM, N),
        compiler_params=_cparams("parallel"),
    )(x2d, w, bias.reshape(1, N))


def _ln_linear_kernel(x_ref, g_ref, b_ref, w_ref, wb_ref, o_ref):
    x = x_ref[...].astype(jnp.float32)
    xn = _ln_f32(x, g_ref[...], b_ref[...]).astype(jnp.bfloat16)
    acc = jnp.dot(xn, w_ref[...], preferred_element_type=jnp.float32) + wb_ref[...]
    o_ref[...] = acc.astype(o_ref.dtype)


def ln_linear(x2d, gamma, beta, w, bias, out_dtype=jnp.bfloat16):
    M, D = x2d.shape
    N = w.shape[1]
    TM = _row_tile(M, 4 * (D + N))
    return pl.pallas_call(
        _ln_linear_kernel,
        out_shape=jax.ShapeDtypeStruct((M, N), out_dtype),
        grid=(M // TM,),
        in_specs=[_row_spec(TM, D), _rep((1, D)), _rep((1, D)),
                  _rep((D, N)), _rep((1, N))],
        out_specs=_row_spec(TM, N),
        compiler_params=_cparams("parallel"),
    )(x2d, gamma.reshape(1, D), beta.reshape(1, D), w, bias.reshape(1, N))


def _linear_residual_kernel(x_ref, w_ref, b_ref, r_ref, o_ref):
    x = x_ref[...].astype(jnp.bfloat16)
    acc = jnp.dot(x, w_ref[...], preferred_element_type=jnp.float32)
    acc = acc + b_ref[...] + r_ref[...].astype(jnp.float32)
    o_ref[...] = acc.astype(o_ref.dtype)


def linear_residual(x2d, w, bias, resid):
    M, K = x2d.shape
    N = w.shape[1]
    TM = _row_tile(M, 4 * (K + 3 * N))
    return pl.pallas_call(
        _linear_residual_kernel,
        out_shape=jax.ShapeDtypeStruct((M, N), resid.dtype),
        grid=(M // TM,),
        in_specs=[_row_spec(TM, K), _rep((K, N)), _rep((1, N)), _row_spec(TM, N)],
        out_specs=_row_spec(TM, N),
        compiler_params=_cparams("parallel"),
    )(x2d, w, bias.reshape(1, N), resid)


def _ln_ffn_residual_kernel(x_ref, g_ref, b_ref, w1_ref, b1_ref, w2_ref, b2_ref,
                            o_ref, xn_ref, acc_ref):
    f = pl.program_id(1)

    @pl.when(f == 0)
    def _():
        x = x_ref[...].astype(jnp.float32)
        xn_ref[...] = _ln_f32(x, g_ref[...], b_ref[...]).astype(jnp.bfloat16)
        acc_ref[...] = x + b2_ref[...]          # residual + final bias (f32)

    h = jnp.dot(xn_ref[...], w1_ref[...], preferred_element_type=jnp.float32)
    h = jnp.maximum(h + b1_ref[...], 0.0)
    acc_ref[...] += jnp.dot(h.astype(jnp.bfloat16), w2_ref[...],
                            preferred_element_type=jnp.float32)

    @pl.when(f == pl.num_programs(1) - 1)
    def _():
        o_ref[...] = acc_ref[...].astype(o_ref.dtype)


def ln_ffn_residual(x2d, gamma, beta, w1, b1, w2, b2):
    M, D = x2d.shape
    F = w1.shape[1]
    TF = _col_tile(F)
    TM = _row_tile(M, 4 * (4 * D + TF))
    return pl.pallas_call(
        _ln_ffn_residual_kernel,
        out_shape=jax.ShapeDtypeStruct((M, D), x2d.dtype),
        grid=(M // TM, F // TF),
        in_specs=[pl.BlockSpec((TM, D), lambda i, f: (i, 0)),
                  _rep((1, D)), _rep((1, D)),
                  pl.BlockSpec((D, TF), lambda i, f: (0, f)),
                  pl.BlockSpec((1, TF), lambda i, f: (0, f)),
                  pl.BlockSpec((TF, D), lambda i, f: (f, 0)),
                  _rep((1, D))],
        out_specs=pl.BlockSpec((TM, D), lambda i, f: (i, 0)),
        scratch_shapes=[pltpu.VMEM((TM, D), jnp.bfloat16),
                        pltpu.VMEM((TM, D), jnp.float32)],
        compiler_params=_cparams("parallel", "arbitrary"),
    )(x2d, gamma.reshape(1, D), beta.reshape(1, D),
      w1, b1.reshape(1, F), w2, b2.reshape(1, D))


# ----------------------------------------------------------------------------
# Attention kernels: one grid step per batch, all heads in-kernel, additive
# bf16 mask bias (converted once per forward), per-head writes into o_ref.
# ----------------------------------------------------------------------------
def _attn_heads(q, k, v, bias_f32, num_heads, o_ref):
    Sq, D = q.shape
    dh = D // num_heads
    scale = 1.0 / math.sqrt(dh)
    q = (q.astype(jnp.float32) * scale).astype(jnp.bfloat16)   # pre-scale once
    for h in range(num_heads):                                  # static unroll
        lo = h * dh
        # qh @ kh.T without an explicit transpose, bf16 operands, f32 acc.
        s = jax.lax.dot_general(q[:, lo:lo + dh], k[:, lo:lo + dh],
                                (((1,), (1,)), ((), ())),
                                preferred_element_type=jnp.float32)
        s = s + bias_f32                                        # masked_fill as +(-1e9)
        s = s - jnp.max(s, axis=-1, keepdims=True)
        p = jnp.exp(s)
        p = p * pl.reciprocal(jnp.sum(p, axis=-1, keepdims=True), approx=True)
        oh = jnp.dot(p.astype(jnp.bfloat16), v[:, lo:lo + dh],
                     preferred_element_type=jnp.float32)
        o_ref[:, lo:lo + dh] = oh.astype(o_ref.dtype)           # no concat staging


def _self_attn_kernel(qkv_ref, bias_ref, o_ref, *, num_heads, d_model):
    qkv = qkv_ref[...]                                  # (Sq, 3D) bf16
    bias = bias_ref[...].astype(jnp.float32)            # (Mq, Sk)
    _attn_heads(qkv[:, :d_model], qkv[:, d_model:2 * d_model], qkv[:, 2 * d_model:],
                bias, num_heads, o_ref)


def _cross_attn_kernel(q_ref, kv_ref, bias_ref, o_ref, *, num_heads, d_model):
    kv = kv_ref[...]                                     # (Sk, 2D) bf16
    _attn_heads(q_ref[...], kv[:, :d_model], kv[:, d_model:],
                bias_ref[...].astype(jnp.float32), num_heads, o_ref)


def mask_to_bias(mask):
    """(B,1,Mq,Sk) {0,1} mask -> additive bf16 bias, computed once per forward."""
    return jnp.where(mask == 0, jnp.float32(NEG_INF), jnp.float32(0.0)).astype(jnp.bfloat16)


def _bias_spec(bias):
    Bm, _, Mq, Sk = bias.shape          # head dim always sliced at 0
    bscale = 1 if Bm > 1 else 0
    return pl.BlockSpec((None, None, Mq, Sk), lambda b: (b * bscale, 0, 0, 0))


def self_attention(qkv, bias, num_heads):
    B, S, D3 = qkv.shape
    D = D3 // 3
    kern = functools.partial(_self_attn_kernel, num_heads=num_heads, d_model=D)
    return pl.pallas_call(
        kern,
        out_shape=jax.ShapeDtypeStruct((B, S, D), jnp.bfloat16),
        grid=(B,),
        in_specs=[pl.BlockSpec((None, S, D3), lambda b: (b, 0, 0)),
                  _bias_spec(bias)],
        out_specs=pl.BlockSpec((None, S, D), lambda b: (b, 0, 0)),
        compiler_params=_cparams("parallel"),
    )(qkv, bias)


def cross_attention(q, kv, bias, num_heads):
    B, Sq, D = q.shape
    Sk = kv.shape[1]
    kern = functools.partial(_cross_attn_kernel, num_heads=num_heads, d_model=D)
    return pl.pallas_call(
        kern,
        out_shape=jax.ShapeDtypeStruct((B, Sq, D), jnp.bfloat16),
        grid=(B,),
        in_specs=[pl.BlockSpec((None, Sq, D), lambda b: (b, 0, 0)),
                  pl.BlockSpec((None, Sk, 2 * D), lambda b: (b, 0, 0)),
                  _bias_spec(bias)],
        out_specs=pl.BlockSpec((None, Sq, D), lambda b: (b, 0, 0)),
        compiler_params=_cparams("parallel"),
    )(q, kv, bias)


# ----------------------------------------------------------------------------
# Decoder layer & stack
# ----------------------------------------------------------------------------
def decoder_layer(p, x, enc, src_bias, tar_bias, num_heads):
    B, S, D = x.shape
    Sk = enc.shape[1]
    x2 = x.reshape(B * S, D)                 # residual stream stays f32
    enc2 = enc.reshape(B * Sk, D)

    # 1) masked self-attention: fused LN+QKV -> attention -> fused proj+residual
    qkv = ln_linear(x2, p["ln1_g"], p["ln1_b"], p["sa"]["wqkv"], p["sa"]["bqkv"])
    a = self_attention(qkv.reshape(B, S, 3 * D), tar_bias, num_heads)
    x2 = linear_residual(a.reshape(B * S, D), p["sa"]["wo"], p["sa"]["bo"], x2)

    # 2) cross-attention over encoder output
    q = ln_linear(x2, p["ln2_g"], p["ln2_b"], p["ca"]["wq"], p["ca"]["bq"])
    kv = linear(enc2, p["ca"]["wkv"], p["ca"]["bkv"])
    a = cross_attention(q.reshape(B, S, D), kv.reshape(B, Sk, 2 * D), src_bias, num_heads)
    x2 = linear_residual(a.reshape(B * S, D), p["ca"]["wo"], p["ca"]["bo"], x2)

    # 3) feed-forward, fully fused: LN + W1 + ReLU + W2 + residual (F-tiled accumulator)
    x2 = ln_ffn_residual(x2, p["ln3_g"], p["ln3_b"],
                         p["ffn_w1"], p["ffn_b1"], p["ffn_w2"], p["ffn_b2"])
    return x2.reshape(B, S, D)


def decoder_forward(params, x, encoder_output, src_mask, tar_mask, num_heads):
    # Convert {0,1} masks to additive bf16 biases ONCE, reused by every layer.
    src_bias = mask_to_bias(src_mask)
    tar_bias = mask_to_bias(tar_mask)
    for p in params["layers"]:
        x = decoder_layer(p, x, encoder_output, src_bias, tar_bias, num_heads)
    B, S, D = x.shape
    out = layernorm(x.reshape(B * S, D), params["norm_g"], params["norm_b"])
    return out.reshape(B, S, D)


# ----------------------------------------------------------------------------
# Deterministic parameter init (weights bf16, biases / LN params f32)
# ----------------------------------------------------------------------------
def _init_linear(key, din, dout):
    k1, k2 = jax.random.split(key)
    w = (jax.random.normal(k1, (din, dout), jnp.float32) * 0.02).astype(jnp.bfloat16)
    b = jax.random.normal(k2, (dout,), jnp.float32) * 0.02
    return w, b


def _init_self_attn(key, d):
    ks = jax.random.split(key, 2)
    wqkv, bqkv = _init_linear(ks[0], d, 3 * d)
    wo, bo = _init_linear(ks[1], d, d)
    return dict(wqkv=wqkv, bqkv=bqkv, wo=wo, bo=bo)


def _init_cross_attn(key, d):
    ks = jax.random.split(key, 3)
    wq, bq = _init_linear(ks[0], d, d)
    wkv, bkv = _init_linear(ks[1], d, 2 * d)
    wo, bo = _init_linear(ks[2], d, d)
    return dict(wq=wq, bq=bq, wkv=wkv, bkv=bkv, wo=wo, bo=bo)


def init_params(key, n_layers, d_model, d_ff):
    layers = []
    for i in range(n_layers):
        k = jax.random.fold_in(key, i)
        k_sa, k_ca, k_f1, k_f2 = jax.random.split(k, 4)
        w1, b1 = _init_linear(k_f1, d_model, d_ff)
        w2, b2 = _init_linear(k_f2, d_ff, d_model)
        layers.append(dict(
            ln1_g=jnp.ones((d_model,), jnp.float32), ln1_b=jnp.zeros((d_model,), jnp.float32),
            ln2_g=jnp.ones((d_model,), jnp.float32), ln2_b=jnp.zeros((d_model,), jnp.float32),
            ln3_g=jnp.ones((d_model,), jnp.float32), ln3_b=jnp.zeros((d_model,), jnp.float32),
            sa=_init_self_attn(k_sa, d_model),
            ca=_init_cross_attn(k_ca, d_model),
            ffn_w1=w1, ffn_b1=b1, ffn_w2=w2, ffn_b2=b2,
        ))
    return dict(layers=layers,
                norm_g=jnp.ones((d_model,), jnp.float32),
                norm_b=jnp.zeros((d_model,), jnp.float32))


if __name__ == "__main__":
    B, S, D, H, DFF, NLAYERS = 2, 8, 32, 4, 64, 2

    root = jax.random.PRNGKey(0)
    k_par, k_x, k_e = jax.random.split(root, 3)
    params = init_params(k_par, NLAYERS, D, DFF)

    x = jax.random.normal(k_x, (B, S, D), jnp.float32)            # decoder input
    encoder_output = jax.random.normal(k_e, (B, S, D), jnp.float32)
    src_mask = jnp.ones((B, 1, 1, S), jnp.int32)                  # all source positions visible
    tar_mask = jnp.broadcast_to(                                  # causal target mask
        jnp.tril(jnp.ones((S, S), jnp.int32))[None, None], (B, 1, S, S))

    fwd = jax.jit(functools.partial(decoder_forward, num_heads=H))
    out = fwd(params, x, encoder_output, src_mask, tar_mask)
    out = jax.block_until_ready(out)
    assert out.shape == (B, S, D) and out.dtype == jnp.float32
    print("KERNEL_OK")
</pallas_src>

<mosaic_0001>
module attributes {stable_mosaic.version = 11 : i64} {
  func.func @_ln_linear_kernel(%arg0: i32, %arg1: memref<8x32xf32, #tpu.memory_space<vmem>>, %arg2: memref<1x32xf32, #tpu.memory_space<vmem>>, %arg3: memref<1x32xf32, #tpu.memory_space<vmem>>, %arg4: memref<32x96xbf16, #tpu.memory_space<vmem>>, %arg5: memref<1x96xf32, #tpu.memory_space<vmem>>, %arg6: memref<8x96xbf16, #tpu.memory_space<vmem>>) attributes {dimension_semantics = [#tpu.dimension_semantics<parallel>], iteration_bounds = array<i64: 2>, scalar_prefetch = 0 : i64, scratch_operands = 0 : i64, tpu.core_type = #tpu.core_type<tc>, window_params = [{transform_indices = @transform_0, window_bounds = array<i64: 8, 32>}, {pipeline_mode = #tpu.pipeline_mode<synchronous>, transform_indices = @transform_1, window_bounds = array<i64: 1, 32>}, {pipeline_mode = #tpu.pipeline_mode<synchronous>, transform_indices = @transform_2, window_bounds = array<i64: 1, 32>}, {pipeline_mode = #tpu.pipeline_mode<synchronous>, transform_indices = @transform_3, window_bounds = array<i64: 32, 96>}, {pipeline_mode = #tpu.pipeline_mode<synchronous>, transform_indices = @transform_4, window_bounds = array<i64: 1, 96>}, {transform_indices = @transform_5, window_bounds = array<i64: 8, 96>}]} {
    %c0 = arith.constant 0 : index
    %c0_0 = arith.constant 0 : index
    %0 = vector.load %arg1[%c0, %c0_0] : memref<8x32xf32, #tpu.memory_space<vmem>>, vector<8x32xf32>
    %c0_1 = arith.constant 0 : index
    %c0_2 = arith.constant 0 : index
    %1 = vector.load %arg2[%c0_1, %c0_2] : memref<1x32xf32, #tpu.memory_space<vmem>>, vector<1x32xf32>
    %c0_3 = arith.constant 0 : index
    %c0_4 = arith.constant 0 : index
    %2 = vector.load %arg3[%c0_3, %c0_4] : memref<1x32xf32, #tpu.memory_space<vmem>>, vector<1x32xf32>
    %cst = arith.constant dense<0.000000e+00> : vector<8xf32>
    %3 = vector.multi_reduction <add>, %0, %cst [1] : vector<8x32xf32> to vector<8xf32>
    %4 = vector.shape_cast %3 : vector<8xf32> to vector<8x1xf32>
    %cst_5 = arith.constant 3.200000e+01 : f32
    %5 = vector.broadcast %cst_5 : f32 to vector<8x1xf32>
    %6 = arith.divf %4, %5 : vector<8x1xf32>
    %7 = vector.broadcast %6 : vector<8x1xf32> to vector<8x32xf32>
    %8 = arith.subf %0, %7 : vector<8x32xf32>
    %9 = arith.mulf %8, %8 : vector<8x32xf32>
    %cst_6 = arith.constant dense<0.000000e+00> : vector<8xf32>
    %10 = vector.multi_reduction <add>, %9, %cst_6 [1] : vector<8x32xf32> to vector<8xf32>
    %11 = vector.shape_cast %10 : vector<8xf32> to vector<8x1xf32>
    %cst_7 = arith.constant 3.200000e+01 : f32
    %12 = vector.broadcast %cst_7 : f32 to vector<8x1xf32>
    %13 = arith.divf %11, %12 : vector<8x1xf32>
    %14 = vector.broadcast %6 : vector<8x1xf32> to vector<8x32xf32>
    %15 = arith.subf %0, %14 : vector<8x32xf32>
    %cst_8 = arith.constant 9.99999974E-6 : f32
    %16 = vector.broadcast %cst_8 : f32 to vector<8x1xf32>
    %17 = arith.addf %13, %16 : vector<8x1xf32>
    %18 = math.rsqrt %17 : vector<8x1xf32>
    %19 = vector.broadcast %18 : vector<8x1xf32> to vector<8x32xf32>
    %20 = arith.mulf %15, %19 : vector<8x32xf32>
    %21 = vector.broadcast %1 : vector<1x32xf32> to vector<8x32xf32>
    %22 = arith.mulf %20, %21 : vector<8x32xf32>
    %23 = vector.broadcast %2 : vector<1x32xf32> to vector<8x32xf32>
    %24 = arith.addf %22, %23 : vector<8x32xf32>
    %25 = arith.truncf %24 : vector<8x32xf32> to vector<8x32xbf16>
    %c0_9 = arith.constant 0 : index
    %c0_10 = arith.constant 0 : index
    %26 = vector.load %arg4[%c0_9, %c0_10] : memref<32x96xbf16, #tpu.memory_space<vmem>>, vector<32x96xbf16>
    %cst_11 = arith.constant dense<0.000000e+00> : vector<8x96xf32>
    %27 = tpu.matmul %25, %26, %cst_11 {dimension_numbers = #tpu.dot_dimension_numbers<[1], [0], [0], [1], [0, 0, 1, 1], [], []>} : vector<8x32xbf16>, vector<32x96xbf16>, vector<8x96xf32> -> vector<8x96xf32>
    %c0_12 = arith.constant 0 : index
    %c0_13 = arith.constant 0 : index
    %28 = vector.load %arg5[%c0_12, %c0_13] : memref<1x96xf32, #tpu.memory_space<vmem>>, vector<1x96xf32>
    %29 = vector.broadcast %28 : vector<1x96xf32> to vector<8x96xf32>
    %30 = arith.addf %27, %29 : vector<8x96xf32>
    %31 = arith.truncf %30 : vector<8x96xf32> to vector<8x96xbf16>
    %c0_14 = arith.constant 0 : index
    %c0_15 = arith.constant 0 : index
    %32 = vector.load %arg6[%c0_14, %c0_15] : memref<8x96xbf16, #tpu.memory_space<vmem>>, vector<8x96xbf16>
    tpu.vector_store %arg6[%c0_14, %c0_15], %31 {strides = array<i32>} : memref<8x96xbf16, #tpu.memory_space<vmem>>, vector<8x96xbf16>,
    return
  }
  func.func @transform_0(%arg0: i32) -> (i32, i32) {
    %c0_i32 = arith.constant 0 : i32
    %c0_i32_0 = arith.constant 0 : i32
    return %arg0, %c0_i32 : i32, i32
  }
  func.func @transform_1(%arg0: i32) -> (i32, i32) {
    %c0_i32 = arith.constant 0 : i32
    %c0_i32_0 = arith.constant 0 : i32
    %c0_i32_1 = arith.constant 0 : i32
    return %c0_i32, %c0_i32_0 : i32, i32
  }
  func.func @transform_2(%arg0: i32) -> (i32, i32) {
    %c0_i32 = arith.constant 0 : i32
    %c0_i32_0 = arith.constant 0 : i32
    %c0_i32_1 = arith.constant 0 : i32
    return %c0_i32, %c0_i32_0 : i32, i32
  }
  func.func @transform_3(%arg0: i32) -> (i32, i32) {
    %c0_i32 = arith.constant 0 : i32
    %c0_i32_0 = arith.constant 0 : i32
    %c0_i32_1 = arith.constant 0 : i32
    return %c0_i32, %c0_i32_0 : i32, i32
  }
  func.func @transform_4(%arg0: i32) -> (i32, i32) {
    %c0_i32 = arith.constant 0 : i32
    %c0_i32_0 = arith.constant 0 : i32
    %c0_i32_1 = arith.constant 0 : i32
    return %c0_i32, %c0_i32_0 : i32, i32
  }
  func.func @transform_5(%arg0: i32) -> (i32, i32) {
    %c0_i32 = arith.constant 0 : i32
    %c0_i32_0 = arith.constant 0 : i32
    return %arg0, %c0_i32 : i32, i32
  }
}

module attributes {stable_mosaic.version = 11 : i64} {
  func.func @_linear_residual_kernel(%arg0: i32, %arg1: memref<8x32xbf16, #tpu.memory_space<vmem>>, %arg2: memref<32x32xbf16, #tpu.memory_space<vmem>>, %arg3: memref<1x32xf32, #tpu.memory_space<vmem>>, %arg4: memref<8x32xf32, #tpu.memory_space<vmem>>, %arg5: memref<8x32xf32, #tpu.memory_space<vmem>>) attributes {dimension_semantics = [#tpu.dimension_semantics<parallel>], iteration_bounds = array<i64: 2>, scalar_prefetch = 0 : i64, scratch_operands = 0 : i64, tpu.core_type = #tpu.core_type<tc>, window_params = [{transform_indices = @transform_0, window_bounds = array<i64: 8, 32>}, {pipeline_mode = #tpu.pipeline_mode<synchronous>, transform_indices = @transform_1, window_bounds = array<i64: 32, 32>}, {pipeline_mode = #tpu.pipeline_mode<synchronous>, transform_indices = @transform_2, window_bounds = array<i64: 1, 32>}, {transform_indices = @transform_3, window_bounds = array<i64: 8, 32>}, {transform_indices = @transform_4, window_bounds = array<i64: 8, 32>}]} {
    %c0 = arith.constant 0 : index
    %c0_0 = arith.constant 0 : index
    %0 = vector.load %arg1[%c0, %c0_0] : memref<8x32xbf16, #tpu.memory_space<vmem>>, vector<8x32xbf16>
    %c0_1 = arith.constant 0 : index
    %c0_2 = arith.constant 0 : index
    %1 = vector.load %arg2[%c0_1, %c0_2] : memref<32x32xbf16, #tpu.memory_space<vmem>>, vector<32x32xbf16>
    %cst = arith.constant dense<0.000000e+00> : vector<8x32xf32>
    %2 = tpu.matmul %0, %1, %cst {dimension_numbers = #tpu.dot_dimension_numbers<[1], [0], [0], [1], [0, 0, 1, 1], [], []>} : vector<8x32xbf16>, vector<32x32xbf16>, vector<8x32xf32> -> vector<8x32xf32>
    %c0_3 = arith.constant 0 : index
    %c0_4 = arith.constant 0 : index
    %3 = vector.load %arg3[%c0_3, %c0_4] : memref<1x32xf32, #tpu.memory_space<vmem>>, vector<1x32xf32>
    %4 = vector.broadcast %3 : vector<1x32xf32> to vector<8x32xf32>
    %5 = arith.addf %2, %4 : vector<8x32xf32>
    %c0_5 = arith.constant 0 : index
    %c0_6 = arith.constant 0 : index
    %6 = vector.load %arg4[%c0_5, %c0_6] : memref<8x32xf32, #tpu.memory_space<vmem>>, vector<8x32xf32>
    %7 = arith.addf %5, %6 : vector<8x32xf32>
    %c0_7 = arith.constant 0 : index
    %c0_8 = arith.constant 0 : index
    %8 = vector.load %arg5[%c0_7, %c0_8] : memref<8x32xf32, #tpu.memory_space<vmem>>, vector<8x32xf32>
    tpu.vector_store %arg5[%c0_7, %c0_8], %7 {strides = array<i32>} : memref<8x32xf32, #tpu.memory_space<vmem>>, vector<8x32xf32>,
    return
  }
  func.func @transform_0(%arg0: i32) -> (i32, i32) {
    %c0_i32 = arith.constant 0 : i32
    %c0_i32_0 = arith.constant 0 : i32
    return %arg0, %c0_i32 : i32, i32
  }
  func.func @transform_1(%arg0: i32) -> (i32, i32) {
    %c0_i32 = arith.constant 0 : i32
    %c0_i32_0 = arith.constant 0 : i32
    %c0_i32_1 = arith.constant 0 : i32
    return %c0_i32, %c0_i32_0 : i32, i32
  }
  func.func @transform_2(%arg0: i32) -> (i32, i32) {
    %c0_i32 = arith.constant 0 : i32
    %c0_i32_0 = arith.constant 0 : i32
    %c0_i32_1 = arith.constant 0 : i32
    return %c0_i32, %c0_i32_0 : i32, i32
  }
  func.func @transform_3(%arg0: i32) -> (i32, i32) {
    %c0_i32 = arith.constant 0 : i32
    %c0_i32_0 = arith.constant 0 : i32
    return %arg0, %c0_i32 : i32, i32
  }
  func.func @transform_4(%arg0: i32) -> (i32, i32) {
    %c0_i32 = arith.constant 0 : i32
    %c0_i32_0 = arith.constant 0 : i32
    return %arg0, %c0_i32 : i32, i32
  }
}

module attributes {stable_mosaic.version = 11 : i64} {
  func.func @_self_attn_kernel(%arg0: i32, %arg1: memref<1x8x96xbf16, #tpu.memory_space<vmem>>, %arg2: memref<1x1x8x8xbf16, #tpu.memory_space<vmem>>, %arg3: memref<1x8x32xbf16, #tpu.memory_space<vmem>>) attributes {dimension_semantics = [#tpu.dimension_semantics<parallel>], iteration_bounds = array<i64: 2>, scalar_prefetch = 0 : i64, scratch_operands = 0 : i64, tpu.core_type = #tpu.core_type<tc>, window_params = [{transform_indices = @transform_0, window_bounds = array<i64: 1, 8, 96>}, {transform_indices = @transform_1, window_bounds = array<i64: 1, 1, 8, 8>}, {transform_indices = @transform_2, window_bounds = array<i64: 1, 8, 32>}]} {
    %c0 = arith.constant 0 : index
    %c0_0 = arith.constant 0 : index
    %c0_1 = arith.constant 0 : index
    %0 = vector.load %arg1[%c0, %c0_0, %c0_1] : memref<1x8x96xbf16, #tpu.memory_space<vmem>>, vector<1x8x96xbf16>
    %1 = vector.shape_cast %0 : vector<1x8x96xbf16> to vector<8x96xbf16>
    %c0_2 = arith.constant 0 : index
    %c0_3 = arith.constant 0 : index
    %c0_4 = arith.constant 0 : index
    %c0_5 = arith.constant 0 : index
    %2 = vector.load %arg2[%c0_2, %c0_3, %c0_4, %c0_5] : memref<1x1x8x8xbf16, #tpu.memory_space<vmem>>, vector<1x1x8x8xbf16>
    %3 = vector.shape_cast %2 : vector<1x1x8x8xbf16> to vector<8x8xbf16>
    %4 = arith.extf %3 : vector<8x8xbf16> to vector<8x8xf32>
    %5 = vector.extract_strided_slice %1 {offsets = [0, 0], sizes = [8, 32], strides = [1, 1]} : vector<8x96xbf16> to vector<8x32xbf16>
    %6 = vector.extract_strided_slice %1 {offsets = [0, 32], sizes = [8, 32], strides = [1, 1]} : vector<8x96xbf16> to vector<8x32xbf16>
    %7 = vector.extract_strided_slice %1 {offsets = [0, 64], sizes = [8, 32], strides = [1, 1]} : vector<8x96xbf16> to vector<8x32xbf16>
    %8 = arith.extf %5 : vector<8x32xbf16> to vector<8x32xf32>
    %cst = arith.constant 0.353553385 : f32
    %9 = vector.broadcast %cst : f32 to vector<8x32xf32>
    %10 = arith.mulf %8, %9 : vector<8x32xf32>
    %11 = arith.truncf %10 : vector<8x32xf32> to vector<8x32xbf16>
    %12 = vector.extract_strided_slice %11 {offsets = [0, 0], sizes = [8, 8], strides = [1, 1]} : vector<8x32xbf16> to vector<8x8xbf16>
    %13 = vector.extract_strided_slice %6 {offsets = [0, 0], sizes = [8, 8], strides = [1, 1]} : vector<8x32xbf16> to vector<8x8xbf16>
    %cst_6 = arith.constant dense<0.000000e+00> : vector<8x8xf32>
    %14 = tpu.matmul %12, %13, %cst_6 {dimension_numbers = #tpu.dot_dimension_numbers<[1], [1], [0], [0], [0, 0, 1, 0], [], []>} : vector<8x8xbf16>, vector<8x8xbf16>, vector<8x8xf32> -> vector<8x8xf32>
    %15 = arith.addf %14, %4 : vector<8x8xf32>
    %cst_7 = arith.constant dense<0xFF800000> : vector<8xf32>
    %16 = vector.multi_reduction <maximumf>, %15, %cst_7 [1] : vector<8x8xf32> to vector<8xf32>
    %17 = vector.shape_cast %16 : vector<8xf32> to vector<8x1xf32>
    %18 = vector.broadcast %17 : vector<8x1xf32> to vector<8x8xf32>
    %19 = arith.subf %15, %18 : vector<8x8xf32>
    %20 = math.exp %19 : vector<8x8xf32>
    %cst_8 = arith.constant dense<0.000000e+00> : vector<8xf32>
    %21 = vector.multi_reduction <add>, %20, %cst_8 [1] : vector<8x8xf32> to vector<8xf32>
    %22 = vector.shape_cast %21 : vector<8xf32> to vector<8x1xf32>
    %23 = tpu.reciprocal %22 {approx = true} : vector<8x1xf32> -> vector<8x1xf32>
    %24 = vector.broadcast %23 : vector<8x1xf32> to vector<8x8xf32>
    %25 = arith.mulf %20, %24 : vector<8x8xf32>
    %26 = arith.truncf %25 : vector<8x8xf32> to vector<8x8xbf16>
    %27 = vector.extract_strided_slice %7 {offsets = [0, 0], sizes = [8, 8], strides = [1, 1]} : vector<8x32xbf16> to vector<8x8xbf16>
    %cst_9 = arith.constant dense<0.000000e+00> : vector<8x8xf32>
    %28 = tpu.matmul %26, %27, %cst_9 {dimension_numbers = #tpu.dot_dimension_numbers<[1], [0], [0], [1], [0, 0, 1, 1], [], []>} : vector<8x8xbf16>, vector<8x8xbf16>, vector<8x8xf32> -> vector<8x8xf32>
    %29 = arith.truncf %28 : vector<8x8xf32> to vector<8x8xbf16>
    %c0_10 = arith.constant 0 : index
    %c0_11 = arith.constant 0 : index
    %c0_12 = arith.constant 0 : index
    %30 = vector.load %arg3[%c0_10, %c0_11, %c0_12] : memref<1x8x32xbf16, #tpu.memory_space<vmem>>, vector<1x8x8xbf16>
    %31 = vector.shape_cast %30 : vector<1x8x8xbf16> to vector<8x8xbf16>
    %32 = vector.shape_cast %29 : vector<8x8xbf16> to vector<1x8x8xbf16>
    tpu.vector_store %arg3[%c0_10, %c0_11, %c0_12], %32 {strides = array<i32>} : memref<1x8x32xbf16, #tpu.memory_space<vmem>>, vector<1x8x8xbf16>,
    %33 = vector.extract_strided_slice %11 {offsets = [0, 8], sizes = [8, 8], strides = [1, 1]} : vector<8x32xbf16> to vector<8x8xbf16>
    %34 = vector.extract_strided_slice %6 {offsets = [0, 8], sizes = [8, 8], strides = [1, 1]} : vector<8x32xbf16> to vector<8x8xbf16>
    %cst_13 = arith.constant dense<0.000000e+00> : vector<8x8xf32>
    %35 = tpu.matmul %33, %34, %cst_13 {dimension_numbers = #tpu.dot_dimension_numbers<[1], [1], [0], [0], [0, 0, 1, 0], [], []>} : vector<8x8xbf16>, vector<8x8xbf16>, vector<8x8xf32> -> vector<8x8xf32>
    %36 = arith.addf %35, %4 : vector<8x8xf32>
    %cst_14 = arith.constant dense<0xFF800000> : vector<8xf32>
    %37 = vector.multi_reduction <maximumf>, %36, %cst_14 [1] : vector<8x8xf32> to vector<8xf32>
    %38 = vector.shape_cast %37 : vector<8xf32> to vector<8x1xf32>
    %39 = vector.broadcast %38 : vector<8x1xf32> to vector<8x8xf32>
    %40 = arith.subf %36, %39 : vector<8x8xf32>
    %41 = math.exp %40 : vector<8x8xf32>
    %cst_15 = arith.constant dense<0.000000e+00> : vector<8xf32>
    %42 = vector.multi_reduction <add>, %41, %cst_15 [1] : vector<8x8xf32> to vector<8xf32>
    %43 = vector.shape_cast %42 : vector<8xf32> to vector<8x1xf32>
    %44 = tpu.reciprocal %43 {approx = true} : vector<8x1xf32> -> vector<8x1xf32>
    %45 = vector.broadcast %44 : vector<8x1xf32> to vector<8x8xf32>
    %46 = arith.mulf %41, %45 : vector<8x8xf32>
    %47 = arith.truncf %46 : vector<8x8xf32> to vector<8x8xbf16>
    %48 = vector.extract_strided_slice %7 {offsets = [0, 8], sizes = [8, 8], strides = [1, 1]} : vector<8x32xbf16> to vector<8x8xbf16>
    %cst_16 = arith.constant dense<0.000000e+00> : vector<8x8xf32>
    %49 = tpu.matmul %47, %48, %cst_16 {dimension_numbers = #tpu.dot_dimension_numbers<[1], [0], [0], [1], [0, 0, 1, 1], [], []>} : vector<8x8xbf16>, vector<8x8xbf16>, vector<8x8xf32> -> vector<8x8xf32>
    %50 = arith.truncf %49 : vector<8x8xf32> to vector<8x8xbf16>
    %c0_17 = arith.constant 0 : index
    %c0_18 = arith.constant 0 : index
    %c8 = arith.constant 8 : index
    %51 = vector.load %arg3[%c0_17, %c0_18, %c8] : memref<1x8x32xbf16, #tpu.memory_space<vmem>>, vector<1x8x8xbf16>
    %52 = vector.shape_cast %51 : vector<1x8x8xbf16> to vector<8x8xbf16>
    %53 = vector.shape_cast %50 : vector<8x8xbf16> to vector<1x8x8xbf16>
    tpu.vector_store %arg3[%c0_17, %c0_18, %c8], %53 {strides = array<i32>} : memref<1x8x32xbf16, #tpu.memory_space<vmem>>, vector<1x8x8xbf16>,
    %54 = vector.extract_strided_slice %11 {offsets = [0, 16], sizes = [8, 8], strides = [1, 1]} : vector<8x32xbf16> to vector<8x8xbf16>
    %55 = vector.extract_strided_slice %6 {offsets = [0, 16], sizes = [8, 8], strides = [1, 1]} : vector<8x32xbf16> to vector<8x8xbf16>
    %cst_19 = arith.constant dense<0.000000e+00> : vector<8x8xf32>
    %56 = tpu.matmul %54, %55, %cst_19 {dimension_numbers = #tpu.dot_dimension_numbers<[1], [1], [0], [0], [0, 0, 1, 0], [], []>} : vector<8x8xbf16>, vector<8x8xbf16>, vector<8x8xf32> -> vector<8x8xf32>
    %57 = arith.addf %56, %4 : vector<8x8xf32>
    %cst_20 = arith.constant dense<0xFF800000> : vector<8xf32>
    %58 = vector.multi_reduction <maximumf>, %57, %cst_20 [1] : vector<8x8xf32> to vector<8xf32>
    %59 = vector.shape_cast %58 : vector<8xf32> to vector<8x1xf32>
    %60 = vector.broadcast %59 : vector<8x1xf32> to vector<8x8xf32>
    %61 = arith.subf %57, %60 : vector<8x8xf32>
    %62 = math.exp %61 : vector<8x8xf32>
    %cst_21 = arith.constant dense<0.000000e+00> : vector<8xf32>
    %63 = vector.multi_reduction <add>, %62, %cst_21 [1] : vector<8x8xf32> to vector<8xf32>
    %64 = vector.shape_cast %63 : vector<8xf32> to vector<8x1xf32>
    %65 = tpu.reciprocal %64 {approx = true} : vector<8x1xf32> -> vector<8x1xf32>
    %66 = vector.broadcast %65 : vector<8x1xf32> to vector<8x8xf32>
    %67 = arith.mulf %62, %66 : vector<8x8xf32>
    %68 = arith.truncf %67 : vector<8x8xf32> to vector<8x8xbf16>
    %69 = vector.extract_strided_slice %7 {offsets = [0, 16], sizes = [8, 8], strides = [1, 1]} : vector<8x32xbf16> to vector<8x8xbf16>
    %cst_22 = arith.constant dense<0.000000e+00> : vector<8x8xf32>
    %70 = tpu.matmul %68, %69, %cst_22 {dimension_numbers = #tpu.dot_dimension_numbers<[1], [0], [0], [1], [0, 0, 1, 1], [], []>} : vector<8x8xbf16>, vector<8x8xbf16>, vector<8x8xf32> -> vector<8x8xf32>
    %71 = arith.truncf %70 : vector<8x8xf32> to vector<8x8xbf16>
    %c0_23 = arith.constant 0 : index
    %c0_24 = arith.constant 0 : index
    %c16 = arith.constant 16 : index
    %72 = vector.load %arg3[%c0_23, %c0_24, %c16] : memref<1x8x32xbf16, #tpu.memory_space<vmem>>, vector<1x8x8xbf16>
    %73 = vector.shape_cast %72 : vector<1x8x8xbf16> to vector<8x8xbf16>
    %74 = vector.shape_cast %71 : vector<8x8xbf16> to vector<1x8x8xbf16>
    tpu.vector_store %arg3[%c0_23, %c0_24, %c16], %74 {strides = array<i32>} : memref<1x8x32xbf16, #tpu.memory_space<vmem>>, vector<1x8x8xbf16>,
    %75 = vector.extract_strided_slice %11 {offsets = [0, 24], sizes = [8, 8], strides = [1, 1]} : vector<8x32xbf16> to vector<8x8xbf16>
    %76 = vector.extract_strided_slice %6 {offsets = [0, 24], sizes = [8, 8], strides = [1, 1]} : vector<8x32xbf16> to vector<8x8xbf16>
    %cst_25 = arith.constant dense<0.000000e+00> : vector<8x8xf32>
    %77 = tpu.matmul %75, %76, %cst_25 {dimension_numbers = #tpu.dot_dimension_numbers<[1], [1], [0], [0], [0, 0, 1, 0], [], []>} : vector<8x8xbf16>, vector<8x8xbf16>, vector<8x8xf32> -> vector<8x8xf32>
    %78 = arith.addf %77, %4 : vector<8x8xf32>
    %cst_26 = arith.constant dense<0xFF800000> : vector<8xf32>
    %79 = vector.multi_reduction <maximumf>, %78, %cst_26 [1] : vector<8x8xf32> to vector<8xf32>
    %80 = vector.shape_cast %79 : vector<8xf32> to vector<8x1xf32>
    %81 = vector.broadcast %80 : vector<8x1xf32> to vector<8x8xf32>
    %82 = arith.subf %78, %81 : vector<8x8xf32>
    %83 = math.exp %82 : vector<8x8xf32>
    %cst_27 = arith.constant dense<0.000000e+00> : vector<8xf32>
    %84 = vector.multi_reduction <add>, %83, %cst_27 [1] : vector<8x8xf32> to vector<8xf32>
    %85 = vector.shape_cast %84 : vector<8xf32> to vector<8x1xf32>
    %86 = tpu.reciprocal %85 {approx = true} : vector<8x1xf32> -> vector<8x1xf32>
    %87 = vector.broadcast %86 : vector<8x1xf32> to vector<8x8xf32>
    %88 = arith.mulf %83, %87 : vector<8x8xf32>
    %89 = arith.truncf %88 : vector<8x8xf32> to vector<8x8xbf16>
    %90 = vector.extract_strided_slice %7 {offsets = [0, 24], sizes = [8, 8], strides = [1, 1]} : vector<8x32xbf16> to vector<8x8xbf16>
    %cst_28 = arith.constant dense<0.000000e+00> : vector<8x8xf32>
    %91 = tpu.matmul %89, %90, %cst_28 {dimension_numbers = #tpu.dot_dimension_numbers<[1], [0], [0], [1], [0, 0, 1, 1], [], []>} : vector<8x8xbf16>, vector<8x8xbf16>, vector<8x8xf32> -> vector<8x8xf32>
    %92 = arith.truncf %91 : vector<8x8xf32> to vector<8x8xbf16>
    %c0_29 = arith.constant 0 : index
    %c0_30 = arith.constant 0 : index
    %c24 = arith.constant 24 : index
    %93 = vector.load %arg3[%c0_29, %c0_30, %c24] : memref<1x8x32xbf16, #tpu.memory_space<vmem>>, vector<1x8x8xbf16>
    %94 = vector.shape_cast %93 : vector<1x8x8xbf16> to vector<8x8xbf16>
    %95 = vector.shape_cast %92 : vector<8x8xbf16> to vector<1x8x8xbf16>
    tpu.vector_store %arg3[%c0_29, %c0_30, %c24], %95 {strides = array<i32>} : memref<1x8x32xbf16, #tpu.memory_space<vmem>>, vector<1x8x8xbf16>,
    return
  }
  func.func @transform_0(%arg0: i32) -> (i32, i32, i32) {
    %c0_i32 = arith.constant 0 : i32
    %c0_i32_0 = arith.constant 0 : i32
    %c0_i32_1 = arith.constant 0 : i32
    return %arg0, %c0_i32, %c0_i32_0 : i32, i32, i32
  }
  func.func @transform_1(%arg0: i32) -> (i32, i32, i32, i32) {
    %c1_i32 = arith.constant 1 : i32
    %0 = arith.muli %arg0, %c1_i32 : i32
    %c0_i32 = arith.constant 0 : i32
    %c0_i32_0 = arith.constant 0 : i32
    %c0_i32_1 = arith.constant 0 : i32
    %c0_i32_2 = arith.constant 0 : i32
    return %0, %c0_i32, %c0_i32_0, %c0_i32_1 : i32, i32, i32, i32
  }
  func.func @transform_2(%arg0: i32) -> (i32, i32, i32) {
    %c0_i32 = arith.constant 0 : i32
    %c0_i32_0 = arith.constant 0 : i32
    %c0_i32_1 = arith.constant 0 : i32
    return %arg0, %c0_i32, %c0_i32_0 : i32, i32, i32
  }
}

module attributes {stable_mosaic.version = 11 : i64} {
  func.func @_ln_linear_kernel(%arg0: i32, %arg1: memref<8x32xf32, #tpu.memory_space<vmem>>, %arg2: memref<1x32xf32, #tpu.memory_space<vmem>>, %arg3: memref<1x32xf32, #tpu.memory_space<vmem>>, %arg4: memref<32x32xbf16, #tpu.memory_space<vmem>>, %arg5: memref<1x32xf32, #tpu.memory_space<vmem>>, %arg6: memref<8x32xbf16, #tpu.memory_space<vmem>>) attributes {dimension_semantics = [#tpu.dimension_semantics<parallel>], iteration_bounds = array<i64: 2>, scalar_prefetch = 0 : i64, scratch_operands = 0 : i64, tpu.core_type = #tpu.core_type<tc>, window_params = [{transform_indices = @transform_0, window_bounds = array<i64: 8, 32>}, {pipeline_mode = #tpu.pipeline_mode<synchronous>, transform_indices = @transform_1, window_bounds = array<i64: 1, 32>}, {pipeline_mode = #tpu.pipeline_mode<synchronous>, transform_indices = @transform_2, window_bounds = array<i64: 1, 32>}, {pipeline_mode = #tpu.pipeline_mode<synchronous>, transform_indices = @transform_3, window_bounds = array<i64: 32, 32>}, {pipeline_mode = #tpu.pipeline_mode<synchronous>, transform_indices = @transform_4, window_bounds = array<i64: 1, 32>}, {transform_indices = @transform_5, window_bounds = array<i64: 8, 32>}]} {
    %c0 = arith.constant 0 : index
    %c0_0 = arith.constant 0 : index
    %0 = vector.load %arg1[%c0, %c0_0] : memref<8x32xf32, #tpu.memory_space<vmem>>, vector<8x32xf32>
    %c0_1 = arith.constant 0 : index
    %c0_2 = arith.constant 0 : index
    %1 = vector.load %arg2[%c0_1, %c0_2] : memref<1x32xf32, #tpu.memory_space<vmem>>, vector<1x32xf32>
    %c0_3 = arith.constant 0 : index
    %c0_4 = arith.constant 0 : index
    %2 = vector.load %arg3[%c0_3, %c0_4] : memref<1x32xf32, #tpu.memory_space<vmem>>, vector<1x32xf32>
    %cst = arith.constant dense<0.000000e+00> : vector<8xf32>
    %3 = vector.multi_reduction <add>, %0, %cst [1] : vector<8x32xf32> to vector<8xf32>
    %4 = vector.shape_cast %3 : vector<8xf32> to vector<8x1xf32>
    %cst_5 = arith.constant 3.200000e+01 : f32
    %5 = vector.broadcast %cst_5 : f32 to vector<8x1xf32>
    %6 = arith.divf %4, %5 : vector<8x1xf32>
    %7 = vector.broadcast %6 : vector<8x1xf32> to vector<8x32xf32>
    %8 = arith.subf %0, %7 : vector<8x32xf32>
    %9 = arith.mulf %8, %8 : vector<8x32xf32>
    %cst_6 = arith.constant dense<0.000000e+00> : vector<8xf32>
    %10 = vector.multi_reduction <add>, %9, %cst_6 [1] : vector<8x32xf32> to vector<8xf32>
    %11 = vector.shape_cast %10 : vector<8xf32> to vector<8x1xf32>
    %cst_7 = arith.constant 3.200000e+01 : f32
    %12 = vector.broadcast %cst_7 : f32 to vector<8x1xf32>
    %13 = arith.divf %11, %12 : vector<8x1xf32>
    %14 = vector.broadcast %6 : vector<8x1xf32> to vector<8x32xf32>
    %15 = arith.subf %0, %14 : vector<8x32xf32>
    %cst_8 = arith.constant 9.99999974E-6 : f32
    %16 = vector.broadcast %cst_8 : f32 to vector<8x1xf32>
    %17 = arith.addf %13, %16 : vector<8x1xf32>
    %18 = math.rsqrt %17 : vector<8x1xf32>
    %19 = vector.broadcast %18 : vector<8x1xf32> to vector<8x32xf32>
    %20 = arith.mulf %15, %19 : vector<8x32xf32>
    %21 = vector.broadcast %1 : vector<1x32xf32> to vector<8x32xf32>
    %22 = arith.mulf %20, %21 : vector<8x32xf32>
    %23 = vector.broadcast %2 : vector<1x32xf32> to vector<8x32xf32>
    %24 = arith.addf %22, %23 : vector<8x32xf32>
    %25 = arith.truncf %24 : vector<8x32xf32> to vector<8x32xbf16>
    %c0_9 = arith.constant 0 : index
    %c0_10 = arith.constant 0 : index
    %26 = vector.load %arg4[%c0_9, %c0_10] : memref<32x32xbf16, #tpu.memory_space<vmem>>, vector<32x32xbf16>
    %cst_11 = arith.constant dense<0.000000e+00> : vector<8x32xf32>
    %27 = tpu.matmul %25, %26, %cst_11 {dimension_numbers = #tpu.dot_dimension_numbers<[1], [0], [0], [1], [0, 0, 1, 1], [], []>} : vector<8x32xbf16>, vector<32x32xbf16>, vector<8x32xf32> -> vector<8x32xf32>
    %c0_12 = arith.constant 0 : index
    %c0_13 = arith.constant 0 : index
    %28 = vector.load %arg5[%c0_12, %c0_13] : memref<1x32xf32, #tpu.memory_space<vmem>>, vector<1x32xf32>
    %29 = vector.broadcast %28 : vector<1x32xf32> to vector<8x32xf32>
    %30 = arith.addf %27, %29 : vector<8x32xf32>
    %31 = arith.truncf %30 : vector<8x32xf32> to vector<8x32xbf16>
    %c0_14 = arith.constant 0 : index
    %c0_15 = arith.constant 0 : index
    %32 = vector.load %arg6[%c0_14, %c0_15] : memref<8x32xbf16, #tpu.memory_space<vmem>>, vector<8x32xbf16>
    tpu.vector_store %arg6[%c0_14, %c0_15], %31 {strides = array<i32>} : memref<8x32xbf16, #tpu.memory_space<vmem>>, vector<8x32xbf16>,
    return
  }
  func.func @transform_0(%arg0: i32) -> (i32, i32) {
    %c0_i32 = arith.constant 0 : i32
    %c0_i32_0 = arith.constant 0 : i32
    return %arg0, %c0_i32 : i32, i32
  }
  func.func @transform_1(%arg0: i32) -> (i32, i32) {
    %c0_i32 = arith.constant 0 : i32
    %c0_i32_0 = arith.constant 0 : i32
    %c0_i32_1 = arith.constant 0 : i32
    return %c0_i32, %c0_i32_0 : i32, i32
  }
  func.func @transform_2(%arg0: i32) -> (i32, i32) {
    %c0_i32 = arith.constant 0 : i32
    %c0_i32_0 = arith.constant 0 : i32
    %c0_i32_1 = arith.constant 0 : i32
    return %c0_i32, %c0_i32_0 : i32, i32
  }
  func.func @transform_3(%arg0: i32) -> (i32, i32) {
    %c0_i32 = arith.constant 0 : i32
    %c0_i32_0 = arith.constant 0 : i32
    %c0_i32_1 = arith.constant 0 : i32
    return %c0_i32, %c0_i32_0 : i32, i32
  }
  func.func @transform_4(%arg0: i32) -> (i32, i32) {
    %c0_i32 = arith.constant 0 : i32
    %c0_i32_0 = arith.constant 0 : i32
    %c0_i32_1 = arith.constant 0 : i32
    return %c0_i32, %c0_i32_0 : i32, i32
  }
  func.func @transform_5(%arg0: i32) -> (i32, i32) {
    %c0_i32 = arith.constant 0 : i32
    %c0_i32_0 = arith.constant 0 : i32
    return %arg0, %c0_i32 : i32, i32
  }
}

module attributes {stable_mosaic.version = 11 : i64} {
  func.func @_cross_attn_kernel(%arg0: i32, %arg1: memref<1x8x32xbf16, #tpu.memory_space<vmem>>, %arg2: memref<1x8x64xbf16, #tpu.memory_space<vmem>>, %arg3: memref<1x1x1x8xbf16, #tpu.memory_space<vmem>>, %arg4: memref<1x8x32xbf16, #tpu.memory_space<vmem>>) attributes {dimension_semantics = [#tpu.dimension_semantics<parallel>], iteration_bounds = array<i64: 2>, scalar_prefetch = 0 : i64, scratch_operands = 0 : i64, tpu.core_type = #tpu.core_type<tc>, window_params = [{transform_indices = @transform_0, window_bounds = array<i64: 1, 8, 32>}, {transform_indices = @transform_1, window_bounds = array<i64: 1, 8, 64>}, {transform_indices = @transform_2, window_bounds = array<i64: 1, 1, 1, 8>}, {transform_indices = @transform_3, window_bounds = array<i64: 1, 8, 32>}]} {
    %c0 = arith.constant 0 : index
    %c0_0 = arith.constant 0 : index
    %c0_1 = arith.constant 0 : index
    %0 = vector.load %arg2[%c0, %c0_0, %c0_1] : memref<1x8x64xbf16, #tpu.memory_space<vmem>>, vector<1x8x64xbf16>
    %1 = vector.shape_cast %0 : vector<1x8x64xbf16> to vector<8x64xbf16>
    %c0_2 = arith.constant 0 : index
    %c0_3 = arith.constant 0 : index
    %c0_4 = arith.constant 0 : index
    %2 = vector.load %arg1[%c0_2, %c0_3, %c0_4] : memref<1x8x32xbf16, #tpu.memory_space<vmem>>, vector<1x8x32xbf16>
    %3 = vector.shape_cast %2 : vector<1x8x32xbf16> to vector<8x32xbf16>
    %4 = vector.extract_strided_slice %1 {offsets = [0, 0], sizes = [8, 32], strides = [1, 1]} : vector<8x64xbf16> to vector<8x32xbf16>
    %5 = vector.extract_strided_slice %1 {offsets = [0, 32], sizes = [8, 32], strides = [1, 1]} : vector<8x64xbf16> to vector<8x32xbf16>
    %c0_5 = arith.constant 0 : index
    %c0_6 = arith.constant 0 : index
    %c0_7 = arith.constant 0 : index
    %c0_8 = arith.constant 0 : index
    %6 = vector.load %arg3[%c0_5, %c0_6, %c0_7, %c0_8] : memref<1x1x1x8xbf16, #tpu.memory_space<vmem>>, vector<1x1x1x8xbf16>
    %7 = vector.shape_cast %6 : vector<1x1x1x8xbf16> to vector<1x8xbf16>
    %8 = arith.extf %7 : vector<1x8xbf16> to vector<1x8xf32>
    %9 = arith.extf %3 : vector<8x32xbf16> to vector<8x32xf32>
    %cst = arith.constant 0.353553385 : f32
    %10 = vector.broadcast %cst : f32 to vector<8x32xf32>
    %11 = arith.mulf %9, %10 : vector<8x32xf32>
    %12 = arith.truncf %11 : vector<8x32xf32> to vector<8x32xbf16>
    %13 = vector.extract_strided_slice %12 {offsets = [0, 0], sizes = [8, 8], strides = [1, 1]} : vector<8x32xbf16> to vector<8x8xbf16>
    %14 = vector.extract_strided_slice %4 {offsets = [0, 0], sizes = [8, 8], strides = [1, 1]} : vector<8x32xbf16> to vector<8x8xbf16>
    %cst_9 = arith.constant dense<0.000000e+00> : vector<8x8xf32>
    %15 = tpu.matmul %13, %14, %cst_9 {dimension_numbers = #tpu.dot_dimension_numbers<[1], [1], [0], [0], [0, 0, 1, 0], [], []>} : vector<8x8xbf16>, vector<8x8xbf16>, vector<8x8xf32> -> vector<8x8xf32>
    %16 = vector.broadcast %8 : vector<1x8xf32> to vector<8x8xf32>
    %17 = arith.addf %15, %16 : vector<8x8xf32>
    %cst_10 = arith.constant dense<0xFF800000> : vector<8xf32>
    %18 = vector.multi_reduction <maximumf>, %17, %cst_10 [1] : vector<8x8xf32> to vector<8xf32>
    %19 = vector.shape_cast %18 : vector<8xf32> to vector<8x1xf32>
    %20 = vector.broadcast %19 : vector<8x1xf32> to vector<8x8xf32>
    %21 = arith.subf %17, %20 : vector<8x8xf32>
    %22 = math.exp %21 : vector<8x8xf32>
    %cst_11 = arith.constant dense<0.000000e+00> : vector<8xf32>
    %23 = vector.multi_reduction <add>, %22, %cst_11 [1] : vector<8x8xf32> to vector<8xf32>
    %24 = vector.shape_cast %23 : vector<8xf32> to vector<8x1xf32>
    %25 = tpu.reciprocal %24 {approx = true} : vector<8x1xf32> -> vector<8x1xf32>
    %26 = vector.broadcast %25 : vector<8x1xf32> to vector<8x8xf32>
    %27 = arith.mulf %22, %26 : vector<8x8xf32>
    %28 = arith.truncf %27 : vector<8x8xf32> to vector<8x8xbf16>
    %29 = vector.extract_strided_slice %5 {offsets = [0, 0], sizes = [8, 8], strides = [1, 1]} : vector<8x32xbf16> to vector<8x8xbf16>
    %cst_12 = arith.constant dense<0.000000e+00> : vector<8x8xf32>
    %30 = tpu.matmul %28, %29, %cst_12 {dimension_numbers = #tpu.dot_dimension_numbers<[1], [0], [0], [1], [0, 0, 1, 1], [], []>} : vector<8x8xbf16>, vector<8x8xbf16>, vector<8x8xf32> -> vector<8x8xf32>
    %31 = arith.truncf %30 : vector<8x8xf32> to vector<8x8xbf16>
    %c0_13 = arith.constant 0 : index
    %c0_14 = arith.constant 0 : index
    %c0_15 = arith.constant 0 : index
    %32 = vector.load %arg4[%c0_13, %c0_14, %c0_15] : memref<1x8x32xbf16, #tpu.memory_space<vmem>>, vector<1x8x8xbf16>
    %33 = vector.shape_cast %32 : vector<1x8x8xbf16> to vector<8x8xbf16>
    %34 = vector.shape_cast %31 : vector<8x8xbf16> to vector<1x8x8xbf16>
    tpu.vector_store %arg4[%c0_13, %c0_14, %c0_15], %34 {strides = array<i32>} : memref<1x8x32xbf16, #tpu.memory_space<vmem>>, vector<1x8x8xbf16>,
    %35 = vector.extract_strided_slice %12 {offsets = [0, 8], sizes = [8, 8], strides = [1, 1]} : vector<8x32xbf16> to vector<8x8xbf16>
    %36 = vector.extract_strided_slice %4 {offsets = [0, 8], sizes = [8, 8], strides = [1, 1]} : vector<8x32xbf16> to vector<8x8xbf16>
    %cst_16 = arith.constant dense<0.000000e+00> : vector<8x8xf32>
    %37 = tpu.matmul %35, %36, %cst_16 {dimension_numbers = #tpu.dot_dimension_numbers<[1], [1], [0], [0], [0, 0, 1, 0], [], []>} : vector<8x8xbf16>, vector<8x8xbf16>, vector<8x8xf32> -> vector<8x8xf32>
    %38 = vector.broadcast %8 : vector<1x8xf32> to vector<8x8xf32>
    %39 = arith.addf %37, %38 : vector<8x8xf32>
    %cst_17 = arith.constant dense<0xFF800000> : vector<8xf32>
    %40 = vector.multi_reduction <maximumf>, %39, %cst_17 [1] : vector<8x8xf32> to vector<8xf32>
    %41 = vector.shape_cast %40 : vector<8xf32> to vector<8x1xf32>
    %42 = vector.broadcast %41 : vector<8x1xf32> to vector<8x8xf32>
    %43 = arith.subf %39, %42 : vector<8x8xf32>
    %44 = math.exp %43 : vector<8x8xf32>
    %cst_18 = arith.constant dense<0.000000e+00> : vector<8xf32>
    %45 = vector.multi_reduction <add>, %44, %cst_18 [1] : vector<8x8xf32> to vector<8xf32>
    %46 = vector.shape_cast %45 : vector<8xf32> to vector<8x1xf32>
    %47 = tpu.reciprocal %46 {approx = true} : vector<8x1xf32> -> vector<8x1xf32>
    %48 = vector.broadcast %47 : vector<8x1xf32> to vector<8x8xf32>
    %49 = arith.mulf %44, %48 : vector<8x8xf32>
    %50 = arith.truncf %49 : vector<8x8xf32> to vector<8x8xbf16>
    %51 = vector.extract_strided_slice %5 {offsets = [0, 8], sizes = [8, 8], strides = [1, 1]} : vector<8x32xbf16> to vector<8x8xbf16>
    %cst_19 = arith.constant dense<0.000000e+00> : vector<8x8xf32>
    %52 = tpu.matmul %50, %51, %cst_19 {dimension_numbers = #tpu.dot_dimension_numbers<[1], [0], [0], [1], [0, 0, 1, 1], [], []>} : vector<8x8xbf16>, vector<8x8xbf16>, vector<8x8xf32> -> vector<8x8xf32>
    %53 = arith.truncf %52 : vector<8x8xf32> to vector<8x8xbf16>
    %c0_20 = arith.constant 0 : index
    %c0_21 = arith.constant 0 : index
    %c8 = arith.constant 8 : index
    %54 = vector.load %arg4[%c0_20, %c0_21, %c8] : memref<1x8x32xbf16, #tpu.memory_space<vmem>>, vector<1x8x8xbf16>
    %55 = vector.shape_cast %54 : vector<1x8x8xbf16> to vector<8x8xbf16>
    %56 = vector.shape_cast %53 : vector<8x8xbf16> to vector<1x8x8xbf16>
    tpu.vector_store %arg4[%c0_20, %c0_21, %c8], %56 {strides = array<i32>} : memref<1x8x32xbf16, #tpu.memory_space<vmem>>, vector<1x8x8xbf16>,
    %57 = vector.extract_strided_slice %12 {offsets = [0, 16], sizes = [8, 8], strides = [1, 1]} : vector<8x32xbf16> to vector<8x8xbf16>
    %58 = vector.extract_strided_slice %4 {offsets = [0, 16], sizes = [8, 8], strides = [1, 1]} : vector<8x32xbf16> to vector<8x8xbf16>
    %cst_22 = arith.constant dense<0.000000e+00> : vector<8x8xf32>
    %59 = tpu.matmul %57, %58, %cst_22 {dimension_numbers = #tpu.dot_dimension_numbers<[1], [1], [0], [0], [0, 0, 1, 0], [], []>} : vector<8x8xbf16>, vector<8x8xbf16>, vector<8x8xf32> -> vector<8x8xf32>
    %60 = vector.broadcast %8 : vector<1x8xf32> to vector<8x8xf32>
    %61 = arith.addf %59, %60 : vector<8x8xf32>
    %cst_23 = arith.constant dense<0xFF800000> : vector<8xf32>
    %62 = vector.multi_reduction <maximumf>, %61, %cst_23 [1] : vector<8x8xf32> to vector<8xf32>
    %63 = vector.shape_cast %62 : vector<8xf32> to vector<8x1xf32>
    %64 = vector.broadcast %63 : vector<8x1xf32> to vector<8x8xf32>
    %65 = arith.subf %61, %64 : vector<8x8xf32>
    %66 = math.exp %65 : vector<8x8xf32>
    %cst_24 = arith.constant dense<0.000000e+00> : vector<8xf32>
    %67 = vector.multi_reduction <add>, %66, %cst_24 [1] : vector<8x8xf32> to vector<8xf32>
    %68 = vector.shape_cast %67 : vector<8xf32> to vector<8x1xf32>
    %69 = tpu.reciprocal %68 {approx = true} : vector<8x1xf32> -> vector<8x1xf32>
    %70 = vector.broadcast %69 : vector<8x1xf32> to vector<8x8xf32>
    %71 = arith.mulf %66, %70 : vector<8x8xf32>
    %72 = arith.truncf %71 : vector<8x8xf32> to vector<8x8xbf16>
    %73 = vector.extract_strided_slice %5 {offsets = [0, 16], sizes = [8, 8], strides = [1, 1]} : vector<8x32xbf16> to vector<8x8xbf16>
    %cst_25 = arith.constant dense<0.000000e+00> : vector<8x8xf32>
    %74 = tpu.matmul %72, %73, %cst_25 {dimension_numbers = #tpu.dot_dimension_numbers<[1], [0], [0], [1], [0, 0, 1, 1], [], []>} : vector<8x8xbf16>, vector<8x8xbf16>, vector<8x8xf32> -> vector<8x8xf32>
    %75 = arith.truncf %74 : vector<8x8xf32> to vector<8x8xbf16>
    %c0_26 = arith.constant 0 : index
    %c0_27 = arith.constant 0 : index
    %c16 = arith.constant 16 : index
    %76 = vector.load %arg4[%c0_26, %c0_27, %c16] : memref<1x8x32xbf16, #tpu.memory_space<vmem>>, vector<1x8x8xbf16>
    %77 = vector.shape_cast %76 : vector<1x8x8xbf16> to vector<8x8xbf16>
    %78 = vector.shape_cast %75 : vector<8x8xbf16> to vector<1x8x8xbf16>
    tpu.vector_store %arg4[%c0_26, %c0_27, %c16], %78 {strides = array<i32>} : memref<1x8x32xbf16, #tpu.memory_space<vmem>>, vector<1x8x8xbf16>,
    %79 = vector.extract_strided_slice %12 {offsets = [0, 24], sizes = [8, 8], strides = [1, 1]} : vector<8x32xbf16> to vector<8x8xbf16>
    %80 = vector.extract_strided_slice %4 {offsets = [0, 24], sizes = [8, 8], strides = [1, 1]} : vector<8x32xbf16> to vector<8x8xbf16>
    %cst_28 = arith.constant dense<0.000000e+00> : vector<8x8xf32>
    %81 = tpu.matmul %79, %80, %cst_28 {dimension_numbers = #tpu.dot_dimension_numbers<[1], [1], [0], [0], [0, 0, 1, 0], [], []>} : vector<8x8xbf16>, vector<8x8xbf16>, vector<8x8xf32> -> vector<8x8xf32>
    %82 = vector.broadcast %8 : vector<1x8xf32> to vector<8x8xf32>
    %83 = arith.addf %81, %82 : vector<8x8xf32>
    %cst_29 = arith.constant dense<0xFF800000> : vector<8xf32>
    %84 = vector.multi_reduction <maximumf>, %83, %cst_29 [1] : vector<8x8xf32> to vector<8xf32>
    %85 = vector.shape_cast %84 : vector<8xf32> to vector<8x1xf32>
    %86 = vector.broadcast %85 : vector<8x1xf32> to vector<8x8xf32>
    %87 = arith.subf %83, %86 : vector<8x8xf32>
    %88 = math.exp %87 : vector<8x8xf32>
    %cst_30 = arith.constant dense<0.000000e+00> : vector<8xf32>
    %89 = vector.multi_reduction <add>, %88, %cst_30 [1] : vector<8x8xf32> to vector<8xf32>
    %90 = vector.shape_cast %89 : vector<8xf32> to vector<8x1xf32>
    %91 = tpu.reciprocal %90 {approx = true} : vector<8x1xf32> -> vector<8x1xf32>
    %92 = vector.broadcast %91 : vector<8x1xf32> to vector<8x8xf32>
    %93 = arith.mulf %88, %92 : vector<8x8xf32>
    %94 = arith.truncf %93 : vector<8x8xf32> to vector<8x8xbf16>
    %95 = vector.extract_strided_slice %5 {offsets = [0, 24], sizes = [8, 8], strides = [1, 1]} : vector<8x32xbf16> to vector<8x8xbf16>
    %cst_31 = arith.constant dense<0.000000e+00> : vector<8x8xf32>
    %96 = tpu.matmul %94, %95, %cst_31 {dimension_numbers = #tpu.dot_dimension_numbers<[1], [0], [0], [1], [0, 0, 1, 1], [], []>} : vector<8x8xbf16>, vector<8x8xbf16>, vector<8x8xf32> -> vector<8x8xf32>
    %97 = arith.truncf %96 : vector<8x8xf32> to vector<8x8xbf16>
    %c0_32 = arith.constant 0 : index
    %c0_33 = arith.constant 0 : index
    %c24 = arith.constant 24 : index
    %98 = vector.load %arg4[%c0_32, %c0_33, %c24] : memref<1x8x32xbf16, #tpu.memory_space<vmem>>, vector<1x8x8xbf16>
    %99 = vector.shape_cast %98 : vector<1x8x8xbf16> to vector<8x8xbf16>
    %100 = vector.shape_cast %97 : vector<8x8xbf16> to vector<1x8x8xbf16>
    tpu.vector_store %arg4[%c0_32, %c0_33, %c24], %100 {strides = array<i32>} : memref<1x8x32xbf16, #tpu.memory_space<vmem>>, vector<1x8x8xbf16>,
    return
  }
  func.func @transform_0(%arg0: i32) -> (i32, i32, i32) {
    %c0_i32 = arith.constant 0 : i32
    %c0_i32_0 = arith.constant 0 : i32
    %c0_i32_1 = arith.constant 0 : i32
    return %arg0, %c0_i32, %c0_i32_0 : i32, i32, i32
  }
  func.func @transform_1(%arg0: i32) -> (i32, i32, i32) {
    %c0_i32 = arith.constant 0 : i32
    %c0_i32_0 = arith.constant 0 : i32
    %c0_i32_1 = arith.constant 0 : i32
    return %arg0, %c0_i32, %c0_i32_0 : i32, i32, i32
  }
  func.func @transform_2(%arg0: i32) -> (i32, i32, i32, i32) {
    %c1_i32 = arith.constant 1 : i32
    %0 = arith.muli %arg0, %c1_i32 : i32
    %c0_i32 = arith.constant 0 : i32
    %c0_i32_0 = arith.constant 0 : i32
    %c0_i32_1 = arith.constant 0 : i32
    %c0_i32_2 = arith.constant 0 : i32
    return %0, %c0_i32, %c0_i32_0, %c0_i32_1 : i32, i32, i32, i32
  }
  func.func @transform_3(%arg0: i32) -> (i32, i32, i32) {
    %c0_i32 = arith.constant 0 : i32
    %c0_i32_0 = arith.constant 0 : i32
    %c0_i32_1 = arith.constant 0 : i32
    return %arg0, %c0_i32, %c0_i32_0 : i32, i32, i32
  }
}

module attributes {stable_mosaic.version = 11 : i64} {
  func.func @_layernorm_kernel(%arg0: i32, %arg1: memref<8x32xf32, #tpu.memory_space<vmem>>, %arg2: memref<1x32xf32, #tpu.memory_space<vmem>>, %arg3: memref<1x32xf32, #tpu.memory_space<vmem>>, %arg4: memref<8x32xf32, #tpu.memory_space<vmem>>) attributes {dimension_semantics = [#tpu.dimension_semantics<parallel>], iteration_bounds = array<i64: 2>, scalar_prefetch = 0 : i64, scratch_operands = 0 : i64, tpu.core_type = #tpu.core_type<tc>, window_params = [{transform_indices = @transform_0, window_bounds = array<i64: 8, 32>}, {pipeline_mode = #tpu.pipeline_mode<synchronous>, transform_indices = @transform_1, window_bounds = array<i64: 1, 32>}, {pipeline_mode = #tpu.pipeline_mode<synchronous>, transform_indices = @transform_2, window_bounds = array<i64: 1, 32>}, {transform_indices = @transform_3, window_bounds = array<i64: 8, 32>}]} {
    %c0 = arith.constant 0 : index
    %c0_0 = arith.constant 0 : index
    %0 = vector.load %arg1[%c0, %c0_0] : memref<8x32xf32, #tpu.memory_space<vmem>>, vector<8x32xf32>
    %c0_1 = arith.constant 0 : index
    %c0_2 = arith.constant 0 : index
    %1 = vector.load %arg2[%c0_1, %c0_2] : memref<1x32xf32, #tpu.memory_space<vmem>>, vector<1x32xf32>
    %c0_3 = arith.constant 0 : index
    %c0_4 = arith.constant 0 : index
    %2 = vector.load %arg3[%c0_3, %c0_4] : memref<1x32xf32, #tpu.memory_space<vmem>>, vector<1x32xf32>
    %cst = arith.constant dense<0.000000e+00> : vector<8xf32>
    %3 = vector.multi_reduction <add>, %0, %cst [1] : vector<8x32xf32> to vector<8xf32>
    %4 = vector.shape_cast %3 : vector<8xf32> to vector<8x1xf32>
    %cst_5 = arith.constant 3.200000e+01 : f32
    %5 = vector.broadcast %cst_5 : f32 to vector<8x1xf32>
    %6 = arith.divf %4, %5 : vector<8x1xf32>
    %7 = vector.broadcast %6 : vector<8x1xf32> to vector<8x32xf32>
    %8 = arith.subf %0, %7 : vector<8x32xf32>
    %9 = arith.mulf %8, %8 : vector<8x32xf32>
    %cst_6 = arith.constant dense<0.000000e+00> : vector<8xf32>
    %10 = vector.multi_reduction <add>, %9, %cst_6 [1] : vector<8x32xf32> to vector<8xf32>
    %11 = vector.shape_cast %10 : vector<8xf32> to vector<8x1xf32>
    %cst_7 = arith.constant 3.200000e+01 : f32
    %12 = vector.broadcast %cst_7 : f32 to vector<8x1xf32>
    %13 = arith.divf %11, %12 : vector<8x1xf32>
    %14 = vector.broadcast %6 : vector<8x1xf32> to vector<8x32xf32>
    %15 = arith.subf %0, %14 : vector<8x32xf32>
    %cst_8 = arith.constant 9.99999974E-6 : f32
    %16 = vector.broadcast %cst_8 : f32 to vector<8x1xf32>
    %17 = arith.addf %13, %16 : vector<8x1xf32>
    %18 = math.rsqrt %17 : vector<8x1xf32>
    %19 = vector.broadcast %18 : vector<8x1xf32> to vector<8x32xf32>
    %20 = arith.mulf %15, %19 : vector<8x32xf32>
    %21 = vector.broadcast %1 : vector<1x32xf32> to vector<8x32xf32>
    %22 = arith.mulf %20, %21 : vector<8x32xf32>
    %23 = vector.broadcast %2 : vector<1x32xf32> to vector<8x32xf32>
    %24 = arith.addf %22, %23 : vector<8x32xf32>
    %c0_9 = arith.constant 0 : index
    %c0_10 = arith.constant 0 : index
    %25 = vector.load %arg4[%c0_9, %c0_10] : memref<8x32xf32, #tpu.memory_space<vmem>>, vector<8x32xf32>
    tpu.vector_store %arg4[%c0_9, %c0_10], %24 {strides = array<i32>} : memref<8x32xf32, #tpu.memory_space<vmem>>, vector<8x32xf32>,
    return
  }
  func.func @transform_0(%arg0: i32) -> (i32, i32) {
    %c0_i32 = arith.constant 0 : i32
    %c0_i32_0 = arith.constant 0 : i32
    return %arg0, %c0_i32 : i32, i32
  }
  func.func @transform_1(%arg0: i32) -> (i32, i32) {
    %c0_i32 = arith.constant 0 : i32
    %c0_i32_0 = arith.constant 0 : i32
    %c0_i32_1 = arith.constant 0 : i32
    return %c0_i32, %c0_i32_0 : i32, i32
  }
  func.func @transform_2(%arg0: i32) -> (i32, i32) {
    %c0_i32 = arith.constant 0 : i32
    %c0_i32_0 = arith.constant 0 : i32
    %c0_i32_1 = arith.constant 0 : i32
    return %c0_i32, %c0_i32_0 : i32, i32
  }
  func.func @transform_3(%arg0: i32) -> (i32, i32) {
    %c0_i32 = arith.constant 0 : i32
    %c0_i32_0 = arith.constant 0 : i32
    return %arg0, %c0_i32 : i32, i32
  }
}

module attributes {stable_mosaic.version = 11 : i64} {
  func.func @_linear_kernel(%arg0: i32, %arg1: memref<8x32xf32, #tpu.memory_space<vmem>>, %arg2: memref<32x64xbf16, #tpu.memory_space<vmem>>, %arg3: memref<1x64xf32, #tpu.memory_space<vmem>>, %arg4: memref<8x64xbf16, #tpu.memory_space<vmem>>) attributes {dimension_semantics = [#tpu.dimension_semantics<parallel>], iteration_bounds = array<i64: 2>, scalar_prefetch = 0 : i64, scratch_operands = 0 : i64, tpu.core_type = #tpu.core_type<tc>, window_params = [{transform_indices = @transform_0, window_bounds = array<i64: 8, 32>}, {pipeline_mode = #tpu.pipeline_mode<synchronous>, transform_indices = @transform_1, window_bounds = array<i64: 32, 64>}, {pipeline_mode = #tpu.pipeline_mode<synchronous>, transform_indices = @transform_2, window_bounds = array<i64: 1, 64>}, {transform_indices = @transform_3, window_bounds = array<i64: 8, 64>}]} {
    %c0 = arith.constant 0 : index
    %c0_0 = arith.constant 0 : index
    %0 = vector.load %arg1[%c0, %c0_0] : memref<8x32xf32, #tpu.memory_space<vmem>>, vector<8x32xf32>
    %1 = arith.truncf %0 : vector<8x32xf32> to vector<8x32xbf16>
    %c0_1 = arith.constant 0 : index
    %c0_2 = arith.constant 0 : index
    %2 = vector.load %arg2[%c0_1, %c0_2] : memref<32x64xbf16, #tpu.memory_space<vmem>>, vector<32x64xbf16>
    %cst = arith.constant dense<0.000000e+00> : vector<8x64xf32>
    %3 = tpu.matmul %1, %2, %cst {dimension_numbers = #tpu.dot_dimension_numbers<[1], [0], [0], [1], [0, 0, 1, 1], [], []>} : vector<8x32xbf16>, vector<32x64xbf16>, vector<8x64xf32> -> vector<8x64xf32>
    %c0_3 = arith.constant 0 : index
    %c0_4 = arith.constant 0 : index
    %4 = vector.load %arg3[%c0_3, %c0_4] : memref<1x64xf32, #tpu.memory_space<vmem>>, vector<1x64xf32>
    %5 = vector.broadcast %4 : vector<1x64xf32> to vector<8x64xf32>
    %6 = arith.addf %3, %5 : vector<8x64xf32>
    %7 = arith.truncf %6 : vector<8x64xf32> to vector<8x64xbf16>
    %c0_5 = arith.constant 0 : index
    %c0_6 = arith.constant 0 : index
    %8 = vector.load %arg4[%c0_5, %c0_6] : memref<8x64xbf16, #tpu.memory_space<vmem>>, vector<8x64xbf16>
    tpu.vector_store %arg4[%c0_5, %c0_6], %7 {strides = array<i32>} : memref<8x64xbf16, #tpu.memory_space<vmem>>, vector<8x64xbf16>,
    return
  }
  func.func @transform_0(%arg0: i32) -> (i32, i32) {
    %c0_i32 = arith.constant 0 : i32
    %c0_i32_0 = arith.constant 0 : i32
    return %arg0, %c0_i32 : i32, i32
  }
  func.func @transform_1(%arg0: i32) -> (i32, i32) {
    %c0_i32 = arith.constant 0 : i32
    %c0_i32_0 = arith.constant 0 : i32
    %c0_i32_1 = arith.constant 0 : i32
    return %c0_i32, %c0_i32_0 : i32, i32
  }
  func.func @transform_2(%arg0: i32) -> (i32, i32) {
    %c0_i32 = arith.constant 0 : i32
    %c0_i32_0 = arith.constant 0 : i32
    %c0_i32_1 = arith.constant 0 : i32
    return %c0_i32, %c0_i32_0 : i32, i32
  }
  func.func @transform_3(%arg0: i32) -> (i32, i32) {
    %c0_i32 = arith.constant 0 : i32
    %c0_i32_0 = arith.constant 0 : i32
    return %arg0, %c0_i32 : i32, i32
  }
}

module attributes {stable_mosaic.version = 11 : i64} {
  func.func @_ln_ffn_residual_kernel(%arg0: i32, %arg1: i32, %arg2: memref<8x32xf32, #tpu.memory_space<vmem>>, %arg3: memref<1x32xf32, #tpu.memory_space<vmem>>, %arg4: memref<1x32xf32, #tpu.memory_space<vmem>>, %arg5: memref<32x64xbf16, #tpu.memory_space<vmem>>, %arg6: memref<1x64xf32, #tpu.memory_space<vmem>>, %arg7: memref<64x32xbf16, #tpu.memory_space<vmem>>, %arg8: memref<1x32xf32, #tpu.memory_space<vmem>>, %arg9: memref<8x32xf32, #tpu.memory_space<vmem>>, %arg10: memref<8x32xbf16, #tpu.memory_space<vmem>>, %arg11: memref<8x32xf32, #tpu.memory_space<vmem>>) attributes {dimension_semantics = [#tpu.dimension_semantics<parallel>, #tpu.dimension_semantics<arbitrary>], iteration_bounds = array<i64: 2, 1>, scalar_prefetch = 0 : i64, scratch_operands = 2 : i64, tpu.core_type = #tpu.core_type<tc>, window_params = [{transform_indices = @transform_0, window_bounds = array<i64: 8, 32>}, {pipeline_mode = #tpu.pipeline_mode<synchronous>, transform_indices = @transform_1, window_bounds = array<i64: 1, 32>}, {pipeline_mode = #tpu.pipeline_mode<synchronous>, transform_indices = @transform_2, window_bounds = array<i64: 1, 32>}, {transform_indices = @transform_3, window_bounds = array<i64: 32, 64>}, {transform_indices = @transform_4, window_bounds = array<i64: 1, 64>}, {transform_indices = @transform_5, window_bounds = array<i64: 64, 32>}, {pipeline_mode = #tpu.pipeline_mode<synchronous>, transform_indices = @transform_6, window_bounds = array<i64: 1, 32>}, {transform_indices = @transform_7, window_bounds = array<i64: 8, 32>}]} {
    %c0_i32 = arith.constant 0 : i32
    %0 = arith.cmpi eq, %arg1, %c0_i32 : i32
    %1 = arith.extui %0 : i1 to i32
    %c0_i32_0 = arith.constant 0 : i32
    %2 = arith.cmpi ne, %1, %c0_i32_0 : i32
    scf.if %2 {
      %c0_16 = arith.constant 0 : index
      %c0_17 = arith.constant 0 : index
      %20 = vector.load %arg2[%c0_16, %c0_17] : memref<8x32xf32, #tpu.memory_space<vmem>>, vector<8x32xf32>
      %c0_18 = arith.constant 0 : index
      %c0_19 = arith.constant 0 : index
      %21 = vector.load %arg3[%c0_18, %c0_19] : memref<1x32xf32, #tpu.memory_space<vmem>>, vector<1x32xf32>
      %c0_20 = arith.constant 0 : index
      %c0_21 = arith.constant 0 : index
      %22 = vector.load %arg4[%c0_20, %c0_21] : memref<1x32xf32, #tpu.memory_space<vmem>>, vector<1x32xf32>
      %cst_22 = arith.constant dense<0.000000e+00> : vector<8xf32>
      %23 = vector.multi_reduction <add>, %20, %cst_22 [1] : vector<8x32xf32> to vector<8xf32>
      %24 = vector.shape_cast %23 : vector<8xf32> to vector<8x1xf32>
      %cst_23 = arith.constant 3.200000e+01 : f32
      %25 = vector.broadcast %cst_23 : f32 to vector<8x1xf32>
      %26 = arith.divf %24, %25 : vector<8x1xf32>
      %27 = vector.broadcast %26 : vector<8x1xf32> to vector<8x32xf32>
      %28 = arith.subf %20, %27 : vector<8x32xf32>
      %29 = arith.mulf %28, %28 : vector<8x32xf32>
      %cst_24 = arith.constant dense<0.000000e+00> : vector<8xf32>
      %30 = vector.multi_reduction <add>, %29, %cst_24 [1] : vector<8x32xf32> to vector<8xf32>
      %31 = vector.shape_cast %30 : vector<8xf32> to vector<8x1xf32>
      %cst_25 = arith.constant 3.200000e+01 : f32
      %32 = vector.broadcast %cst_25 : f32 to vector<8x1xf32>
      %33 = arith.divf %31, %32 : vector<8x1xf32>
      %34 = vector.broadcast %26 : vector<8x1xf32> to vector<8x32xf32>
      %35 = arith.subf %20, %34 : vector<8x32xf32>
      %cst_26 = arith.constant 9.99999974E-6 : f32
      %36 = vector.broadcast %cst_26 : f32 to vector<8x1xf32>
      %37 = arith.addf %33, %36 : vector<8x1xf32>
      %38 = math.rsqrt %37 : vector<8x1xf32>
      %39 = vector.broadcast %38 : vector<8x1xf32> to vector<8x32xf32>
      %40 = arith.mulf %35, %39 : vector<8x32xf32>
      %41 = vector.broadcast %21 : vector<1x32xf32> to vector<8x32xf32>
      %42 = arith.mulf %40, %41 : vector<8x32xf32>
      %43 = vector.broadcast %22 : vector<1x32xf32> to vector<8x32xf32>
      %44 = arith.addf %42, %43 : vector<8x32xf32>
      %45 = arith.truncf %44 : vector<8x32xf32> to vector<8x32xbf16>
      %c0_27 = arith.constant 0 : index
      %c0_28 = arith.constant 0 : index
      %46 = vector.load %arg10[%c0_27, %c0_28] : memref<8x32xbf16, #tpu.memory_space<vmem>>, vector<8x32xbf16>
      tpu.vector_store %arg10[%c0_27, %c0_28], %45 {strides = array<i32>} : memref<8x32xbf16, #tpu.memory_space<vmem>>, vector<8x32xbf16>,
      %c0_29 = arith.constant 0 : index
      %c0_30 = arith.constant 0 : index
      %47 = vector.load %arg8[%c0_29, %c0_30] : memref<1x32xf32, #tpu.memory_space<vmem>>, vector<1x32xf32>
      %48 = vector.broadcast %47 : vector<1x32xf32> to vector<8x32xf32>
      %49 = arith.addf %20, %48 : vector<8x32xf32>
      %c0_31 = arith.constant 0 : index
      %c0_32 = arith.constant 0 : index
      %50 = vector.load %arg11[%c0_31, %c0_32] : memref<8x32xf32, #tpu.memory_space<vmem>>, vector<8x32xf32>
      tpu.vector_store %arg11[%c0_31, %c0_32], %49 {strides = array<i32>} : memref<8x32xf32, #tpu.memory_space<vmem>>, vector<8x32xf32>,
    } else {
    }
    %c0 = arith.constant 0 : index
    %c0_1 = arith.constant 0 : index
    %3 = vector.load %arg10[%c0, %c0_1] : memref<8x32xbf16, #tpu.memory_space<vmem>>, vector<8x32xbf16>
    %c0_2 = arith.constant 0 : index
    %c0_3 = arith.constant 0 : index
    %4 = vector.load %arg5[%c0_2, %c0_3] : memref<32x64xbf16, #tpu.memory_space<vmem>>, vector<32x64xbf16>
    %cst = arith.constant dense<0.000000e+00> : vector<8x64xf32>
    %5 = tpu.matmul %3, %4, %cst {dimension_numbers = #tpu.dot_dimension_numbers<[1], [0], [0], [1], [0, 0, 1, 1], [], []>} : vector<8x32xbf16>, vector<32x64xbf16>, vector<8x64xf32> -> vector<8x64xf32>
    %c0_4 = arith.constant 0 : index
    %c0_5 = arith.constant 0 : index
    %6 = vector.load %arg6[%c0_4, %c0_5] : memref<1x64xf32, #tpu.memory_space<vmem>>, vector<1x64xf32>
    %7 = vector.broadcast %6 : vector<1x64xf32> to vector<8x64xf32>
    %8 = arith.addf %5, %7 : vector<8x64xf32>
    %cst_6 = arith.constant 0.000000e+00 : f32
    %9 = vector.broadcast %cst_6 : f32 to vector<8x64xf32>
    %10 = arith.maximumf %8, %9 : vector<8x64xf32>
    %c0_7 = arith.constant 0 : index
    %c0_8 = arith.constant 0 : index
    %11 = vector.load %arg11[%c0_7, %c0_8] : memref<8x32xf32, #tpu.memory_space<vmem>>, vector<8x32xf32>
    %12 = arith.truncf %10 : vector<8x64xf32> to vector<8x64xbf16>
    %c0_9 = arith.constant 0 : index
    %c0_10 = arith.constant 0 : index
    %13 = vector.load %arg7[%c0_9, %c0_10] : memref<64x32xbf16, #tpu.memory_space<vmem>>, vector<64x32xbf16>
    %cst_11 = arith.constant dense<0.000000e+00> : vector<8x32xf32>
    %14 = tpu.matmul %12, %13, %cst_11 {dimension_numbers = #tpu.dot_dimension_numbers<[1], [0], [0], [1], [0, 0, 1, 1], [], []>} : vector<8x64xbf16>, vector<64x32xbf16>, vector<8x32xf32> -> vector<8x32xf32>
    %15 = arith.addf %11, %14 : vector<8x32xf32>
    %c0_12 = arith.constant 0 : index
    %c0_13 = arith.constant 0 : index
    %16 = vector.load %arg11[%c0_12, %c0_13] : memref<8x32xf32, #tpu.memory_space<vmem>>, vector<8x32xf32>
    tpu.vector_store %arg11[%c0_12, %c0_13], %15 {strides = array<i32>} : memref<8x32xf32, #tpu.memory_space<vmem>>, vector<8x32xf32>,
    %c0_i32_14 = arith.constant 0 : i32
    %17 = arith.cmpi eq, %arg1, %c0_i32_14 : i32
    %18 = arith.extui %17 : i1 to i32
    %c0_i32_15 = arith.constant 0 : i32
    %19 = arith.cmpi ne, %18, %c0_i32_15 : i32
    scf.if %19 {
      %c0_16 = arith.constant 0 : index
      %c0_17 = arith.constant 0 : index
      %20 = vector.load %arg11[%c0_16, %c0_17] : memref<8x32xf32, #tpu.memory_space<vmem>>, vector<8x32xf32>
      %c0_18 = arith.constant 0 : index
      %c0_19 = arith.constant 0 : index
      %21 = vector.load %arg9[%c0_18, %c0_19] : memref<8x32xf32, #tpu.memory_space<vmem>>, vector<8x32xf32>
      tpu.vector_store %arg9[%c0_18, %c0_19], %20 {strides = array<i32>} : memref<8x32xf32, #tpu.memory_space<vmem>>, vector<8x32xf32>,
    } else {
    }
    return
  }
  func.func @transform_0(%arg0: i32, %arg1: i32) -> (i32, i32) {
    %c0_i32 = arith.constant 0 : i32
    %c0_i32_0 = arith.constant 0 : i32
    return %arg0, %c0_i32 : i32, i32
  }
  func.func @transform_1(%arg0: i32, %arg1: i32) -> (i32, i32) {
    %c0_i32 = arith.constant 0 : i32
    %c0_i32_0 = arith.constant 0 : i32
    %c0_i32_1 = arith.constant 0 : i32
    return %c0_i32, %c0_i32_0 : i32, i32
  }
  func.func @transform_2(%arg0: i32, %arg1: i32) -> (i32, i32) {
    %c0_i32 = arith.constant 0 : i32
    %c0_i32_0 = arith.constant 0 : i32
    %c0_i32_1 = arith.constant 0 : i32
    return %c0_i32, %c0_i32_0 : i32, i32
  }
  func.func @transform_3(%arg0: i32, %arg1: i32) -> (i32, i32) {
    %c0_i32 = arith.constant 0 : i32
    %c0_i32_0 = arith.constant 0 : i32
    return %c0_i32, %arg1 : i32, i32
  }
  func.func @transform_4(%arg0: i32, %arg1: i32) -> (i32, i32) {
    %c0_i32 = arith.constant 0 : i32
    %c0_i32_0 = arith.constant 0 : i32
    return %c0_i32, %arg1 : i32, i32
  }
  func.func @transform_5(%arg0: i32, %arg1: i32) -> (i32, i32) {
    %c0_i32 = arith.constant 0 : i32
    %c0_i32_0 = arith.constant 0 : i32
    return %arg1, %c0_i32 : i32, i32
  }
  func.func @transform_6(%arg0: i32, %arg1: i32) -> (i32, i32) {
    %c0_i32 = arith.constant 0 : i32
    %c0_i32_0 = arith.constant 0 : i32
    %c0_i32_1 = arith.constant 0 : i32
    return %c0_i32, %c0_i32_0 : i32, i32
  }
  func.func @transform_7(%arg0: i32, %arg1: i32) -> (i32, i32) {
    %c0_i32 = arith.constant 0 : i32
    %c0_i32_0 = arith.constant 0 : i32
    return %arg0, %c0_i32 : i32, i32
  }
}

</mosaic_0001>

<bundles_post_ra>
// kernel: decoder_forward.17
= control target key start
LH: loop header
LB: loop body
LE: loop exit
PB: predicated region body
PF: predicated region fallthrough
CT: control target
= control target key end

     0   :  { %10 = vsyncpa [#allocation3], 0  ;;  %s1193_s0 = inlined_call_operand.hbm [shape: f32[16,32], index: 0, kind: input, shape index: {}]   ;;  %s1194_s1 = inlined_call_operand.hbm [shape: f32[1,32], index: 1, kind: input, shape index: {}]   ;;  %s1195_s2 = inlined_call_operand.hbm [shape: f32[1,32], index: 2, kind: input, shape index: {}]   ;;  %s1196_s3 = inlined_call_operand.hbm [shape: bf16[32,96], index: 3, kind: input, shape index: {}]   ;;  %s1197_s4 = inlined_call_operand.hbm [shape: f32[1,96], index: 4, kind: input, shape index: {}]   ;;  %s1198_s5 = inlined_call_operand.hbm [shape: bf16[16,96], index: 5, kind: output, shape index: {}]  }
   0x1   :  { %12 = vsyncpa [#allocation3 + $0x1], 0 }
   0x2   :  { %13 = vsyncpa [#allocation6], 0 }
   0x3   :  { %14 = vsyncpa [#allocation9], 0 }
   0x4   :  { %15 = vsyncpa [#allocation4], 0 }
   0x5   :  { %17 = vsyncpa [#allocation4 + $0x1], 0  ;;  %s907_s18 = smov 0   ;;  %s909_s19 = smov 0  }
   0x6   :  { %s911_s20 = smov 0   ;;  %s913_s21 = smov 0  }
   0x7 LB: > { %s867_s22 = smov [#allocation5]   ;;  %s928_s24 = sadd.s32 4294967295, %s865_s21   ;;  %s865_s21 = sphi %s913_s21, %s1222_s21   ;;  %s861_s20 = sphi %s911_s20, %s1221_s20   ;;  %s857_s19 = sphi %s909_s19, %s1220_s19   ;;  %s853_s18 = sphi %s907_s18, %s1219_s18  }
   0x8   : > { %s177_s23 = sshll.u32 %s867_s22, 4  ;;  %p518_p0 = scmp.ge.s32.totalorder %s865_s21, 1  ;;  %s933_s23 = int_to_ptr.vmem [resolvable:$true] %s177_s23 }
   0x9   : > { %p1199_p1 = scmp.eq.s32.totalorder %s928_s24, 0  ;;  %p164_p2 = scmp.lt.s32.totalorder %s865_s21, 3 }
   0xa   : > { %s868_s26 = smov [#allocation8]   ;;  %s869_s29 = smov [#allocation7]  }
   0xb   : > { %p935_p3 = pnand %p518_p0, %p164_p2  ;;  %s198_s27 = sshll.u32 %s868_s26, 4  ;;  %s942_s27 = int_to_ptr.vmem [resolvable:$true] %s198_s27 }
   0xc   : > { %s188_s30 = sshll.u32 %s869_s29, 4  ;;  %s649_s8 = scalar_lea.hbm %s1194_s1, 16  ;;  %s950_s30 = int_to_ptr.vmem [resolvable:$true] %s188_s30 }
   0xd   : > { %s1202_s25 = scalar_select %p935_p3, 1, 0 }
   0xe   : > { %p574_p5 = pneg %p935_p3  ;;  %p650_p7 = scmp.ne.s32.totalorder %s1194_s1, %s649_s8 }
   0xf   : > { %p656_p11 = scmp.lt.u32.totalorder %s649_s8, %s1194_s1 }
  0x10   : > { %p946_p6 = pnand %p574_p5, %p1199_p1 }
  0x12   : > { %p960_p8 = pneg %p946_p6 }
  0x14   : > { %p652_p9 = pnand %p960_p8, %p650_p7 }
  0x16   : > { %p653_p10 = pneg %p652_p9 }
  0x18   : > { %p658_p12 = pnand %p656_p11, %p653_p10 }
  0x1a   : > { %661 = shalt.err (!%p658_p12)
}
  0x1b   : > { %s662_s14 = scalar_lea.vmem %s933_s23, 16  ;;  %s669_s15 = scalar_lea.vmem %s933_s23, 32 }
  0x1c   : > { %p663_p13 = scmp.ne.s32.totalorder %s933_s23, %s662_s14  ;;  %p670_p5 = scmp.lt.s32.totalorder %s933_s23, %s933_s23 }
  0x1d   : > { %p671_p7 = scmp.lt.s32.totalorder %s669_s15, %s662_s14 }
  0x1e   : > { %p665_p0 = pnand %p663_p13, %p960_p8 }
  0x1f   : > { %p672_p9 = por %p671_p7, %p670_p5 }
  0x20   : > { %p666_p2 = pneg %p665_p0 }
  0x22   : > { %p673_p4 = pnand %p672_p9, %p666_p2 }
  0x24   : > { %676 = shalt.err (!%p673_p4)
}
  0x25   : > { %577 = dma.hbm_to_vmem [thread:$0]  (!%p946_p6), %s1194_s1, 16, %s933_s23, [#allocation6]  }
  0x26   : > { %s677_s29 = scalar_lea.hbm %s1196_s3, 256 }
  0x27   : > { %p678_p10 = scmp.ne.s32.totalorder %s1196_s3, %s677_s29  ;;  %p684_p4 = scmp.lt.u32.totalorder %s677_s29, %s1196_s3 }
  0x29   : > { %p680_p11 = pnand %p678_p10, %p960_p8 }
  0x2b   : > { %p681_p12 = pneg %p680_p11 }
  0x2d   : > { %p686_p13 = pnand %p684_p4, %p681_p12 }
  0x2f   : > { %689 = shalt.err (!%p686_p13)
}
  0x30   : > { %s690_s23 = scalar_lea.vmem %s942_s27, 256  ;;  %p698_p7 = scmp.lt.s32.totalorder %s942_s27, %s942_s27 }
  0x31   : > { %p691_p0 = scmp.ne.s32.totalorder %s942_s27, %s690_s23  ;;  %p699_p9 = scmp.lt.s32.totalorder %s690_s23, %s690_s23 }
  0x33   : > { %p693_p2 = pnand %p691_p0, %p960_p8  ;;  %p700_p10 = por %p699_p9, %p698_p7 }
  0x35   : > { %p694_p5 = pneg %p693_p2 }
  0x37   : > { %p701_p11 = pnand %p700_p10, %p694_p5 }
  0x39   : > { %704 = shalt.err (!%p701_p11)
}
  0x3a   : > { %s870_s10 = smov 64   ;;  %s871_s12 = smov 4  }
  0x3b   : > { %583 = dma.hbm_to_vmem [thread:$0]  (!%p946_p6), %s1196_s3, 256, %s942_s27, [#allocation9], %s870_s10, %s870_s10, %s871_s12  }
  0x3c   : > { %s705_s17 = scalar_lea.hbm %s1195_s2, 16 }
  0x3d   : > { %p706_p12 = scmp.ne.s32.totalorder %s1195_s2, %s705_s17  ;;  %p712_p0 = scmp.lt.u32.totalorder %s705_s17, %s1195_s2 }
  0x3f   : > { %p708_p4 = pnand %p706_p12, %p960_p8 }
  0x41   : > { %p709_p13 = pneg %p708_p4 }
  0x43   : > { %p714_p2 = pnand %p712_p0, %p709_p13 }
  0x45   : > { %717 = shalt.err (!%p714_p2)
}
  0x46   : > { %s718_s27 = scalar_lea.vmem %s950_s30, 16  ;;  %s725_s7 = scalar_lea.vmem %s950_s30, 32 }
  0x47   : > { %p719_p5 = scmp.ne.s32.totalorder %s950_s30, %s718_s27  ;;  %p726_p10 = scmp.lt.s32.totalorder %s950_s30, %s950_s30 }
  0x48   : > { %p727_p11 = scmp.lt.s32.totalorder %s725_s7, %s718_s27 }
  0x49   : > { %p721_p7 = pnand %p719_p5, %p960_p8 }
  0x4a   : > { %p728_p12 = por %p727_p11, %p726_p10 }
  0x4b   : > { %p722_p9 = pneg %p721_p7 }
  0x4d   : > { %p729_p4 = pnand %p728_p12, %p722_p9 }
  0x4f   : > { %732 = shalt.err (!%p729_p4)
}
  0x50   : > { %580 = dma.hbm_to_vmem [thread:$0]  (!%p946_p6), %s1195_s2, 16, %s950_s30, [#allocation6]  }
  0x51   : > { %s872_s23 = smov [#allocation10]   ;;  %s733_s14 = scalar_lea.hbm %s1197_s4, 16 }
  0x52   : > { %s212_s10 = sshll.u32 %s872_s23, 4  ;;  %p734_p13 = scmp.ne.s32.totalorder %s1197_s4, %s733_s14  ;;  %s213_s10 = int_to_ptr.vmem [resolvable:$true] %s212_s10 }
  0x53   : > { %p740_p5 = scmp.lt.u32.totalorder %s733_s14, %s1197_s4 }
  0x54   : > { %p736_p0 = pnand %p734_p13, %p960_p8 }
  0x56   : > { %p737_p2 = pneg %p736_p0 }
  0x58   : > { %p742_p7 = pnand %p740_p5, %p737_p2 }
  0x5a   : > { %745 = shalt.err (!%p742_p7)
}
  0x5b   : > { %s746_s30 = scalar_lea.vmem %s213_s10, 16  ;;  %s753_s26 = scalar_lea.vmem %s213_s10, 32 }
  0x5c   : > { %p747_p9 = scmp.ne.s32.totalorder %s213_s10, %s746_s30  ;;  %p754_p12 = scmp.lt.s32.totalorder %s213_s10, %s213_s10 }
  0x5d   : > { %p755_p4 = scmp.lt.s32.totalorder %s753_s26, %s746_s30 }
  0x5e   : > { %p749_p10 = pnand %p747_p9, %p960_p8 }
  0x5f   : > { %p756_p1 = por %p755_p4, %p754_p12 }
  0x60   : > { %p750_p11 = pneg %p749_p10 }
  0x62   : > { %p757_p3 = pnand %p756_p1, %p750_p11 }
  0x64   : > { %760 = shalt.err (!%p757_p3)
}
  0x65   : > { %586 = dma.hbm_to_vmem [thread:$0]  (!%p946_p6), %s1197_s4, 16, %s213_s10, [#allocation9]  }
  0x66   : > { %s517_s11 = sadd.s32 4294967294, %s865_s21   ;;  %s1049_s28 = sadd.s32 1, %s865_s21  }
  0x67   : > { %s27_s27 = ssub.s32 %s865_s21, %s1049_s28  ;;  %s30_s7 = sadd.s32 1, %s861_s20 }
  0x68   : > { %p28_p1 = scmp.eq.s32.totalorder %s27_s27, 0  ;;  %p37_p3 = scmp.ne.s32.totalorder %s861_s20, %s857_s19 }
  0x69   : > { %p38_p8 = scmp.eq.s32.totalorder %s865_s21, 0  ;;  %p43_p13 = scmp.ne.s32.totalorder %s857_s19, %s853_s18 }
  0x6a   : > { %s1060_s8 = scalar_select %p28_p1, %s861_s20, %s30_s7  }
  0x6b   : > { %p1062_p0 = por %p38_p8, %p37_p3  ;;  %p1206_p2 = scmp.eq.s32.totalorder %s928_s24, 0 }
  0x6c   : > { %p151_p5 = scmp.eq.s32.totalorder %s928_s24, 1  ;;  %p157_p7 = scmp.eq.s32.totalorder %s517_s11, 1 }
  0x6d   : > { %p1068_p6 = por %p1206_p2, %p43_p13  ;;  %p599_p9 = scmp.lt.s32.totalorder %s865_s21, 2 }
  0x6e   : > { %s223_s10 = sand.u32 1, %s861_s20   ;;  %p1075_p10 = por %p151_p5, %p37_p3 }
  0x6f   : > { %p1079_p11 = por %p157_p7, %p43_p13  ;;  %s524_s14 = sshll.u32 %s223_s10, 3 }
  0x70   : > { %s1208_s12 = scalar_select %p1075_p10, 1, 0 }
  0x71   : > { %s1209_s13 = scalar_select %p1079_p11, 1, 0 }
  0x72   : > { %s525_s15 = sshll.u32 %s865_s21, 7  ;;  %s227_s30 = scalar_lea.vmem [#allocation2], %s524_s14 }
  0x73   : > { %s1087_s22 = scalar_lea.hbm %s1193_s0, %s525_s15  ;;  %s234_s26 = sshll.u32 %s227_s30, 4  ;;  %s1089_s26 = int_to_ptr.vmem [resolvable:$true] %s234_s26 }
  0x74   : > { %p1093_p12 = pnand %p599_p9, %p1062_p0  ;;  %s224_s6 = scalar_lea.sflag [#allocation3], %s223_s10 }
  0x75   : > { %s761_s11 = scalar_lea.hbm %s1087_s22, 128  ;;  %s766_s14 = scalar_lea.hbm %s1193_s0, 256 }
  0x76   : > { %p762_p4 = scmp.ne.s32.totalorder %s1087_s22, %s761_s11  ;;  %p763_p1 = pneg %p1093_p12 }
  0x77   : > { %p767_p13 = scmp.lt.u32.totalorder %s1087_s22, %s1193_s0  ;;  %p768_p0 = scmp.lt.u32.totalorder %s766_s14, %s761_s11 }
  0x78   : > { %p764_p3 = pnand %p763_p1, %p762_p4  ;;  %p770_p5 = scmp.lt.u32.totalorder %s761_s11, %s1087_s22 }
  0x79   : > { %p769_p2 = por %p768_p0, %p767_p13 }
  0x7a   : > { %p765_p8 = pneg %p764_p3 }
  0x7b   : > { %p771_p7 = por %p770_p5, %p769_p2 }
  0x7d   : > { %p772_p9 = pnand %p771_p7, %p765_p8 }
  0x7f   : > { %775 = shalt.err (!%p772_p9)
}
  0x80   : > { %s776_s10 = scalar_lea.vmem %s1089_s26, 128  ;;  %s873_s16 = smov [#allocation2]  }
  0x81   : > { %p777_p4 = scmp.ne.s32.totalorder %s1089_s26, %s776_s10  ;;  %s781_s17 = sshll.u32 %s873_s16, 4  ;;  %s782_s17 = int_to_ptr.vmem [resolvable:$false] %s781_s17 }
  0x82   : > { %s783_s30 = scalar_lea.vmem %s782_s17, 256  ;;  %p784_p10 = scmp.lt.s32.totalorder %s1089_s26, %s782_s17 }
  0x83   : > { %p779_p3 = pnand %p777_p4, %p763_p1  ;;  %p785_p13 = scmp.lt.s32.totalorder %s783_s30, %s776_s10 }
  0x85   : > { %p780_p11 = pneg %p779_p3  ;;  %p786_p0 = por %p785_p13, %p784_p10 }
  0x87   : > { %p787_p2 = pnand %p786_p0, %p780_p11 }
  0x89   : > { %790 = shalt.err (!%p787_p2)
}
  0x8a   : > { %590 = dma.hbm_to_vmem [thread:$0]  (!%p1093_p12), %s1087_s22, 128, %s1089_s26, %s224_s6  }
  0x8b   : > { %p1211_p8 = scmp.ne.s32.totalorder %s1202_s25, 0 }
  0x8c   : > { %s1125_s11 = sand.u32 (!%p1211_p8), 1, %s857_s19  }
  0x8d   : > { %243 = sbr.rel (%p1211_p8) target bundleno = 701 (0x2bd), region = 40  ;;  %s527_s27 = sshll.u32 (!%p1211_p8), %s1125_s11, 3 }
  0x8e   : > { %s246_s7 = scalar_lea.sflag (!%p1211_p8), [#allocation3], %s1125_s11  ;;  %s249_s14 = scalar_lea.vmem (!%p1211_p8), [#allocation2], %s527_s27 }
  0x94   : > { %836 = dma.done.wait (%p1068_p6), %s246_s7, 128  }
  0x95   : > { %838 = vsyncadd (%p1068_p6), %s246_s7, 4294967168  ;;  %p1212_p10 = scmp.eq.s32.totalorder %s928_s24, 0 }
  0x97   : > { %840 = dma.done.wait (%p1212_p10), [#allocation6], 32   ;;  %p1213_p11 = pmov %p1212_p10 }
  0x98   : > { %p1214_p12 = pmov %p1212_p10 }
  0x99   : > { %842 = vsyncadd (%p1213_p11), [#allocation6], 4294967264 }
  0x9a   : > { %844 = dma.done.wait (%p1214_p12), [#allocation9], 272   ;;  %p1215_p1 = pmov %p1212_p10 }
  0x9b   : > { %vm296_vm0 = vcmask 261120   ;;  %v293_v0 = vld [vmem:[%s249_s14] sm:$0xff]  ;;  %v645_v7 = vld [vmem:[#allocation8] sm:$0xff]   ;;  %v874_v8 = vmov 0.0   ;;  %vm875_vm1 = vmmov 0   ;;  %s532_s25 = sshll.u32 %s1125_s11, 2 }
  0x9c   : > { %846 = vsyncadd (%p1215_p1), [#allocation9], 4294967024  ;;  %v297_v1 = vsel %vm296_vm0, %v293_v0, 0.0  ;;  %546 = vmatprep.subr.bf16.mxu0 %v874_v8  ;;  %v646_v9 = vld [vmem:[#allocation8 + $0x8] sm:$0xff]   ;;  %550 = vmatprep.mubr.msk.bf16.mxu0 %vm875_vm1, %v874_v8  ;;  %v533_v14 = vld [vmem:[#allocation5] ss:$0 sm:$0xff] }
  0x9d   : > { %298 = vadd.xlane.f32.xlu0 %v297_v1  ;;  %547 = vmatpush3.bf16.msra.mxu0 %v645_v7  ;;  %v534_v16 = vld [vmem:[#allocation7] ss:$0 sm:$0xff]  ;;  %v535_v20 = vld [vmem:[#allocation10] ss:$0 sm:$0xff]  ;;  %s540_s23 = sshll.u32 %s928_s24, 6  ;;  %s291_s22 = scalar_lea.vmem [#allocation11], %s532_s25 }
  0x9e   : > { %548 = vmatprep.subr.bf16.mxu0 %v874_v8  ;;  %s409_s26 = sshll.u32 %s291_s22, 4  ;;  %vm393_vm2 = vcmask 781312   ;;  %s1149_s9 = scalar_lea.hbm %s1198_s5, %s540_s23  ;;  %s1151_s26 = int_to_ptr.vmem [resolvable:$true] %s409_s26 }
  0x9f   : > { %s396_s24 = scalar_lea.sflag [#allocation4], %s1125_s11  ;;  %s791_s15 = scalar_lea.vmem %s1151_s26, 64 }
  0xa0   : > { %p792_p6 = scmp.ne.s32.totalorder %s1151_s26, %s791_s15  ;;  %p1216_p5 = scmp.ne.s32.totalorder %s1208_s12, 0 }
  0xa1   : > { %549 = vmatpush3.bf16.msra.mxu0 %v646_v9  ;;  %s876_s10 = smov [#allocation11]  }
  0xa2   : > { %p793_p7 = pnand %p792_p6, %p1216_p5  ;;  %s795_s16 = sshll.u32 %s876_s10, 4  ;;  %s796_s16 = int_to_ptr.vmem [resolvable:$false] %s795_s16 }
  0xa3   : > { %s797_s17 = scalar_lea.vmem %s796_s16, 128  ;;  %p798_p4 = scmp.lt.s32.totalorder %s1151_s26, %s796_s16 }
  0xa4   : > { %p794_p9 = pneg %p793_p7  ;;  %p799_p3 = scmp.lt.s32.totalorder %s797_s17, %s791_s15 }
  0xa6   : > { %p800_p13 = por %p799_p3, %p798_p4 }
  0xa8   : > { %p801_p0 = pnand %p800_p13, %p794_p9 }
 0x12a   : > { %v299_v2 = vpop.xlane.xlu0 %298 }
 0x12b   : > { %v301_v3 = vmul.f32 0.03125, %v299_v2 }
 0x12d   : > { %v302_v4 = vsub.f32 %v293_v0, %v301_v3 }
 0x12f   : > { %v303_v5 = vmul.f32 %v302_v4, %v302_v4 }
 0x131   : > { %v304_v6 = vsel %vm296_vm0, %v303_v5, 0.0 }
 0x132   : > { %305 = vadd.xlane.f32.xlu0 %v304_v6 }
 0x1bf   : > { %v306_v10 = vpop.xlane.xlu0 %305 }
 0x1c0   : > { %v307_v11 = vmul.f32 0.03125, %v306_v10 }
 0x1c2   : > { %v308_v12 = vadd.f32 1e-05, %v307_v11 }
 0x1c4   : > { %647 = vrsqrt.f32 %v308_v12 }
 0x1ce   : > { %v648_v13 = vpop.eup %647 }
 0x1cf   : > { %v310_v15 = vmul.f32 %v648_v13, %v302_v4 }
 0x1d1   : > { %v317_v17 = vmul.f32 %v533_v14, %v310_v15 }
 0x1d3   : > { %v324_v18 = vadd.f32 %v534_v16, %v317_v17 }
 0x1d5   : > { %v325_v19 = vpack.c.bf16 %v324_v18, %v324_v18 }
 0x1d7   : > { %551 = vmatmul.mubr.msk.bf16.vlgmr.msra.gmra.mrb[0].mxu0 %vm296_vm0, %v325_v19 }
 0x2aa   : > { %v386_v21 = vpop.f32.mrb[0].mxu0 }
 0x2ab   : > { %v387_v22 = vadd.f32 %v535_v20, %v386_v21  ;;  %v552_v23 = vpop.f32.mrb[1].mxu0 }
 0x2ac   : > { %v389_v24 = vpop.f32.mrb[2].mxu0 }
 0x2ad   : > { %v392_v25 = vpack.c.bf16 %v387_v22, %v387_v22  ;;  %v553_v26 = vpop.f32.mrb[3].mxu0 }
 0x2af   : > { %394 = vst.msk [vmem:[%s291_s22] sm:$0xf] %vm393_vm2, %v392_v25 }
 0x2b0   : > { %804 = shalt.err (!%p801_p0)
}
 0x2b1   : > { %s805_s30 = scalar_lea.hbm %s1149_s9, 64  ;;  %s809_s7 = scalar_lea.hbm %s1198_s5, 128 }
 0x2b2   : > { %p806_p2 = scmp.ne.s32.totalorder %s1149_s9, %s805_s30  ;;  %p810_p11 = scmp.lt.u32.totalorder %s1149_s9, %s1198_s5 }
 0x2b3   : > { %p811_p12 = scmp.lt.u32.totalorder %s809_s7, %s805_s30  ;;  %p813_p6 = scmp.lt.u32.totalorder %s805_s30, %s1149_s9 }
 0x2b4   : > { %p807_p8 = pnand %p806_p2, %p1216_p5 }
 0x2b5   : > { %p812_p1 = por %p811_p12, %p810_p11 }
 0x2b6   : > { %p808_p10 = pneg %p807_p8 }
 0x2b7   : > { %p814_p7 = por %p813_p6, %p812_p1 }
 0x2b9   : > { %p815_p9 = pnand %p814_p7, %p808_p10 }
 0x2bb   : > { %818 = shalt.err (!%p815_p9)
}
 0x2bc   : > { %572 = dma.vmem_to_hbm [thread:$0]  (%p1216_p5), %s1151_s26, 64, %s1149_s9, %s396_s24  }
 0x2bd PF: > { %s421_s23 = sand.u32 1, %s853_s18   ;;  %p1217_p4 = scmp.ne.s32.totalorder %s1209_s13, 0 }
 0x2be   : > { %p1218_p3 = scmp.ge.s32.totalorder %s865_s21, 2  ;;  %s422_s22 = scalar_lea.sflag [#allocation4], %s421_s23 }
 0x2c0   : > { %p592_p13 = pnand %p1218_p3, %p1217_p4 }
 0x2c2   : > { %848 = dma.done.wait (!%p592_p13), %s422_s22, 64  }
 0x2c3   : > { %850 = vsyncadd (!%p592_p13), %s422_s22, 4294967232  ;;  %p20_p0 = scmp.ge.s32.totalorder %s1049_s28, 4   ;;  %s1219_s18 = smov %s857_s19 }
 0x2c4   : > { %s1220_s19 = smov %s861_s20  ;;  %s1221_s20 = smov %s1060_s8 }
 0x2c5   : > { %s1222_s21 = smov %s1049_s28  ;;  %22 = sbr.rel (!%p20_p0) target bundleno = 7 (0x7), region = 101 }
 0x2cc   :  { %427 = vsyncpa [#allocation3], 1 }
 0x2cd   :  { %429 = vsyncpa [#allocation3 + $0x1], 1 }
 0x2ce   :  { %430 = vsyncpa [#allocation6], 1 }
 0x2cf   :  { %431 = vsyncpa [#allocation9], 1 }
 0x2d0   :  { %432 = vsyncpa [#allocation4], 1 }
 0x2d1   :  { %434 = vsyncpa [#allocation4 + $0x1], 1 }

// kernel: decoder_forward.19
= control target key start
LH: loop header
LB: loop body
LE: loop exit
PB: predicated region body
PF: predicated region fallthrough
CT: control target
= control target key end

     0   :  { %9 = vsyncpa [#allocation3], 0  ;;  %s1082_s0 = inlined_call_operand.hbm [shape: bf16[16,32], index: 0, kind: input, shape index: {}]   ;;  %s1083_s1 = inlined_call_operand.hbm [shape: bf16[32,32], index: 1, kind: input, shape index: {}]   ;;  %s1084_s2 = inlined_call_operand.hbm [shape: f32[1,32], index: 2, kind: input, shape index: {}]   ;;  %s1085_s3 = inlined_call_operand.hbm [shape: f32[16,32], index: 3, kind: input, shape index: {}]   ;;  %s1086_s4 = inlined_call_operand.hbm [shape: f32[16,32], index: 4, kind: output, shape index: {}]  }
   0x1   :  { %11 = vsyncpa [#allocation3 + $0x1], 0 }
   0x2   :  { %12 = vsyncpa [#allocation6], 0 }
   0x3   :  { %13 = vsyncpa [#allocation9], 0 }
   0x4   :  { %15 = vsyncpa [#allocation9 + $0x1], 0 }
   0x5   :  { %16 = vsyncpa [#allocation4], 0 }
   0x6   :  { %18 = vsyncpa [#allocation4 + $0x1], 0  ;;  %s813_s15 = smov 0   ;;  %s815_s16 = smov 0  }
   0x7   :  { %s817_s17 = smov 0   ;;  %s819_s18 = smov 0  }
   0x8 LB: > { %s834_s19 = sadd.s32 4294967295, %s777_s18   ;;  %s475_s20 = sadd.s32 4294967294, %s777_s18   ;;  %s777_s18 = sphi %s819_s18, %s1108_s18   ;;  %s773_s17 = sphi %s817_s17, %s1107_s17   ;;  %s769_s16 = sphi %s815_s16, %s1106_s16   ;;  %s765_s15 = sphi %s813_s15, %s1105_s15  }
   0x9   : > { %p44_p0 = scmp.ne.s32.totalorder %s769_s16, %s765_s15  ;;  %p1087_p1 = scmp.eq.s32.totalorder %s834_s19, 0 }
   0xa   : > { %p142_p3 = scmp.eq.s32.totalorder %s475_s20, 1  ;;  %p476_p5 = scmp.ge.s32.totalorder %s777_s18, 1 }
   0xb   : > { %p843_p4 = por %p1087_p1, %p44_p0  ;;  %p149_p7 = scmp.lt.s32.totalorder %s777_s18, 3 }
   0xc   : > { %p848_p6 = por %p142_p3, %p44_p0  ;;  %s779_s24 = smov [#allocation5]  }
   0xd   : > { %s1091_s21 = scalar_select %p843_p4, 1, 0 }
   0xe   : > { %s1092_s22 = scalar_select %p848_p6, 1, 0 }
   0xf   : > { %p853_p8 = pnand %p476_p5, %p149_p7  ;;  %s161_s25 = sshll.u32 %s779_s24, 4  ;;  %s857_s25 = int_to_ptr.vmem [resolvable:$true] %s161_s25 }
  0x10   : > { %s780_s27 = smov [#allocation7]   ;;  %s587_s5 = scalar_lea.hbm %s1083_s1, 256 }
  0x11   : > { %s1093_s23 = scalar_select %p853_p8, 1, 0 }
  0x12   : > { %p523_p9 = pneg %p853_p8  ;;  %s175_s28 = sshll.u32 %s780_s27, 4  ;;  %s868_s28 = int_to_ptr.vmem [resolvable:$true] %s175_s28 }
  0x13   : > { %p588_p12 = scmp.ne.s32.totalorder %s1083_s1, %s587_s5  ;;  %p594_p5 = scmp.lt.u32.totalorder %s587_s5, %s1083_s1 }
  0x14   : > { %p864_p11 = pnand %p523_p9, %p1087_p1 }
  0x16   : > { %p589_p13 = pneg %p864_p11 }
  0x18   : > { %p590_p0 = pnand %p589_p13, %p588_p12 }
  0x1a   : > { %p591_p3 = pneg %p590_p0 }
  0x1c   : > { %p596_p7 = pnand %p594_p5, %p591_p3 }
  0x1e   : > { %599 = shalt.err (!%p596_p7)
}
  0x1f   : > { %s600_s10 = scalar_lea.vmem %s857_s25, 256  ;;  %p608_p2 = scmp.lt.s32.totalorder %s857_s25, %s857_s25 }
  0x20   : > { %p601_p9 = scmp.ne.s32.totalorder %s857_s25, %s600_s10  ;;  %p609_p12 = scmp.lt.s32.totalorder %s600_s10, %s600_s10 }
  0x22   : > { %p603_p10 = pnand %p601_p9, %p589_p13  ;;  %p610_p0 = por %p609_p12, %p608_p2 }
  0x24   : > { %p604_p1 = pneg %p603_p10 }
  0x26   : > { %p611_p6 = pnand %p610_p0, %p604_p1 }
  0x28   : > { %614 = shalt.err (!%p611_p6)
}
  0x29   : > { %s781_s11 = smov 64   ;;  %s782_s12 = smov 4  }
  0x2a   : > { %526 = dma.hbm_to_vmem [thread:$0]  (!%p864_p11), %s1083_s1, 256, %s857_s25, [#allocation6], %s781_s11, %s781_s11, %s782_s12  }
  0x2b   : > { %s615_s27 = scalar_lea.hbm %s1084_s2, 16 }
  0x2c   : > { %p616_p2 = scmp.ne.s32.totalorder %s1084_s2, %s615_s27  ;;  %p622_p10 = scmp.lt.u32.totalorder %s615_s27, %s1084_s2 }
  0x2e   : > { %p618_p1 = pnand %p616_p2, %p589_p13 }
  0x30   : > { %p619_p6 = pneg %p618_p1 }
  0x32   : > { %p624_p3 = pnand %p622_p10, %p619_p6 }
  0x34   : > { %627 = shalt.err (!%p624_p3)
}
  0x35   : > { %s628_s25 = scalar_lea.vmem %s868_s28, 16  ;;  %s635_s7 = scalar_lea.vmem %s868_s28, 32 }
  0x36   : > { %p629_p5 = scmp.ne.s32.totalorder %s868_s28, %s628_s25  ;;  %p636_p12 = scmp.lt.s32.totalorder %s868_s28, %s868_s28 }
  0x37   : > { %p637_p0 = scmp.lt.s32.totalorder %s635_s7, %s628_s25 }
  0x38   : > { %p631_p7 = pnand %p629_p5, %p589_p13 }
  0x39   : > { %p638_p2 = por %p637_p0, %p636_p12 }
  0x3a   : > { %p632_p9 = pneg %p631_p7 }
  0x3c   : > { %p639_p1 = pnand %p638_p2, %p632_p9 }
  0x3e   : > { %642 = shalt.err (!%p639_p1)
}
  0x3f   : > { %529 = dma.hbm_to_vmem [thread:$0]  (!%p864_p11), %s1084_s2, 16, %s868_s28, [#allocation6]  }
  0x40   : > { %s924_s10 = sadd.s32 1, %s777_s18   ;;  %s31_s26 = sadd.s32 1, %s773_s17 }
  0x41   : > { %s28_s11 = ssub.s32 %s777_s18, %s924_s10  ;;  %p38_p13 = scmp.ne.s32.totalorder %s773_s17, %s769_s16 }
  0x42   : > { %p29_p6 = scmp.eq.s32.totalorder %s28_s11, 0  ;;  %p39_p10 = scmp.eq.s32.totalorder %s777_s18, 0 }
  0x43   : > { %p1095_p3 = scmp.eq.s32.totalorder %s834_s19, 1  ;;  %p543_p7 = scmp.lt.s32.totalorder %s777_s18, 2 }
  0x44   : > { %s940_s13 = scalar_select %p29_p6, %s773_s17, %s31_s26  }
  0x45   : > { %p934_p5 = por %p1095_p3, %p38_p13  ;;  %p40_p9 = por %p39_p10, %p38_p13 }
  0x46   : > { %s943_s14 = sand.u32 1, %s773_s17   ;;  %s481_s20 = sshll.u32 %s777_s18, 6 }
  0x47   : > { %s1096_s12 = scalar_select %p934_p5, 1, 0 }
  0x48   : > { %s480_s28 = sshll.u32 %s943_s14, 2  ;;  %s950_s29 = scalar_lea.hbm %s1082_s0, %s481_s20 }
  0x49   : > { %s190_s30 = scalar_lea.vmem [#allocation2], %s480_s28  ;;  %p954_p11 = pnand %p543_p7, %p40_p9 }
  0x4a   : > { %s197_s5 = sshll.u32 %s190_s30, 4  ;;  %s482_s25 = sshll.u32 %s943_s14, 3  ;;  %s952_s5 = int_to_ptr.vmem [resolvable:$true] %s197_s5 }
  0x4b   : > { %s187_s7 = scalar_lea.sflag [#allocation3], %s943_s14  ;;  %s643_s8 = scalar_lea.hbm %s950_s29, 64 }
  0x4c   : > { %p644_p12 = scmp.ne.s32.totalorder %s950_s29, %s643_s8  ;;  %p645_p0 = pneg %p954_p11 }
  0x4d   : > { %s648_s11 = scalar_lea.hbm %s1082_s0, 128  ;;  %p649_p13 = scmp.lt.u32.totalorder %s950_s29, %s1082_s0 }
  0x4e   : > { %p646_p2 = pnand %p645_p0, %p644_p12  ;;  %p650_p6 = scmp.lt.u32.totalorder %s648_s11, %s643_s8 }
  0x4f   : > { %p652_p3 = scmp.lt.u32.totalorder %s643_s8, %s950_s29 }
  0x50   : > { %p647_p1 = pneg %p646_p2  ;;  %p651_p10 = por %p650_p6, %p649_p13 }
  0x52   : > { %p653_p7 = por %p652_p3, %p651_p10 }
  0x54   : > { %p654_p9 = pnand %p653_p7, %p647_p1 }
  0x56   : > { %657 = shalt.err (!%p654_p9)
}
  0x57   : > { %s658_s24 = scalar_lea.vmem %s952_s5, 64  ;;  %s783_s27 = smov [#allocation2]  }
  0x58   : > { %p659_p12 = scmp.ne.s32.totalorder %s952_s5, %s658_s24  ;;  %s663_s30 = sshll.u32 %s783_s27, 4  ;;  %s664_s30 = int_to_ptr.vmem [resolvable:$false] %s663_s30 }
  0x59   : > { %s665_s9 = scalar_lea.vmem %s664_s30, 128  ;;  %p666_p4 = scmp.lt.s32.totalorder %s952_s5, %s664_s30 }
  0x5a   : > { %p661_p2 = pnand %p659_p12, %p645_p0  ;;  %p667_p13 = scmp.lt.s32.totalorder %s665_s9, %s658_s24 }
  0x5c   : > { %p662_p5 = pneg %p661_p2  ;;  %p668_p6 = por %p667_p13, %p666_p4 }
  0x5e   : > { %p669_p10 = pnand %p668_p6, %p662_p5 }
  0x60   : > { %672 = shalt.err (!%p669_p10)
}
  0x61   : > { %533 = dma.hbm_to_vmem [thread:$0]  (!%p954_p11), %s950_s29, 64, %s952_s5, %s187_s7  }
  0x62   : > { %s483_s8 = sshll.u32 %s777_s18, 7  ;;  %s208_s26 = scalar_lea.vmem [#allocation8], %s482_s25 }
  0x63   : > { %s215_s11 = sshll.u32 %s208_s26, 4  ;;  %s991_s24 = scalar_lea.hbm %s1085_s3, %s483_s8  ;;  %s216_s11 = int_to_ptr.vmem [resolvable:$true] %s215_s11 }
  0x64   : > { %s205_s27 = scalar_lea.sflag [#allocation9], %s943_s14  ;;  %s673_s30 = scalar_lea.hbm %s991_s24, 128 }
  0x65   : > { %p674_p4 = scmp.ne.s32.totalorder %s991_s24, %s673_s30  ;;  %s678_s25 = scalar_lea.hbm %s1085_s3, 256 }
  0x66   : > { %p679_p3 = scmp.lt.u32.totalorder %s991_s24, %s1085_s3  ;;  %p680_p7 = scmp.lt.u32.totalorder %s678_s25, %s673_s30 }
  0x67   : > { %p676_p5 = pnand %p674_p4, %p645_p0  ;;  %p682_p12 = scmp.lt.u32.totalorder %s673_s30, %s991_s24 }
  0x68   : > { %p681_p9 = por %p680_p7, %p679_p3 }
  0x69   : > { %p677_p1 = pneg %p676_p5 }
  0x6a   : > { %p683_p2 = por %p682_p12, %p681_p9 }
  0x6c   : > { %p684_p13 = pnand %p683_p2, %p677_p1 }
  0x6e   : > { %687 = shalt.err (!%p684_p13)
}
  0x6f   : > { %s688_s14 = scalar_lea.vmem %s216_s11, 128  ;;  %s784_s8 = smov [#allocation8]  }
  0x70   : > { %p689_p6 = scmp.ne.s32.totalorder %s216_s11, %s688_s14  ;;  %s693_s26 = sshll.u32 %s784_s8, 4  ;;  %s694_s26 = int_to_ptr.vmem [resolvable:$false] %s693_s26 }
  0x71   : > { %s695_s28 = scalar_lea.vmem %s694_s26, 256  ;;  %p696_p5 = scmp.lt.s32.totalorder %s216_s11, %s694_s26 }
  0x72   : > { %p691_p10 = pnand %p689_p6, %p645_p0  ;;  %p697_p8 = scmp.lt.s32.totalorder %s695_s28, %s688_s14 }
  0x74   : > { %p692_p4 = pneg %p691_p10  ;;  %p698_p3 = por %p697_p8, %p696_p5 }
  0x76   : > { %p699_p7 = pnand %p698_p3, %p692_p4 }
  0x78   : > { %702 = shalt.err (!%p699_p7)
}
  0x79   : > { %536 = dma.hbm_to_vmem [thread:$0]  (!%p954_p11), %s991_s24, 128, %s216_s11, %s205_s27  }
  0x7a   : > { %p1098_p1 = scmp.ne.s32.totalorder %s1093_s23, 0 }
  0x7b   : > { %s1016_s20 = sand.u32 (!%p1098_p1), 1, %s769_s16   ;;  %p1099_p0 = scmp.ne.s32.totalorder (!%p1098_p1), %s1091_s21, 0 }
  0x7c   : > { %224 = sbr.rel (%p1098_p1) target bundleno = 377 (0x179), region = 36  ;;  %s485_s30 = sshll.u32 (!%p1098_p1), %s1016_s20, 2 }
  0x7d   : > { %s227_s29 = scalar_lea.sflag (!%p1098_p1), [#allocation3], %s1016_s20  ;;  %s230_s5 = scalar_lea.vmem (!%p1098_p1), [#allocation2], %s485_s30 }
  0x83   : > { %748 = dma.done.wait (%p1099_p0), %s227_s29, 64  }
  0x84   : > { %750 = vsyncadd (%p1099_p0), %s227_s29, 4294967232  ;;  %p1100_p8 = scmp.eq.s32.totalorder %s834_s19, 0 }
  0x86   : > { %752 = dma.done.wait (%p1100_p8), [#allocation6], 272   ;;  %p1101_p11 = pmov %p1100_p8 }
  0x87   : > { %s488_s23 = sshll.u32 %s1016_s20, 3  ;;  %s244_s6 = scalar_lea.sflag [#allocation9], %s1016_s20 }
  0x88   : > { %754 = vsyncadd (%p1101_p11), [#allocation6], 4294967024  ;;  %s247_s11 = scalar_lea.vmem [#allocation8], %s488_s23 }
  0x89   : > { %756 = dma.done.wait (%p1099_p0), %s244_s6, 128  }
  0x8a   : > { %758 = vsyncadd (%p1099_p0), %s244_s6, 4294967168  ;;  %v785_v0 = vmov 0.0   ;;  %vm786_vm0 = vmmov 0   ;;  %v585_v1 = vld [vmem:[#allocation5] sm:$0xff]   ;;  %v586_v2 = vld [vmem:[#allocation5 + $0x8] sm:$0xff]   ;;  %vm302_vm1 = vcmask 261120  }
  0x8b   : > { %501 = vmatprep.subr.bf16.mxu0 %v785_v0  ;;  %505 = vmatprep.mubr.msk.bf16.mxu0 %vm786_vm0, %v785_v0  ;;  %v278_v3 = vld [vmem:[%s230_s5] sm:$0xf]  ;;  %v490_v4 = vld [vmem:[#allocation7] ss:$0 sm:$0xff]  ;;  %s495_s21 = sshll.u32 %s834_s19, 7  ;;  %s276_s24 = scalar_lea.vmem [#allocation10], %s488_s23 }
  0x8c   : > { %502 = vmatpush3.bf16.msra.mxu0 %v585_v1  ;;  %v346_v6 = vld [vmem:[%s247_s11] sm:$0xff]  ;;  %s363_s27 = sshll.u32 %s276_s24, 4  ;;  %s1038_s9 = scalar_lea.hbm %s1086_s4, %s495_s21  ;;  %s1040_s27 = int_to_ptr.vmem [resolvable:$true] %s363_s27 }
  0x8d   : > { %503 = vmatprep.subr.bf16.mxu0 %v785_v0  ;;  %s350_s14 = scalar_lea.sflag [#allocation4], %s1016_s20  ;;  %s703_s19 = scalar_lea.vmem %s1040_s27, 128 }
  0x8e   : > { %p704_p9 = scmp.ne.s32.totalorder %s1040_s27, %s703_s19  ;;  %p1102_p12 = scmp.ne.s32.totalorder %s1096_s12, 0 }
  0x8f   : > { %s787_s8 = smov [#allocation10]  }
  0x90   : > { %504 = vmatpush3.bf16.msra.mxu0 %v586_v2  ;;  %p705_p2 = pnand %p704_p9, %p1102_p12  ;;  %s707_s26 = sshll.u32 %s787_s8, 4  ;;  %s708_s26 = int_to_ptr.vmem [resolvable:$false] %s707_s26 }
  0x91   : > { %s709_s28 = scalar_lea.vmem %s708_s26, 256  ;;  %p710_p6 = scmp.lt.s32.totalorder %s1040_s27, %s708_s26 }
  0x92   : > { %p706_p13 = pneg %p705_p2  ;;  %p711_p10 = scmp.lt.s32.totalorder %s709_s28, %s703_s19 }
  0x93   : > { %506 = vmatmul.mubr.msk.bf16.vlgmr.msra.gmra.mrb[0].mxu0 %vm302_vm1, %v278_v3 }
  0x94   : > { %p712_p4 = por %p711_p10, %p710_p6 }
  0x96   : > { %p713_p5 = pnand %p712_p4, %p706_p13 }
 0x166   : > { %v340_v5 = vpop.f32.mrb[0].mxu0 }
 0x167   : > { %v341_v7 = vadd.f32 %v490_v4, %v340_v5  ;;  %v507_v8 = vpop.f32.mrb[1].mxu0 }
 0x168   : > { %v343_v9 = vpop.f32.mrb[2].mxu0 }
 0x169   : > { %v347_v10 = vadd.f32 %v346_v6, %v341_v7  ;;  %v508_v11 = vpop.f32.mrb[3].mxu0 }
 0x16b   : > { %348 = vst.msk [vmem:[%s276_s24] sm:$0xff] %vm302_vm1, %v347_v10 }
 0x16c   : > { %716 = shalt.err (!%p713_p5)
}
 0x16d   : > { %s717_s20 = scalar_lea.hbm %s1038_s9, 128  ;;  %s721_s5 = scalar_lea.hbm %s1086_s4, 256 }
 0x16e   : > { %p718_p3 = scmp.ne.s32.totalorder %s1038_s9, %s717_s20  ;;  %p722_p0 = scmp.lt.u32.totalorder %s1038_s9, %s1086_s4 }
 0x16f   : > { %p723_p8 = scmp.lt.u32.totalorder %s721_s5, %s717_s20  ;;  %p725_p9 = scmp.lt.u32.totalorder %s717_s20, %s1038_s9 }
 0x170   : > { %p719_p7 = pnand %p718_p3, %p1102_p12 }
 0x171   : > { %p724_p11 = por %p723_p8, %p722_p0 }
 0x172   : > { %p720_p1 = pneg %p719_p7 }
 0x173   : > { %p726_p2 = por %p725_p9, %p724_p11 }
 0x175   : > { %p727_p13 = pnand %p726_p2, %p720_p1 }
 0x177   : > { %730 = shalt.err (!%p727_p13)
}
 0x178   : > { %521 = dma.vmem_to_hbm [thread:$0]  (%p1102_p12), %s1040_s27, 128, %s1038_s9, %s350_s14  }
 0x179 PF: > { %s375_s11 = sand.u32 1, %s765_s15   ;;  %p1103_p6 = scmp.ne.s32.totalorder %s1092_s22, 0 }
 0x17a   : > { %p1104_p10 = scmp.ge.s32.totalorder %s777_s18, 2  ;;  %s376_s21 = scalar_lea.sflag [#allocation4], %s375_s11 }
 0x17c   : > { %p538_p4 = pnand %p1104_p10, %p1103_p6 }
 0x17e   : > { %760 = dma.done.wait (!%p538_p4), %s376_s21, 128  }
 0x17f   : > { %762 = vsyncadd (!%p538_p4), %s376_s21, 4294967168  ;;  %p21_p5 = scmp.ge.s32.totalorder %s924_s10, 4   ;;  %s1105_s15 = smov %s769_s16 }
 0x180   : > { %s1106_s16 = smov %s773_s17  ;;  %s1107_s17 = smov %s940_s13 }
 0x181   : > { %s1108_s18 = smov %s924_s10  ;;  %23 = sbr.rel (!%p21_p5) target bundleno = 8 (0x8), region = 102 }
 0x188   :  { %381 = vsyncpa [#allocation3], 1 }
 0x189   :  { %383 = vsyncpa [#allocation3 + $0x1], 1 }
 0x18a   :  { %384 = vsyncpa [#allocation6], 1 }
 0x18b   :  { %385 = vsyncpa [#allocation9], 1 }
 0x18c   :  { %387 = vsyncpa [#allocation9 + $0x1], 1 }
 0x18d   :  { %388 = vsyncpa [#allocation4], 1 }
 0x18e   :  { %390 = vsyncpa [#allocation4 + $0x1], 1 }

// kernel: decoder_forward.18
= control target key start
LH: loop header
LB: loop body
LE: loop exit
PB: predicated region body
PF: predicated region fallthrough
CT: control target
= control target key end

     0   :  { %7 = vsyncpa [#allocation3], 0  ;;  %s1413_s0 = inlined_call_operand.hbm [shape: bf16[2,8,96], index: 0, kind: input, shape index: {}]   ;;  %s1414_s1 = inlined_call_operand.hbm [shape: bf16[2,1,8,8], index: 1, kind: input, shape index: {}]   ;;  %s1415_s2 = inlined_call_operand.hbm [shape: bf16[2,8,32], index: 2, kind: output, shape index: {}]  }
   0x1   :  { %9 = vsyncpa [#allocation3 + $0x1], 0 }
   0x2   :  { %10 = vsyncpa [#allocation6], 0 }
   0x3   :  { %12 = vsyncpa [#allocation6 + $0x1], 0 }
   0x4   :  { %13 = vsyncpa [#allocation4], 0 }
   0x5   :  { %15 = vsyncpa [#allocation4 + $0x1], 0  ;;  %s1128_s9 = smov 0   ;;  %s1130_s10 = smov 0  }
   0x6   :  { %s1132_s11 = smov 0   ;;  %s1134_s12 = smov 0  }
   0x7 LB: > { %s1149_s13 = sadd.s32 4294967295, %s1092_s12   ;;  %s784_s14 = sadd.s32 4294967294, %s1092_s12   ;;  %s1092_s12 = sphi %s1134_s12, %s1434_s12   ;;  %s1088_s11 = sphi %s1132_s11, %s1433_s11   ;;  %s1084_s10 = sphi %s1130_s10, %s1432_s10   ;;  %s1080_s9 = sphi %s1128_s9, %s1431_s9  }
   0x8   : > { %s1153_s15 = sadd.s32 1, %s1092_s12   ;;  %s28_s16 = sadd.s32 1, %s1088_s11 }
   0x9   : > { %s25_s17 = ssub.s32 %s1092_s12, %s1153_s15  ;;  %p35_p0 = scmp.ne.s32.totalorder %s1088_s11, %s1084_s10 }
   0xa   : > { %p26_p1 = scmp.eq.s32.totalorder %s25_s17, 0  ;;  %p36_p2 = scmp.eq.s32.totalorder %s1092_s12, 0 }
   0xb   : > { %p41_p3 = scmp.ne.s32.totalorder %s1084_s10, %s1080_s9  ;;  %p42_p4 = scmp.eq.s32.totalorder %s1149_s13, 0 }
   0xc   : > { %s1165_s18 = scalar_select %p26_p1, %s1088_s11, %s28_s16  }
   0xd   : > { %p1167_p5 = por %p36_p2, %p35_p0  ;;  %p1171_p6 = por %p42_p4, %p41_p3 }
   0xe   : > { %p91_p7 = scmp.eq.s32.totalorder %s1149_s13, 1  ;;  %p97_p8 = scmp.eq.s32.totalorder %s784_s14, 1 }
   0xf   : > { %s1419_s20 = scalar_select %p1171_p6, 1, 0 }
  0x10   : > { %p895_p10 = scmp.lt.s32.totalorder %s1092_s12, 2  ;;  %p1178_p11 = por %p91_p7, %p35_p0 }
  0x11   : > { %p1182_p12 = por %p97_p8, %p41_p3  ;;  %s1187_s23 = sand.u32 1, %s1088_s11  }
  0x12   : > { %s1420_s21 = scalar_select %p1178_p11, 1, 0 }
  0x13   : > { %s1421_s22 = scalar_select %p1182_p12, 1, 0 }
  0x14   : > { %s788_s24 = sshll.u32 %s1092_s12, 6  ;;  %s787_s25 = sshll.u32 %s1187_s23, 2 }
  0x15   : > { %s1196_s28 = scalar_lea.hbm %s1413_s0, %s788_s24  ;;  %s121_s29 = scalar_lea.vmem [#allocation2], %s787_s25 }
  0x16   : > { %s128_s30 = sshll.u32 %s121_s29, 4  ;;  %p1202_p13 = pnand %p895_p10, %p1167_p5  ;;  %s1206_s30 = int_to_ptr.vmem [resolvable:$true] %s128_s30 }
  0x17   : > { %s118_s4 = scalar_lea.sflag [#allocation3], %s1187_s23  ;;  %s962_s5 = scalar_lea.hbm %s1196_s28, 64 }
  0x18   : > { %p963_p2 = scmp.ne.s32.totalorder %s1196_s28, %s962_s5  ;;  %p964_p3 = pneg %p1202_p13 }
  0x19   : > { %s967_s8 = scalar_lea.hbm %s1413_s0, 128  ;;  %p968_p5 = scmp.lt.u32.totalorder %s1196_s28, %s1413_s0 }
  0x1a   : > { %p965_p4 = pnand %p964_p3, %p963_p2  ;;  %p969_p8 = scmp.lt.u32.totalorder %s967_s8, %s962_s5 }
  0x1b   : > { %p971_p9 = scmp.lt.u32.totalorder %s962_s5, %s1196_s28 }
  0x1c   : > { %p966_p7 = pneg %p965_p4  ;;  %p970_p10 = por %p969_p8, %p968_p5 }
  0x1e   : > { %p972_p0 = por %p971_p9, %p970_p10 }
  0x20   : > { %p973_p1 = pnand %p972_p0, %p966_p7 }
  0x22   : > { %976 = shalt.err (!%p973_p1)
}
  0x23   : > { %s977_s17 = scalar_lea.vmem %s1206_s30, 64  ;;  %s1094_s19 = smov [#allocation2]  }
  0x24   : > { %p978_p2 = scmp.ne.s32.totalorder %s1206_s30, %s977_s17  ;;  %s982_s26 = sshll.u32 %s1094_s19, 4  ;;  %s983_s26 = int_to_ptr.vmem [resolvable:$false] %s982_s26 }
  0x25   : > { %s984_s27 = scalar_lea.vmem %s983_s26, 128  ;;  %p985_p11 = scmp.lt.s32.totalorder %s1206_s30, %s983_s26 }
  0x26   : > { %p980_p4 = pnand %p978_p2, %p964_p3  ;;  %p986_p5 = scmp.lt.s32.totalorder %s984_s27, %s977_s17 }
  0x28   : > { %p981_p12 = pneg %p980_p4  ;;  %p987_p8 = por %p986_p5, %p985_p11 }
  0x2a   : > { %p988_p9 = pnand %p987_p8, %p981_p12 }
  0x2c   : > { %991 = shalt.err (!%p988_p9)
}
  0x2d   : > { %887 = dma.hbm_to_vmem [thread:$0]  (!%p1202_p13), %s1196_s28, 64, %s1206_s30, %s118_s4  }
  0x2e   : > { %p1423_p0 = scmp.lt.s32.totalorder %s1092_s12, 3  ;;  %p1424_p1 = scmp.ge.s32.totalorder %s1092_s12, 1 }
  0x2f   : > { %s1249_s7 = scalar_lea.hbm %s1414_s1, %s788_s24  ;;  %s139_s8 = scalar_lea.vmem [#allocation5], %s787_s25 }
  0x30   : > { %p1240_p7 = pnand %p1424_p1, %p1423_p0  ;;  %s146_s14 = sshll.u32 %s139_s8, 4  ;;  %s147_s14 = int_to_ptr.vmem [resolvable:$true] %s146_s14 }
  0x31   : > { %s136_s28 = scalar_lea.sflag [#allocation6], %s1187_s23  ;;  %s992_s30 = scalar_lea.hbm %s1249_s7, 64 }
  0x32   : > { %s1425_s29 = scalar_select %p1240_p7, 1, 0 }
  0x33   : > { %p993_p11 = scmp.ne.s32.totalorder %s1249_s7, %s992_s30  ;;  %s997_s24 = scalar_lea.hbm %s1414_s1, 128 }
  0x34   : > { %p998_p2 = scmp.lt.u32.totalorder %s1249_s7, %s1414_s1  ;;  %p999_p4 = scmp.lt.u32.totalorder %s997_s24, %s992_s30 }
  0x35   : > { %p995_p12 = pnand %p993_p11, %p964_p3  ;;  %p1001_p8 = scmp.lt.u32.totalorder %s992_s30, %s1249_s7 }
  0x36   : > { %p1000_p5 = por %p999_p4, %p998_p2 }
  0x37   : > { %p996_p10 = pneg %p995_p12 }
  0x38   : > { %p1002_p9 = por %p1001_p8, %p1000_p5 }
  0x3a   : > { %p1003_p0 = pnand %p1002_p9, %p996_p10 }
  0x3c   : > { %1006 = shalt.err (!%p1003_p0)
}
  0x3d   : > { %s1007_s23 = scalar_lea.vmem %s147_s14, 64  ;;  %s1095_s25 = smov [#allocation5]  }
  0x3e   : > { %p1008_p1 = scmp.ne.s32.totalorder %s147_s14, %s1007_s23  ;;  %s1012_s26 = sshll.u32 %s1095_s25, 4  ;;  %s1013_s26 = int_to_ptr.vmem [resolvable:$false] %s1012_s26 }
  0x3f   : > { %s1014_s27 = scalar_lea.vmem %s1013_s26, 128  ;;  %p1015_p6 = scmp.lt.s32.totalorder %s147_s14, %s1013_s26 }
  0x40   : > { %p1010_p11 = pnand %p1008_p1, %p964_p3  ;;  %p1016_p7 = scmp.lt.s32.totalorder %s1014_s27, %s1007_s23 }
  0x42   : > { %p1011_p12 = pneg %p1010_p11  ;;  %p1017_p2 = por %p1016_p7, %p1015_p6 }
  0x44   : > { %p1018_p4 = pnand %p1017_p2, %p1011_p12 }
  0x46   : > { %1021 = shalt.err (!%p1018_p4)
}
  0x47   : > { %890 = dma.hbm_to_vmem [thread:$0]  (!%p1202_p13), %s1249_s7, 64, %s147_s14, %s136_s28  }
  0x48   : > { %p1426_p10 = scmp.ne.s32.totalorder %s1425_s29, 0 }
  0x49   : > { %s1276_s5 = sand.u32 (!%p1426_p10), 1, %s1084_s10   ;;  %p1427_p6 = scmp.ne.s32.totalorder (!%p1426_p10), %s1419_s20, 0 }
  0x4a   : > { %155 = sbr.rel (%p1426_p10) target bundleno = 1682 (0x692), region = 28  ;;  %s1279_s6 = sshll.u32 (!%p1426_p10), %s1276_s5, 2 }
  0x4b   : > { %s158_s8 = scalar_lea.sflag (!%p1426_p10), [#allocation3], %s1276_s5  ;;  %s161_s30 = scalar_lea.vmem (!%p1426_p10), [#allocation2], %s1279_s6 }
  0x51   : > { %1067 = dma.done.wait (%p1427_p6), %s158_s8, 64  }
  0x52   : > { %1069 = vsyncadd (%p1427_p6), %s158_s8, 4294967232  ;;  %s167_s3 = scalar_lea.sflag [#allocation6], %s1276_s5  ;;  %s170_s29 = scalar_lea.vmem [#allocation5], %s1279_s6 }
  0x53   : > { %1071 = dma.done.wait (%p1427_p6), %s167_s3, 64  }
  0x54   : > { %1073 = vsyncadd (%p1427_p6), %s167_s3, 4294967232  ;;  %v1096_v0 = vmov 0.0   ;;  %vm1097_vm0 = vmmov 0   ;;  %v197_v1 = vld [vmem:[%s161_s30] sm:$0xf]  ;;  %s1098_s7 = smov 96  }
  0x55   : > { %830 = vmatprep.subr.bf16.mxu0 %v1096_v0  ;;  %832 = vmatprep.mubr.msk.bf16.mxu0 %vm1097_vm0, %v1096_v0  ;;  %v1299_v2 = vcombine.low %v197_v1, %v197_v1  ;;  %v200_v3 = vunpack.c.l.bf16 %v197_v1  ;;  %vm208_vm1 = vcmask 64512   ;;  %s1099_s20 = smov 64   ;;  %s1100_s14 = smov 88   ;;  %v198_v8 = vld [vmem:[%s170_s29] sm:$0xf]  ;;  %vm272_vm2 = vcmask 1043456  }
  0x56   : > { %836 = vmatprep.subr.bf16.mxu1 %v1096_v0  ;;  %838 = vmatprep.mubr.msk.bf16.mxu1 %vm1097_vm0, %v1096_v0  ;;  %v1309_v9 = vunpack.c.l.bf16 %v198_v8  ;;  %s1101_s28 = smov 72   ;;  %s1102_s4 = smov 120   ;;  %vm317_vm3 = vcmask 60416   ;;  %vm437_vm4 = vcmask 126016   ;;  %vm556_vm5 = vcmask 191616  }
  0x57   : > { %206 = vrot.lane.b32.xlu0 %v1299_v2, %s1098_s7  ;;  %v201_v6 = vmul.f32 0.35355338, %v200_v3  ;;  %267 = vrot.lane.b32.xlu1 %v1299_v2, %s1099_s20  ;;  %s1103_s16 = smov 80   ;;  %s1104_s24 = smov 112   ;;  %vm675_vm6 = vcmask 257216  }
  0x58   : > { %s1105_s17 = smov 104   ;;  %s1334_s19 = scalar_lea.vmem [#allocation7], %s1279_s6 }
  0x59   : > { %v202_v7 = vpack.c.bf16 %v201_v6, %v201_v6  ;;  %s1106_s23 = smov 56   ;;  %s1107_s25 = smov 48  }
  0x5a   : > { %s1108_s26 = smov 40   ;;  %s1109_s27 = smov 8  }
  0x5b   : > { %322 = vrot.lane.b32.xlu1 %v1299_v2, %s1100_s14  ;;  %s1110_s6 = smov 16   ;;  %s1111_s8 = smov 24  }
  0x5c   : > { %s808_s30 = sshll.u32 %s1149_s13, 6  ;;  %s691_s3 = sshll.u32 %s1334_s19, 4  ;;  %s1370_s3 = int_to_ptr.vmem [resolvable:$true] %s691_s3 }
  0x5d   : > { %s1368_s20 = scalar_lea.hbm %s1415_s2, %s808_s30  ;;  %s678_s14 = scalar_lea.sflag [#allocation4], %s1276_s5 }
  0x5e   : > { %p1428_p3 = scmp.ne.s32.totalorder %s1420_s21, 0  ;;  %s1112_s13 = smov [#allocation7]  }
  0xc9   : > { %v207_v4 = vpop.permute.xlu0 %206  ;;  %v268_v16 = vpop.permute.xlu1 %267 }
  0xca   : > { %v213_v5 = vsel %vm208_vm1, %v207_v4, 0  ;;  %v274_v17 = vsel %vm272_vm2, %v268_v16, 0 }
  0xcb   : > { %831 = vmatpush3.bf16.xpose.msra.mxu0 %v213_v5  ;;  %837 = vmatpush3.bf16.msra.mxu1 %v274_v17 }
  0xcc   : > { %848 = vmatprep.subr.bf16.mxu0 %v1096_v0  ;;  %842 = vmatprep.subr.bf16.mxu1 %v1096_v0 }
  0xcd   : > { %v323_v23 = vpop.permute.xlu1 %322 }
  0xce   : > { %v328_v29 = vsel %vm208_vm1, %v323_v23, 0 }
  0xd2   : > { %833 = vmatmul.mubr.msk.bf16.vlgmr.msra.gmra.mrb[0].mxu0 %vm208_vm1, %v202_v7 }
  0xd3   : > { %850 = vmatprep.mubr.msk.bf16.mxu0 %vm1097_vm0, %v1096_v0 }
 0x1a5   : > { %v249_v10 = vpop.f32.mrb[0].mxu0 }
 0x1a6   : > { %v250_v11 = vadd.f32 %v249_v10, %v1309_v9  ;;  %v834_v12 = vpop.f32.mrb[1].mxu0 }
 0x1a7   : > { %v252_v13 = vpop.f32.mrb[2].mxu0 }
 0x1a8   : > { %v835_v14 = vpop.f32.mrb[3].mxu0  ;;  %v255_v15 = vsel %vm208_vm1, %v250_v11, -inf }
 0x1a9   : > { %256 = vmax.xlane.f32.xlu0 %v255_v15 }
 0x1bf   : > { %560 = vrot.lane.b32.xlu0 %v1299_v2, %s1101_s28  ;;  %s1022_s28 = scalar_lea.vmem %s1370_s3, 64 }
 0x1c0   : > { %p1023_p13 = scmp.ne.s32.totalorder %s1370_s3, %s1022_s28 }
 0x1c2   : > { %p1024_p7 = pnand %p1023_p13, %p1428_p3 }
 0x1c4   : > { %p1025_p5 = pneg %p1024_p7 }
 0x236   : > { %v257_v18 = vpop.xlane.xlu0 %256 }
 0x237   : > { %v258_v19 = vsub.f32 %v250_v11, %v257_v18 }
 0x239   : > { %v259_v20 = vmul.f32 1.442695, %v258_v19 }
 0x23a   : > { %v561_v32 = vpop.permute.xlu0 %560 }
 0x23b   : > { %946 = vpow2.f32 %v259_v20  ;;  %v566_v34 = vsel %vm208_vm1, %v561_v32, 0 }
 0x245   : > { %v947_v21 = vpop.eup %946 }
 0x246   : > { %v261_v22 = vsel %vm208_vm1, %v947_v21, 0.0 }
 0x247   : > { %262 = vadd.xlane.f32.xlu1 %v261_v22 }
 0x258   : > { %320 = vrot.lane.b32.xlu1 %v202_v7, %s1102_s4  ;;  %s1026_s4 = sshll.u32 %s1112_s13, 4  ;;  %s1027_s4 = int_to_ptr.vmem [resolvable:$false] %s1026_s4 }
 0x259   : > { %p1029_p8 = scmp.lt.s32.totalorder %s1370_s3, %s1027_s4 }
 0x25c   : > { %441 = vrot.lane.b32.xlu1 %v1299_v2, %s1103_s16  ;;  %s1028_s16 = scalar_lea.vmem %s1027_s4, 128 }
 0x25d   : > { %p1030_p9 = scmp.lt.s32.totalorder %s1028_s16, %s1022_s28 }
 0x25f   : > { %p1031_p0 = por %p1030_p9, %p1029_p8 }
 0x260   : > { %439 = vrot.lane.b32.xlu1 %v202_v7, %s1104_s24 }
 0x261   : > { %p1032_p1 = pnand %p1031_p0, %p1025_p5 }
 0x264   : > { %558 = vrot.lane.b32.xlu1 %v202_v7, %s1105_s17 }
 0x2d4   : > { %v263_v24 = vpop.xlane.xlu1 %262 }
 0x2d5   : > { %948 = vrcp.f32 %v263_v24 }
 0x2d8   : > { %v321_v27 = vpop.permute.xlu1 %320 }
 0x2dc   : > { %v442_v30 = vpop.permute.xlu1 %441 }
 0x2dd   : > { %v447_v31 = vsel %vm208_vm1, %v442_v30, 0 }
 0x2df   : > { %v949_v25 = vpop.eup %948 }
 0x2e0   : > { %v265_v26 = vmul.f32 %v949_v25, %v947_v21  ;;  %v440_v33 = vpop.permute.xlu1 %439 }
 0x2e2   : > { %v266_v28 = vpack.c.bf16 %v265_v26, %v265_v26 }
 0x2e4   : > { %839 = vmatmul.mubr.msk.bf16.vlgmr.msra.gmra.mrb[0].mxu1 %vm208_vm1, %v266_v28  ;;  %v559_v35 = vpop.permute.xlu1 %558 }
 0x2e5   : > { %843 = vmatpush3.bf16.xpose.msra.mxu1 %v328_v29  ;;  %844 = vmatprep.mubr.msk.bf16.mxu1 %vm1097_vm0, %v1096_v0 }
 0x2e6   : > { %854 = vmatprep.subr.bf16.mxu1 %v1096_v0 }
 0x2ec   : > { %845 = vmatmul.mubr.msk.bf16.vlgmr.msra.gmra.mrb[4].mxu1 %vm208_vm1, %v321_v27 }
 0x2ed   : > { %855 = vmatpush3.bf16.xpose.msra.mxu1 %v447_v31  ;;  %856 = vmatprep.mubr.msk.bf16.mxu1 %vm1097_vm0, %v1096_v0 }
 0x2ee   : > { %866 = vmatprep.subr.bf16.mxu1 %v1096_v0 }
 0x2f4   : > { %857 = vmatmul.mubr.msk.bf16.vlgmr.msra.gmra.mrb[8].mxu1 %vm208_vm1, %v440_v33 }
 0x2f5   : > { %867 = vmatpush3.bf16.xpose.msra.mxu1 %v566_v34  ;;  %868 = vmatprep.mubr.msk.bf16.mxu1 %vm1097_vm0, %v1096_v0 }
 0x2fc   : > { %869 = vmatmul.mubr.msk.bf16.vlgmr.msra.gmra.mrb[12].mxu1 %vm208_vm1, %v559_v35 }
 0x3b7   : > { %v310_v36 = vpop.f32.mrb[0].mxu1 }
 0x3b8   : > { %v316_v37 = vpack.c.bf16 %v310_v36, %v310_v36  ;;  %v840_v38 = vpop.f32.mrb[1].mxu1 }
 0x3b9   : > { %v313_v39 = vpop.f32.mrb[2].mxu1 }
 0x3ba   : > { %318 = vst.msk [vmem:[%s1334_s19] sm:$0xf] %vm317_vm3, %v316_v37  ;;  %v841_v40 = vpop.f32.mrb[3].mxu1 }
 0x3bf   : > { %v364_v41 = vpop.f32.mrb[4].mxu1 }
 0x3c0   : > { %v365_v42 = vadd.f32 %v364_v41, %v1309_v9  ;;  %v846_v43 = vpop.f32.mrb[5].mxu1 }
 0x3c1   : > { %v367_v44 = vpop.f32.mrb[6].mxu1 }
 0x3c2   : > { %v847_v45 = vpop.f32.mrb[7].mxu1  ;;  %v370_v46 = vsel %vm208_vm1, %v365_v42, -inf }
 0x3c3   : > { %371 = vmax.xlane.f32.xlu1 %v370_v46 }
 0x3c7   : > { %v483_v47 = vpop.f32.mrb[8].mxu1 }
 0x3c8   : > { %v484_v48 = vadd.f32 %v483_v47, %v1309_v9  ;;  %v858_v49 = vpop.f32.mrb[9].mxu1 }
 0x3c9   : > { %v486_v50 = vpop.f32.mrb[10].mxu1 }
 0x3ca   : > { %v489_v51 = vsel %vm208_vm1, %v484_v48, -inf  ;;  %v859_v52 = vpop.f32.mrb[11].mxu1 }
 0x3cb   : > { %490 = vmax.xlane.f32.xlu0 %v489_v51 }
 0x3cf   : > { %v602_v53 = vpop.f32.mrb[12].mxu1 }
 0x3d0   : > { %v603_v54 = vadd.f32 %v602_v53, %v1309_v9  ;;  %v870_v55 = vpop.f32.mrb[13].mxu1 }
 0x3d1   : > { %v605_v56 = vpop.f32.mrb[14].mxu1 }
 0x3d2   : > { %v608_v57 = vsel %vm208_vm1, %v603_v54, -inf  ;;  %v871_v58 = vpop.f32.mrb[15].mxu1 }
 0x3d3   : > { %609 = vmax.xlane.f32.xlu1 %v608_v57 }
 0x450   : > { %v372_v59 = vpop.xlane.xlu1 %371 }
 0x451   : > { %v373_v60 = vsub.f32 %v365_v42, %v372_v59 }
 0x453   : > { %v374_v61 = vmul.f32 1.442695, %v373_v60 }
 0x455   : > { %950 = vpow2.f32 %v374_v61 }
 0x458   : > { %v491_v7 = vpop.xlane.xlu0 %490 }
 0x459   : > { %v492_v8 = vsub.f32 %v484_v48, %v491_v7 }
 0x45b   : > { %v493_v9 = vmul.f32 1.442695, %v492_v8 }
 0x45f   : > { %v951_v62 = vpop.eup %950 }
 0x460   : > { %v610_v63 = vpop.xlane.xlu1 %609  ;;  %v376_v1 = vsel %vm208_vm1, %v951_v62, 0.0 }
 0x461   : > { %v611_v3 = vsub.f32 %v603_v54, %v610_v63  ;;  %377 = vadd.xlane.f32.xlu1 %v376_v1 }
 0x463   : > { %v612_v4 = vmul.f32 1.442695, %v611_v3 }
 0x465   : > { %952 = vpow2.f32 %v612_v4 }
 0x466   : > { %954 = vpow2.f32 %v493_v9 }
 0x46f   : > { %v953_v5 = vpop.eup %952 }
 0x470   : > { %v614_v6 = vsel %vm208_vm1, %v953_v5, 0.0  ;;  %v955_v10 = vpop.eup %954 }
 0x471   : > { %615 = vadd.xlane.f32.xlu0 %v614_v6  ;;  %v495_v11 = vsel %vm208_vm1, %v955_v10, 0.0 }
 0x472   : > { %382 = vrot.lane.b32.xlu1 %v1299_v2, %s1106_s23 }
 0x487   : > { %501 = vrot.lane.b32.xlu0 %v1299_v2, %s1107_s25 }
 0x496   : > { %496 = vadd.xlane.f32.xlu1 %v495_v11 }
 0x4a7   : > { %620 = vrot.lane.b32.xlu1 %v1299_v2, %s1108_s26 }
 0x4ee   : > { %v378_v12 = vpop.xlane.xlu1 %377 }
 0x4ef   : > { %956 = vrcp.f32 %v378_v12 }
 0x4f2   : > { %v383_v13 = vpop.permute.xlu1 %382 }
 0x4f3   : > { %v388_v14 = vsel %vm272_vm2, %v383_v13, 0 }
 0x4f4   : > { %849 = vmatpush3.bf16.msra.mxu0 %v388_v14 }
 0x4f5   : > { %860 = vmatprep.subr.bf16.mxu0 %v1096_v0 }
 0x4f9   : > { %v957_v15 = vpop.eup %956 }
 0x4fa   : > { %v380_v16 = vmul.f32 %v957_v15, %v951_v62 }
 0x4fc   : > { %v381_v17 = vpack.c.bf16 %v380_v16, %v380_v16 }
 0x4fe   : > { %851 = vmatmul.mubr.msk.bf16.vlgmr.msra.gmra.mrb[4].mxu0 %vm208_vm1, %v381_v17  ;;  %v616_v18 = vpop.xlane.xlu0 %615 }
 0x4ff   : > { %862 = vmatprep.mubr.msk.bf16.mxu0 %vm1097_vm0, %v1096_v0 }
 0x502   : > { %v502_v19 = vpop.permute.xlu0 %501 }
 0x503   : > { %v507_v2 = vsel %vm272_vm2, %v502_v19, 0 }
 0x504   : > { %861 = vmatpush3.bf16.msra.mxu0 %v507_v2 }
 0x505   : > { %872 = vmatprep.subr.bf16.mxu0 %v1096_v0 }
 0x523   : > { %v497_v20 = vpop.xlane.xlu1 %496 }
 0x524   : > { %958 = vrcp.f32 %v497_v20 }
 0x525   : > { %960 = vrcp.f32 %v616_v18 }
 0x527   : > { %v621_v22 = vpop.permute.xlu1 %620 }
 0x528   : > { %v626_v24 = vsel %vm272_vm2, %v621_v22, 0 }
 0x52e   : > { %v959_v21 = vpop.eup %958 }
 0x52f   : > { %v499_v23 = vmul.f32 %v959_v21, %v955_v10  ;;  %v961_v26 = vpop.eup %960 }
 0x530   : > { %v618_v27 = vmul.f32 %v961_v26, %v953_v5 }
 0x531   : > { %v500_v25 = vpack.c.bf16 %v499_v23, %v499_v23 }
 0x532   : > { %v619_v28 = vpack.c.bf16 %v618_v27, %v618_v27 }
 0x533   : > { %863 = vmatmul.mubr.msk.bf16.vlgmr.msra.gmra.mrb[8].mxu0 %vm208_vm1, %v500_v25 }
 0x534   : > { %873 = vmatpush3.bf16.msra.mxu0 %v626_v24  ;;  %874 = vmatprep.mubr.msk.bf16.mxu0 %vm1097_vm0, %v1096_v0 }
 0x53b   : > { %875 = vmatmul.mubr.msk.bf16.vlgmr.msra.gmra.mrb[12].mxu0 %vm208_vm1, %v619_v28 }
 0x5d1   : > { %v424_v29 = vpop.f32.mrb[4].mxu0 }
 0x5d2   : > { %v811_v30 = vpack.c.bf16 %v424_v29, %v424_v29  ;;  %v852_v31 = vpop.f32.mrb[5].mxu0 }
 0x5d3   : > { %v427_v32 = vpop.f32.mrb[6].mxu0 }
 0x5d4   : > { %434 = vrot.lane.b32.xlu1 %v811_v30, %s1109_s27  ;;  %v853_v33 = vpop.f32.mrb[7].mxu0 }
 0x606   : > { %v543_v34 = vpop.f32.mrb[8].mxu0 }
 0x607   : > { %v812_v35 = vpack.c.bf16 %v543_v34, %v543_v34  ;;  %v864_v36 = vpop.f32.mrb[9].mxu0 }
 0x608   : > { %v546_v37 = vpop.f32.mrb[10].mxu0 }
 0x609   : > { %553 = vrot.lane.b32.xlu0 %v812_v35, %s1110_s6  ;;  %v865_v0 = vpop.f32.mrb[11].mxu0 }
 0x60e   : > { %v662_v38 = vpop.f32.mrb[12].mxu0 }
 0x60f   : > { %v813_v39 = vpack.c.bf16 %v662_v38, %v662_v38  ;;  %v876_v40 = vpop.f32.mrb[13].mxu0 }
 0x610   : > { %v665_v41 = vpop.f32.mrb[14].mxu0 }
 0x611   : > { %672 = vrot.lane.b32.xlu1 %v813_v39, %s1111_s8  ;;  %v877_v42 = vpop.f32.mrb[15].mxu0 }
 0x646   : > { %v435_v43 = vpop.permute.xlu1 %434 }
 0x647   : > { %438 = vst.msk [vmem:[%s1334_s19] sm:$0xf] %vm437_vm4, %v435_v43 }
 0x67b   : > { %v554_v44 = vpop.permute.xlu0 %553 }
 0x67c   : > { %557 = vst.msk [vmem:[%s1334_s19] sm:$0xf] %vm556_vm5, %v554_v44 }
 0x683   : > { %v673_v45 = vpop.permute.xlu1 %672 }
 0x684   : > { %676 = vst.msk [vmem:[%s1334_s19] sm:$0xf] %vm675_vm6, %v673_v45 }
 0x685   : > { %1035 = shalt.err (!%p1032_p1)
}
 0x686   : > { %s1036_s5 = scalar_lea.hbm %s1368_s20, 64  ;;  %s1040_s19 = scalar_lea.hbm %s1415_s2, 128 }
 0x687   : > { %p1037_p11 = scmp.ne.s32.totalorder %s1368_s20, %s1036_s5  ;;  %p1041_p4 = scmp.lt.u32.totalorder %s1368_s20, %s1415_s2 }
 0x688   : > { %p1042_p10 = scmp.lt.u32.totalorder %s1040_s19, %s1036_s5  ;;  %p1044_p13 = scmp.lt.u32.totalorder %s1036_s5, %s1368_s20 }
 0x689   : > { %p1038_p12 = pnand %p1037_p11, %p1428_p3 }
 0x68a   : > { %p1043_p6 = por %p1042_p10, %p1041_p4 }
 0x68b   : > { %p1039_p2 = pneg %p1038_p12 }
 0x68c   : > { %p1045_p7 = por %p1044_p13, %p1043_p6 }
 0x68e   : > { %p1046_p5 = pnand %p1045_p7, %p1039_p2 }
 0x690   : > { %1049 = shalt.err (!%p1046_p5)
}
 0x691   : > { %882 = dma.vmem_to_hbm [thread:$0]  (%p1428_p3), %s1370_s3, 64, %s1368_s20, %s678_s14  }
 0x692 PF: > { %s703_s26 = sand.u32 1, %s1080_s9   ;;  %p1429_p8 = scmp.ne.s32.totalorder %s1421_s22, 0 }
 0x693   : > { %p1430_p9 = scmp.ge.s32.totalorder %s1092_s12, 2  ;;  %s704_s27 = scalar_lea.sflag [#allocation4], %s703_s26 }
 0x695   : > { %p892_p0 = pnand %p1430_p9, %p1429_p8 }
 0x697   : > { %1075 = dma.done.wait (!%p892_p0), %s704_s27, 64  }
 0x698   : > { %1077 = vsyncadd (!%p892_p0), %s704_s27, 4294967232  ;;  %p18_p1 = scmp.ge.s32.totalorder %s1153_s15, 4   ;;  %s1431_s9 = smov %s1084_s10 }
 0x699   : > { %s1432_s10 = smov %s1088_s11  ;;  %s1433_s11 = smov %s1165_s18 }
 0x69a   : > { %s1434_s12 = smov %s1153_s15  ;;  %20 = sbr.rel (!%p18_p1) target bundleno = 7 (0x7), region = 86 }
 0x6a1   :  { %709 = vsyncpa [#allocation3], 1 }
 0x6a2   :  { %711 = vsyncpa [#allocation3 + $0x1], 1 }
 0x6a3   :  { %712 = vsyncpa [#allocation6], 1 }
 0x6a4   :  { %714 = vsyncpa [#allocation6 + $0x1], 1 }
 0x6a5   :  { %715 = vsyncpa [#allocation4], 1 }
 0x6a6   :  { %717 = vsyncpa [#allocation4 + $0x1], 1 }

// kernel: decoder_forward.20
= control target key start
LH: loop header
LB: loop body
LE: loop exit
PB: predicated region body
PF: predicated region fallthrough
CT: control target
= control target key end

     0   :  { %10 = vsyncpa [#allocation3], 0  ;;  %s1193_s0 = inlined_call_operand.hbm [shape: f32[16,32], index: 0, kind: input, shape index: {}]   ;;  %s1194_s1 = inlined_call_operand.hbm [shape: f32[1,32], index: 1, kind: input, shape index: {}]   ;;  %s1195_s2 = inlined_call_operand.hbm [shape: f32[1,32], index: 2, kind: input, shape index: {}]   ;;  %s1196_s3 = inlined_call_operand.hbm [shape: bf16[32,32], index: 3, kind: input, shape index: {}]   ;;  %s1197_s4 = inlined_call_operand.hbm [shape: f32[1,32], index: 4, kind: input, shape index: {}]   ;;  %s1198_s5 = inlined_call_operand.hbm [shape: bf16[16,32], index: 5, kind: output, shape index: {}]  }
   0x1   :  { %12 = vsyncpa [#allocation3 + $0x1], 0 }
   0x2   :  { %13 = vsyncpa [#allocation6], 0 }
   0x3   :  { %14 = vsyncpa [#allocation9], 0 }
   0x4   :  { %15 = vsyncpa [#allocation4], 0 }
   0x5   :  { %17 = vsyncpa [#allocation4 + $0x1], 0  ;;  %s907_s18 = smov 0   ;;  %s909_s19 = smov 0  }
   0x6   :  { %s911_s20 = smov 0   ;;  %s913_s21 = smov 0  }
   0x7 LB: > { %s867_s22 = smov [#allocation5]   ;;  %s928_s24 = sadd.s32 4294967295, %s865_s21   ;;  %s865_s21 = sphi %s913_s21, %s1222_s21   ;;  %s861_s20 = sphi %s911_s20, %s1221_s20   ;;  %s857_s19 = sphi %s909_s19, %s1220_s19   ;;  %s853_s18 = sphi %s907_s18, %s1219_s18  }
   0x8   : > { %s177_s23 = sshll.u32 %s867_s22, 4  ;;  %p518_p0 = scmp.ge.s32.totalorder %s865_s21, 1  ;;  %s933_s23 = int_to_ptr.vmem [resolvable:$true] %s177_s23 }
   0x9   : > { %p1199_p1 = scmp.eq.s32.totalorder %s928_s24, 0  ;;  %p164_p2 = scmp.lt.s32.totalorder %s865_s21, 3 }
   0xa   : > { %s868_s26 = smov [#allocation8]   ;;  %s869_s29 = smov [#allocation7]  }
   0xb   : > { %p935_p3 = pnand %p518_p0, %p164_p2  ;;  %s198_s27 = sshll.u32 %s868_s26, 4  ;;  %s942_s27 = int_to_ptr.vmem [resolvable:$true] %s198_s27 }
   0xc   : > { %s188_s30 = sshll.u32 %s869_s29, 4  ;;  %s649_s8 = scalar_lea.hbm %s1194_s1, 16  ;;  %s950_s30 = int_to_ptr.vmem [resolvable:$true] %s188_s30 }
   0xd   : > { %s1202_s25 = scalar_select %p935_p3, 1, 0 }
   0xe   : > { %p574_p5 = pneg %p935_p3  ;;  %p650_p7 = scmp.ne.s32.totalorder %s1194_s1, %s649_s8 }
   0xf   : > { %p656_p11 = scmp.lt.u32.totalorder %s649_s8, %s1194_s1 }
  0x10   : > { %p946_p6 = pnand %p574_p5, %p1199_p1 }
  0x12   : > { %p960_p8 = pneg %p946_p6 }
  0x14   : > { %p652_p9 = pnand %p960_p8, %p650_p7 }
  0x16   : > { %p653_p10 = pneg %p652_p9 }
  0x18   : > { %p658_p12 = pnand %p656_p11, %p653_p10 }
  0x1a   : > { %661 = shalt.err (!%p658_p12)
}
  0x1b   : > { %s662_s14 = scalar_lea.vmem %s933_s23, 16  ;;  %s669_s15 = scalar_lea.vmem %s933_s23, 32 }
  0x1c   : > { %p663_p13 = scmp.ne.s32.totalorder %s933_s23, %s662_s14  ;;  %p670_p5 = scmp.lt.s32.totalorder %s933_s23, %s933_s23 }
  0x1d   : > { %p671_p7 = scmp.lt.s32.totalorder %s669_s15, %s662_s14 }
  0x1e   : > { %p665_p0 = pnand %p663_p13, %p960_p8 }
  0x1f   : > { %p672_p9 = por %p671_p7, %p670_p5 }
  0x20   : > { %p666_p2 = pneg %p665_p0 }
  0x22   : > { %p673_p4 = pnand %p672_p9, %p666_p2 }
  0x24   : > { %676 = shalt.err (!%p673_p4)
}
  0x25   : > { %577 = dma.hbm_to_vmem [thread:$0]  (!%p946_p6), %s1194_s1, 16, %s933_s23, [#allocation6]  }
  0x26   : > { %s677_s29 = scalar_lea.hbm %s1196_s3, 256 }
  0x27   : > { %p678_p10 = scmp.ne.s32.totalorder %s1196_s3, %s677_s29  ;;  %p684_p4 = scmp.lt.u32.totalorder %s677_s29, %s1196_s3 }
  0x29   : > { %p680_p11 = pnand %p678_p10, %p960_p8 }
  0x2b   : > { %p681_p12 = pneg %p680_p11 }
  0x2d   : > { %p686_p13 = pnand %p684_p4, %p681_p12 }
  0x2f   : > { %689 = shalt.err (!%p686_p13)
}
  0x30   : > { %s690_s23 = scalar_lea.vmem %s942_s27, 256  ;;  %p698_p7 = scmp.lt.s32.totalorder %s942_s27, %s942_s27 }
  0x31   : > { %p691_p0 = scmp.ne.s32.totalorder %s942_s27, %s690_s23  ;;  %p699_p9 = scmp.lt.s32.totalorder %s690_s23, %s690_s23 }
  0x33   : > { %p693_p2 = pnand %p691_p0, %p960_p8  ;;  %p700_p10 = por %p699_p9, %p698_p7 }
  0x35   : > { %p694_p5 = pneg %p693_p2 }
  0x37   : > { %p701_p11 = pnand %p700_p10, %p694_p5 }
  0x39   : > { %704 = shalt.err (!%p701_p11)
}
  0x3a   : > { %s870_s10 = smov 64   ;;  %s871_s12 = smov 4  }
  0x3b   : > { %583 = dma.hbm_to_vmem [thread:$0]  (!%p946_p6), %s1196_s3, 256, %s942_s27, [#allocation9], %s870_s10, %s870_s10, %s871_s12  }
  0x3c   : > { %s705_s17 = scalar_lea.hbm %s1195_s2, 16 }
  0x3d   : > { %p706_p12 = scmp.ne.s32.totalorder %s1195_s2, %s705_s17  ;;  %p712_p0 = scmp.lt.u32.totalorder %s705_s17, %s1195_s2 }
  0x3f   : > { %p708_p4 = pnand %p706_p12, %p960_p8 }
  0x41   : > { %p709_p13 = pneg %p708_p4 }
  0x43   : > { %p714_p2 = pnand %p712_p0, %p709_p13 }
  0x45   : > { %717 = shalt.err (!%p714_p2)
}
  0x46   : > { %s718_s27 = scalar_lea.vmem %s950_s30, 16  ;;  %s725_s7 = scalar_lea.vmem %s950_s30, 32 }
  0x47   : > { %p719_p5 = scmp.ne.s32.totalorder %s950_s30, %s718_s27  ;;  %p726_p10 = scmp.lt.s32.totalorder %s950_s30, %s950_s30 }
  0x48   : > { %p727_p11 = scmp.lt.s32.totalorder %s725_s7, %s718_s27 }
  0x49   : > { %p721_p7 = pnand %p719_p5, %p960_p8 }
  0x4a   : > { %p728_p12 = por %p727_p11, %p726_p10 }
  0x4b   : > { %p722_p9 = pneg %p721_p7 }
  0x4d   : > { %p729_p4 = pnand %p728_p12, %p722_p9 }
  0x4f   : > { %732 = shalt.err (!%p729_p4)
}
  0x50   : > { %580 = dma.hbm_to_vmem [thread:$0]  (!%p946_p6), %s1195_s2, 16, %s950_s30, [#allocation6]  }
  0x51   : > { %s872_s23 = smov [#allocation10]   ;;  %s733_s14 = scalar_lea.hbm %s1197_s4, 16 }
  0x52   : > { %s212_s10 = sshll.u32 %s872_s23, 4  ;;  %p734_p13 = scmp.ne.s32.totalorder %s1197_s4, %s733_s14  ;;  %s213_s10 = int_to_ptr.vmem [resolvable:$true] %s212_s10 }
  0x53   : > { %p740_p5 = scmp.lt.u32.totalorder %s733_s14, %s1197_s4 }
  0x54   : > { %p736_p0 = pnand %p734_p13, %p960_p8 }
  0x56   : > { %p737_p2 = pneg %p736_p0 }
  0x58   : > { %p742_p7 = pnand %p740_p5, %p737_p2 }
  0x5a   : > { %745 = shalt.err (!%p742_p7)
}
  0x5b   : > { %s746_s30 = scalar_lea.vmem %s213_s10, 16  ;;  %s753_s26 = scalar_lea.vmem %s213_s10, 32 }
  0x5c   : > { %p747_p9 = scmp.ne.s32.totalorder %s213_s10, %s746_s30  ;;  %p754_p12 = scmp.lt.s32.totalorder %s213_s10, %s213_s10 }
  0x5d   : > { %p755_p4 = scmp.lt.s32.totalorder %s753_s26, %s746_s30 }
  0x5e   : > { %p749_p10 = pnand %p747_p9, %p960_p8 }
  0x5f   : > { %p756_p1 = por %p755_p4, %p754_p12 }
  0x60   : > { %p750_p11 = pneg %p749_p10 }
  0x62   : > { %p757_p3 = pnand %p756_p1, %p750_p11 }
  0x64   : > { %760 = shalt.err (!%p757_p3)
}
  0x65   : > { %586 = dma.hbm_to_vmem [thread:$0]  (!%p946_p6), %s1197_s4, 16, %s213_s10, [#allocation9]  }
  0x66   : > { %s517_s11 = sadd.s32 4294967294, %s865_s21   ;;  %s1049_s28 = sadd.s32 1, %s865_s21  }
  0x67   : > { %s27_s27 = ssub.s32 %s865_s21, %s1049_s28  ;;  %s30_s7 = sadd.s32 1, %s861_s20 }
  0x68   : > { %p28_p1 = scmp.eq.s32.totalorder %s27_s27, 0  ;;  %p37_p3 = scmp.ne.s32.totalorder %s861_s20, %s857_s19 }
  0x69   : > { %p38_p8 = scmp.eq.s32.totalorder %s865_s21, 0  ;;  %p43_p13 = scmp.ne.s32.totalorder %s857_s19, %s853_s18 }
  0x6a   : > { %s1060_s8 = scalar_select %p28_p1, %s861_s20, %s30_s7  }
  0x6b   : > { %p1062_p0 = por %p38_p8, %p37_p3  ;;  %p1206_p2 = scmp.eq.s32.totalorder %s928_s24, 0 }
  0x6c   : > { %p151_p5 = scmp.eq.s32.totalorder %s928_s24, 1  ;;  %p157_p7 = scmp.eq.s32.totalorder %s517_s11, 1 }
  0x6d   : > { %p1068_p6 = por %p1206_p2, %p43_p13  ;;  %p599_p9 = scmp.lt.s32.totalorder %s865_s21, 2 }
  0x6e   : > { %s223_s10 = sand.u32 1, %s861_s20   ;;  %p1075_p10 = por %p151_p5, %p37_p3 }
  0x6f   : > { %p1079_p11 = por %p157_p7, %p43_p13  ;;  %s524_s14 = sshll.u32 %s223_s10, 3 }
  0x70   : > { %s1208_s12 = scalar_select %p1075_p10, 1, 0 }
  0x71   : > { %s1209_s13 = scalar_select %p1079_p11, 1, 0 }
  0x72   : > { %s525_s15 = sshll.u32 %s865_s21, 7  ;;  %s227_s30 = scalar_lea.vmem [#allocation2], %s524_s14 }
  0x73   : > { %s1087_s22 = scalar_lea.hbm %s1193_s0, %s525_s15  ;;  %s234_s26 = sshll.u32 %s227_s30, 4  ;;  %s1089_s26 = int_to_ptr.vmem [resolvable:$true] %s234_s26 }
  0x74   : > { %p1093_p12 = pnand %p599_p9, %p1062_p0  ;;  %s224_s6 = scalar_lea.sflag [#allocation3], %s223_s10 }
  0x75   : > { %s761_s11 = scalar_lea.hbm %s1087_s22, 128  ;;  %s766_s14 = scalar_lea.hbm %s1193_s0, 256 }
  0x76   : > { %p762_p4 = scmp.ne.s32.totalorder %s1087_s22, %s761_s11  ;;  %p763_p1 = pneg %p1093_p12 }
  0x77   : > { %p767_p13 = scmp.lt.u32.totalorder %s1087_s22, %s1193_s0  ;;  %p768_p0 = scmp.lt.u32.totalorder %s766_s14, %s761_s11 }
  0x78   : > { %p764_p3 = pnand %p763_p1, %p762_p4  ;;  %p770_p5 = scmp.lt.u32.totalorder %s761_s11, %s1087_s22 }
  0x79   : > { %p769_p2 = por %p768_p0, %p767_p13 }
  0x7a   : > { %p765_p8 = pneg %p764_p3 }
  0x7b   : > { %p771_p7 = por %p770_p5, %p769_p2 }
  0x7d   : > { %p772_p9 = pnand %p771_p7, %p765_p8 }
  0x7f   : > { %775 = shalt.err (!%p772_p9)
}
  0x80   : > { %s776_s10 = scalar_lea.vmem %s1089_s26, 128  ;;  %s873_s16 = smov [#allocation2]  }
  0x81   : > { %p777_p4 = scmp.ne.s32.totalorder %s1089_s26, %s776_s10  ;;  %s781_s17 = sshll.u32 %s873_s16, 4  ;;  %s782_s17 = int_to_ptr.vmem [resolvable:$false] %s781_s17 }
  0x82   : > { %s783_s30 = scalar_lea.vmem %s782_s17, 256  ;;  %p784_p10 = scmp.lt.s32.totalorder %s1089_s26, %s782_s17 }
  0x83   : > { %p779_p3 = pnand %p777_p4, %p763_p1  ;;  %p785_p13 = scmp.lt.s32.totalorder %s783_s30, %s776_s10 }
  0x85   : > { %p780_p11 = pneg %p779_p3  ;;  %p786_p0 = por %p785_p13, %p784_p10 }
  0x87   : > { %p787_p2 = pnand %p786_p0, %p780_p11 }
  0x89   : > { %790 = shalt.err (!%p787_p2)
}
  0x8a   : > { %590 = dma.hbm_to_vmem [thread:$0]  (!%p1093_p12), %s1087_s22, 128, %s1089_s26, %s224_s6  }
  0x8b   : > { %p1211_p8 = scmp.ne.s32.totalorder %s1202_s25, 0 }
  0x8c   : > { %s1125_s11 = sand.u32 (!%p1211_p8), 1, %s857_s19  }
  0x8d   : > { %243 = sbr.rel (%p1211_p8) target bundleno = 701 (0x2bd), region = 40  ;;  %s527_s27 = sshll.u32 (!%p1211_p8), %s1125_s11, 3 }
  0x8e   : > { %s246_s7 = scalar_lea.sflag (!%p1211_p8), [#allocation3], %s1125_s11  ;;  %s249_s14 = scalar_lea.vmem (!%p1211_p8), [#allocation2], %s527_s27 }
  0x94   : > { %836 = dma.done.wait (%p1068_p6), %s246_s7, 128  }
  0x95   : > { %838 = vsyncadd (%p1068_p6), %s246_s7, 4294967168  ;;  %p1212_p10 = scmp.eq.s32.totalorder %s928_s24, 0 }
  0x97   : > { %840 = dma.done.wait (%p1212_p10), [#allocation6], 32   ;;  %p1213_p11 = pmov %p1212_p10 }
  0x98   : > { %p1214_p12 = pmov %p1212_p10 }
  0x99   : > { %842 = vsyncadd (%p1213_p11), [#allocation6], 4294967264 }
  0x9a   : > { %844 = dma.done.wait (%p1214_p12), [#allocation9], 272   ;;  %p1215_p1 = pmov %p1212_p10 }
  0x9b   : > { %vm296_vm0 = vcmask 261120   ;;  %v293_v0 = vld [vmem:[%s249_s14] sm:$0xff]  ;;  %v645_v7 = vld [vmem:[#allocation8] sm:$0xff]   ;;  %v874_v8 = vmov 0.0   ;;  %vm875_vm1 = vmmov 0   ;;  %s532_s25 = sshll.u32 %s1125_s11, 2 }
  0x9c   : > { %846 = vsyncadd (%p1215_p1), [#allocation9], 4294967024  ;;  %v297_v1 = vsel %vm296_vm0, %v293_v0, 0.0  ;;  %546 = vmatprep.subr.bf16.mxu0 %v874_v8  ;;  %v646_v9 = vld [vmem:[#allocation8 + $0x8] sm:$0xff]   ;;  %550 = vmatprep.mubr.msk.bf16.mxu0 %vm875_vm1, %v874_v8  ;;  %v533_v14 = vld [vmem:[#allocation5] ss:$0 sm:$0xff] }
  0x9d   : > { %298 = vadd.xlane.f32.xlu0 %v297_v1  ;;  %547 = vmatpush3.bf16.msra.mxu0 %v645_v7  ;;  %v534_v16 = vld [vmem:[#allocation7] ss:$0 sm:$0xff]  ;;  %v535_v20 = vld [vmem:[#allocation10] ss:$0 sm:$0xff]  ;;  %s540_s23 = sshll.u32 %s928_s24, 6  ;;  %s291_s22 = scalar_lea.vmem [#allocation11], %s532_s25 }
  0x9e   : > { %548 = vmatprep.subr.bf16.mxu0 %v874_v8  ;;  %s409_s26 = sshll.u32 %s291_s22, 4  ;;  %vm393_vm2 = vcmask 257024   ;;  %s1149_s9 = scalar_lea.hbm %s1198_s5, %s540_s23  ;;  %s1151_s26 = int_to_ptr.vmem [resolvable:$true] %s409_s26 }
  0x9f   : > { %s396_s24 = scalar_lea.sflag [#allocation4], %s1125_s11  ;;  %s791_s15 = scalar_lea.vmem %s1151_s26, 64 }
  0xa0   : > { %p792_p6 = scmp.ne.s32.totalorder %s1151_s26, %s791_s15  ;;  %p1216_p5 = scmp.ne.s32.totalorder %s1208_s12, 0 }
  0xa1   : > { %549 = vmatpush3.bf16.msra.mxu0 %v646_v9  ;;  %s876_s10 = smov [#allocation11]  }
  0xa2   : > { %p793_p7 = pnand %p792_p6, %p1216_p5  ;;  %s795_s16 = sshll.u32 %s876_s10, 4  ;;  %s796_s16 = int_to_ptr.vmem [resolvable:$false] %s795_s16 }
  0xa3   : > { %s797_s17 = scalar_lea.vmem %s796_s16, 128  ;;  %p798_p4 = scmp.lt.s32.totalorder %s1151_s26, %s796_s16 }
  0xa4   : > { %p794_p9 = pneg %p793_p7  ;;  %p799_p3 = scmp.lt.s32.totalorder %s797_s17, %s791_s15 }
  0xa6   : > { %p800_p13 = por %p799_p3, %p798_p4 }
  0xa8   : > { %p801_p0 = pnand %p800_p13, %p794_p9 }
 0x12a   : > { %v299_v2 = vpop.xlane.xlu0 %298 }
 0x12b   : > { %v301_v3 = vmul.f32 0.03125, %v299_v2 }
 0x12d   : > { %v302_v4 = vsub.f32 %v293_v0, %v301_v3 }
 0x12f   : > { %v303_v5 = vmul.f32 %v302_v4, %v302_v4 }
 0x131   : > { %v304_v6 = vsel %vm296_vm0, %v303_v5, 0.0 }
 0x132   : > { %305 = vadd.xlane.f32.xlu0 %v304_v6 }
 0x1bf   : > { %v306_v10 = vpop.xlane.xlu0 %305 }
 0x1c0   : > { %v307_v11 = vmul.f32 0.03125, %v306_v10 }
 0x1c2   : > { %v308_v12 = vadd.f32 1e-05, %v307_v11 }
 0x1c4   : > { %647 = vrsqrt.f32 %v308_v12 }
 0x1ce   : > { %v648_v13 = vpop.eup %647 }
 0x1cf   : > { %v310_v15 = vmul.f32 %v648_v13, %v302_v4 }
 0x1d1   : > { %v317_v17 = vmul.f32 %v533_v14, %v310_v15 }
 0x1d3   : > { %v324_v18 = vadd.f32 %v534_v16, %v317_v17 }
 0x1d5   : > { %v325_v19 = vpack.c.bf16 %v324_v18, %v324_v18 }
 0x1d7   : > { %551 = vmatmul.mubr.msk.bf16.vlgmr.msra.gmra.mrb[0].mxu0 %vm296_vm0, %v325_v19 }
 0x2aa   : > { %v386_v21 = vpop.f32.mrb[0].mxu0 }
 0x2ab   : > { %v387_v22 = vadd.f32 %v535_v20, %v386_v21  ;;  %v552_v23 = vpop.f32.mrb[1].mxu0 }
 0x2ac   : > { %v389_v24 = vpop.f32.mrb[2].mxu0 }
 0x2ad   : > { %v392_v25 = vpack.c.bf16 %v387_v22, %v387_v22  ;;  %v553_v26 = vpop.f32.mrb[3].mxu0 }
 0x2af   : > { %394 = vst.msk [vmem:[%s291_s22] sm:$0xf] %vm393_vm2, %v392_v25 }
 0x2b0   : > { %804 = shalt.err (!%p801_p0)
}
 0x2b1   : > { %s805_s30 = scalar_lea.hbm %s1149_s9, 64  ;;  %s809_s7 = scalar_lea.hbm %s1198_s5, 128 }
 0x2b2   : > { %p806_p2 = scmp.ne.s32.totalorder %s1149_s9, %s805_s30  ;;  %p810_p11 = scmp.lt.u32.totalorder %s1149_s9, %s1198_s5 }
 0x2b3   : > { %p811_p12 = scmp.lt.u32.totalorder %s809_s7, %s805_s30  ;;  %p813_p6 = scmp.lt.u32.totalorder %s805_s30, %s1149_s9 }
 0x2b4   : > { %p807_p8 = pnand %p806_p2, %p1216_p5 }
 0x2b5   : > { %p812_p1 = por %p811_p12, %p810_p11 }
 0x2b6   : > { %p808_p10 = pneg %p807_p8 }
 0x2b7   : > { %p814_p7 = por %p813_p6, %p812_p1 }
 0x2b9   : > { %p815_p9 = pnand %p814_p7, %p808_p10 }
 0x2bb   : > { %818 = shalt.err (!%p815_p9)
}
 0x2bc   : > { %572 = dma.vmem_to_hbm [thread:$0]  (%p1216_p5), %s1151_s26, 64, %s1149_s9, %s396_s24  }
 0x2bd PF: > { %s421_s23 = sand.u32 1, %s853_s18   ;;  %p1217_p4 = scmp.ne.s32.totalorder %s1209_s13, 0 }
 0x2be   : > { %p1218_p3 = scmp.ge.s32.totalorder %s865_s21, 2  ;;  %s422_s22 = scalar_lea.sflag [#allocation4], %s421_s23 }
 0x2c0   : > { %p592_p13 = pnand %p1218_p3, %p1217_p4 }
 0x2c2   : > { %848 = dma.done.wait (!%p592_p13), %s422_s22, 64  }
 0x2c3   : > { %850 = vsyncadd (!%p592_p13), %s422_s22, 4294967232  ;;  %p20_p0 = scmp.ge.s32.totalorder %s1049_s28, 4   ;;  %s1219_s18 = smov %s857_s19 }
 0x2c4   : > { %s1220_s19 = smov %s861_s20  ;;  %s1221_s20 = smov %s1060_s8 }
 0x2c5   : > { %s1222_s21 = smov %s1049_s28  ;;  %22 = sbr.rel (!%p20_p0) target bundleno = 7 (0x7), region = 101 }
 0x2cc   :  { %427 = vsyncpa [#allocation3], 1 }
 0x2cd   :  { %429 = vsyncpa [#allocation3 + $0x1], 1 }
 0x2ce   :  { %430 = vsyncpa [#allocation6], 1 }
 0x2cf   :  { %431 = vsyncpa [#allocation9], 1 }
 0x2d0   :  { %432 = vsyncpa [#allocation4], 1 }
 0x2d1   :  { %434 = vsyncpa [#allocation4 + $0x1], 1 }

// kernel: decoder_forward.33
= control target key start
LH: loop header
LB: loop body
LE: loop exit
PB: predicated region body
PF: predicated region fallthrough
CT: control target
= control target key end

     0   :  { %8 = vsyncpa [#allocation3], 0  ;;  %s845_s0 = inlined_call_operand.hbm [shape: f32[16,32], index: 0, kind: input, shape index: {}]   ;;  %s846_s1 = inlined_call_operand.hbm [shape: f32[1,32], index: 1, kind: input, shape index: {}]   ;;  %s847_s2 = inlined_call_operand.hbm [shape: f32[1,32], index: 2, kind: input, shape index: {}]   ;;  %s848_s3 = inlined_call_operand.hbm [shape: f32[16,32], index: 3, kind: output, shape index: {}]  }
   0x1   :  { %10 = vsyncpa [#allocation3 + $0x1], 0 }
   0x2   :  { %11 = vsyncpa [#allocation6], 0 }
   0x3   :  { %12 = vsyncpa [#allocation4], 0 }
   0x4   :  { %14 = vsyncpa [#allocation4 + $0x1], 0  ;;  %s616_s12 = smov 0   ;;  %s618_s13 = smov 0  }
   0x5   :  { %s620_s14 = smov 0   ;;  %s622_s15 = smov 0  }
   0x6 LB: > { %s637_s16 = sadd.s32 4294967295, %s590_s15   ;;  %s347_s17 = sadd.s32 4294967294, %s590_s15   ;;  %s590_s15 = sphi %s622_s15, %s868_s15   ;;  %s586_s14 = sphi %s620_s14, %s867_s14   ;;  %s582_s13 = sphi %s618_s13, %s866_s13   ;;  %s578_s12 = sphi %s616_s12, %s865_s12  }
   0x7   : > { %p40_p0 = scmp.ne.s32.totalorder %s582_s13, %s578_s12  ;;  %p849_p1 = scmp.eq.s32.totalorder %s637_s16, 0 }
   0x8   : > { %p112_p3 = scmp.eq.s32.totalorder %s347_s17, 1  ;;  %p348_p5 = scmp.ge.s32.totalorder %s590_s15, 1 }
   0x9   : > { %p646_p4 = por %p849_p1, %p40_p0  ;;  %p119_p7 = scmp.lt.s32.totalorder %s590_s15, 3 }
   0xa   : > { %p651_p6 = por %p112_p3, %p40_p0  ;;  %s592_s21 = smov [#allocation5]  }
   0xb   : > { %s852_s18 = scalar_select %p646_p4, 1, 0 }
   0xc   : > { %s853_s19 = scalar_select %p651_p6, 1, 0 }
   0xd   : > { %p656_p8 = pnand %p348_p5, %p119_p7  ;;  %s132_s22 = sshll.u32 %s592_s21, 4  ;;  %s133_s22 = int_to_ptr.vmem [resolvable:$true] %s132_s22 }
   0xe   : > { %s593_s23 = smov [#allocation7]   ;;  %s672_s26 = sadd.s32 1, %s590_s15  }
   0xf   : > { %s854_s20 = scalar_select %p656_p8, 1, 0 }
  0x10   : > { %p377_p10 = pneg %p656_p8  ;;  %s143_s24 = sshll.u32 %s593_s23, 4  ;;  %s669_s24 = int_to_ptr.vmem [resolvable:$true] %s143_s24 }
  0x11   : > { %s24_s27 = ssub.s32 %s590_s15, %s672_s26  ;;  %s434_s30 = scalar_lea.hbm %s846_s1, 16 }
  0x12   : > { %p665_p11 = pnand %p377_p10, %p849_p1  ;;  %p435_p12 = scmp.ne.s32.totalorder %s846_s1, %s434_s30 }
  0x13   : > { %p441_p5 = scmp.lt.u32.totalorder %s434_s30, %s846_s1 }
  0x14   : > { %p436_p13 = pneg %p665_p11 }
  0x16   : > { %p437_p0 = pnand %p436_p13, %p435_p12 }
  0x18   : > { %p438_p3 = pneg %p437_p0 }
  0x1a   : > { %p443_p7 = pnand %p441_p5, %p438_p3 }
  0x1c   : > { %446 = shalt.err (!%p443_p7)
}
  0x1d   : > { %s447_s8 = scalar_lea.vmem %s133_s22, 16  ;;  %s454_s9 = scalar_lea.vmem %s133_s22, 32 }
  0x1e   : > { %p448_p10 = scmp.ne.s32.totalorder %s133_s22, %s447_s8  ;;  %p455_p2 = scmp.lt.s32.totalorder %s133_s22, %s133_s22 }
  0x1f   : > { %p456_p6 = scmp.lt.s32.totalorder %s454_s9, %s447_s8 }
  0x20   : > { %p450_p9 = pnand %p448_p10, %p436_p13 }
  0x21   : > { %p457_p4 = por %p456_p6, %p455_p2 }
  0x22   : > { %p451_p1 = pneg %p450_p9 }
  0x24   : > { %p458_p8 = pnand %p457_p4, %p451_p1 }
  0x26   : > { %461 = shalt.err (!%p458_p8)
}
  0x27   : > { %380 = dma.hbm_to_vmem [thread:$0]  (!%p665_p11), %s846_s1, 16, %s133_s22, [#allocation6]  }
  0x28   : > { %s462_s23 = scalar_lea.hbm %s847_s2, 16 }
  0x29   : > { %p463_p9 = scmp.ne.s32.totalorder %s847_s2, %s462_s23  ;;  %p469_p4 = scmp.lt.u32.totalorder %s462_s23, %s847_s2 }
  0x2b   : > { %p465_p2 = pnand %p463_p9, %p436_p13 }
  0x2d   : > { %p466_p1 = pneg %p465_p2 }
  0x2f   : > { %p471_p6 = pnand %p469_p4, %p466_p1 }
  0x31   : > { %474 = shalt.err (!%p471_p6)
}
  0x32   : > { %s475_s22 = scalar_lea.vmem %s669_s24, 16  ;;  %s482_s5 = scalar_lea.vmem %s669_s24, 32 }
  0x33   : > { %p476_p8 = scmp.ne.s32.totalorder %s669_s24, %s475_s22  ;;  %p483_p3 = scmp.lt.s32.totalorder %s669_s24, %s669_s24 }
  0x34   : > { %p484_p5 = scmp.lt.s32.totalorder %s482_s5, %s475_s22 }
  0x35   : > { %p478_p12 = pnand %p476_p8, %p436_p13 }
  0x36   : > { %p485_p7 = por %p484_p5, %p483_p3 }
  0x37   : > { %p479_p0 = pneg %p478_p12 }
  0x39   : > { %p486_p10 = pnand %p485_p7, %p479_p0 }
  0x3b   : > { %489 = shalt.err (!%p486_p10)
}
  0x3c   : > { %383 = dma.hbm_to_vmem [thread:$0]  (!%p665_p11), %s847_s2, 16, %s669_s24, [#allocation6]  }
  0x3d   : > { %p25_p13 = scmp.eq.s32.totalorder %s24_s27, 0  ;;  %s27_s8 = sadd.s32 1, %s586_s14 }
  0x3e   : > { %p34_p9 = scmp.ne.s32.totalorder %s586_s14, %s582_s13  ;;  %p35_p2 = scmp.eq.s32.totalorder %s590_s15, 0 }
  0x3f   : > { %s732_s25 = scalar_select %p25_p13, %s586_s14, %s27_s8  }
  0x40   : > { %p36_p1 = por %p35_p2, %p34_p9  ;;  %p856_p4 = scmp.eq.s32.totalorder %s637_s16, 1 }
  0x41   : > { %p394_p8 = scmp.lt.s32.totalorder %s590_s15, 2  ;;  %s154_s10 = sand.u32 1, %s586_s14  }
  0x42   : > { %p736_p6 = por %p856_p4, %p34_p9  ;;  %s352_s11 = sshll.u32 %s154_s10, 3 }
  0x43   : > { %s353_s17 = sshll.u32 %s590_s15, 7  ;;  %s158_s27 = scalar_lea.vmem [#allocation2], %s352_s11 }
  0x44   : > { %s746_s24 = scalar_lea.hbm %s845_s0, %s353_s17  ;;  %s165_s28 = sshll.u32 %s158_s27, 4  ;;  %s748_s28 = int_to_ptr.vmem [resolvable:$true] %s165_s28 }
  0x45   : > { %p750_p11 = pnand %p394_p8, %p36_p1  ;;  %s155_s30 = scalar_lea.sflag [#allocation3], %s154_s10 }
  0x46   : > { %s490_s4 = scalar_lea.hbm %s746_s24, 128  ;;  %s495_s6 = scalar_lea.hbm %s845_s0, 256 }
  0x47   : > { %p491_p12 = scmp.ne.s32.totalorder %s746_s24, %s490_s4  ;;  %p492_p0 = pneg %p750_p11 }
  0x48   : > { %p496_p7 = scmp.lt.u32.totalorder %s746_s24, %s845_s0  ;;  %p497_p10 = scmp.lt.u32.totalorder %s495_s6, %s490_s4 }
  0x49   : > { %p493_p3 = pnand %p492_p0, %p491_p12  ;;  %p499_p9 = scmp.lt.u32.totalorder %s490_s4, %s746_s24 }
  0x4a   : > { %p498_p13 = por %p497_p10, %p496_p7 }
  0x4b   : > { %p494_p5 = pneg %p493_p3 }
  0x4c   : > { %p500_p2 = por %p499_p9, %p498_p13 }
  0x4e   : > { %p501_p1 = pnand %p500_p2, %p494_p5 }
  0x50   : > { %504 = shalt.err (!%p501_p1)
}
  0x51   : > { %s505_s10 = scalar_lea.vmem %s748_s28, 128  ;;  %s594_s11 = smov [#allocation2]  }
  0x52   : > { %p506_p4 = scmp.ne.s32.totalorder %s748_s28, %s505_s10  ;;  %s510_s17 = sshll.u32 %s594_s11, 4  ;;  %s511_s17 = int_to_ptr.vmem [resolvable:$false] %s510_s17 }
  0x53   : > { %s512_s21 = scalar_lea.vmem %s511_s17, 256  ;;  %p513_p3 = scmp.lt.s32.totalorder %s748_s28, %s511_s17 }
  0x54   : > { %p508_p8 = pnand %p506_p4, %p492_p0  ;;  %p514_p7 = scmp.lt.s32.totalorder %s512_s21, %s505_s10 }
  0x56   : > { %p509_p12 = pneg %p508_p8  ;;  %p515_p10 = por %p514_p7, %p513_p3 }
  0x58   : > { %p516_p13 = pnand %p515_p10, %p509_p12 }
  0x5a   : > { %519 = shalt.err (!%p516_p13)
}
  0x5b   : > { %387 = dma.hbm_to_vmem [thread:$0]  (!%p750_p11), %s746_s24, 128, %s748_s28, %s155_s30  }
  0x5c   : > { %p859_p5 = scmp.ne.s32.totalorder %s854_s20, 0 }
  0x5d   : > { %s782_s23 = sand.u32 (!%p859_p5), 1, %s582_s13   ;;  %p860_p0 = scmp.ne.s32.totalorder (!%p859_p5), %s852_s18, 0 }
  0x5e   : > { %174 = sbr.rel (%p859_p5) target bundleno = 433 (0x1b1), region = 32  ;;  %s355_s27 = sshll.u32 (!%p859_p5), %s782_s23, 3 }
  0x5f   : > { %s177_s4 = scalar_lea.sflag (!%p859_p5), [#allocation3], %s782_s23  ;;  %s180_s22 = scalar_lea.vmem (!%p859_p5), [#allocation2], %s355_s27 }
  0x65   : > { %565 = dma.done.wait (%p860_p0), %s177_s4, 128  }
  0x66   : > { %567 = vsyncadd (%p860_p0), %s177_s4, 4294967168  ;;  %p861_p9 = scmp.eq.s32.totalorder %s637_s16, 0 }
  0x68   : > { %569 = dma.done.wait (%p861_p9), [#allocation6], 32   ;;  %p862_p11 = pmov %p861_p9 }
  0x69   : > { %vm214_vm0 = vcmask 261120   ;;  %v211_v0 = vld [vmem:[%s180_s22] sm:$0xff]  ;;  %v359_v11 = vld [vmem:[#allocation5] ss:$0 sm:$0xff]  ;;  %v360_v13 = vld [vmem:[#allocation7] ss:$0 sm:$0xff] }
  0x6a   : > { %571 = vsyncadd (%p862_p11), [#allocation6], 4294967264  ;;  %v215_v1 = vsel %vm214_vm0, %v211_v0, 0.0  ;;  %s362_s18 = sshll.u32 %s637_s16, 7  ;;  %s210_s20 = scalar_lea.vmem [#allocation8], %s355_s27 }
  0x6b   : > { %216 = vadd.xlane.f32.xlu0 %v215_v1  ;;  %s258_s24 = sshll.u32 %s210_s20, 4  ;;  %s800_s30 = scalar_lea.hbm %s848_s3, %s362_s18  ;;  %s802_s24 = int_to_ptr.vmem [resolvable:$true] %s258_s24 }
  0x6c   : > { %s245_s5 = scalar_lea.sflag [#allocation4], %s782_s23  ;;  %s520_s6 = scalar_lea.vmem %s802_s24, 128 }
  0x6d   : > { %p521_p2 = scmp.ne.s32.totalorder %s802_s24, %s520_s6  ;;  %s595_s16 = smov [#allocation8]  }
  0x6e   : > { %s524_s7 = sshll.u32 %s595_s16, 4  ;;  %s525_s7 = int_to_ptr.vmem [resolvable:$false] %s524_s7 }
  0x6f   : > { %p522_p1 = pnand %p521_p2, %p736_p6  ;;  %s526_s8 = scalar_lea.vmem %s525_s7, 256 }
  0x70   : > { %p527_p8 = scmp.lt.s32.totalorder %s802_s24, %s525_s7  ;;  %p528_p12 = scmp.lt.s32.totalorder %s526_s8, %s520_s6 }
  0x71   : > { %p523_p4 = pneg %p522_p1 }
  0x72   : > { %p529_p3 = por %p528_p12, %p527_p8 }
  0x74   : > { %p530_p7 = pnand %p529_p3, %p523_p4 }
  0xf8   : > { %v217_v2 = vpop.xlane.xlu0 %216 }
  0xf9   : > { %v219_v3 = vmul.f32 0.03125, %v217_v2 }
  0xfb   : > { %v220_v4 = vsub.f32 %v211_v0, %v219_v3 }
  0xfd   : > { %v221_v5 = vmul.f32 %v220_v4, %v220_v4 }
  0xff   : > { %v222_v6 = vsel %vm214_vm0, %v221_v5, 0.0 }
 0x100   : > { %223 = vadd.xlane.f32.xlu0 %v222_v6 }
 0x18d   : > { %v224_v7 = vpop.xlane.xlu0 %223 }
 0x18e   : > { %v225_v8 = vmul.f32 0.03125, %v224_v7 }
 0x190   : > { %v226_v9 = vadd.f32 1e-05, %v225_v8 }
 0x192   : > { %432 = vrsqrt.f32 %v226_v9 }
 0x19c   : > { %v433_v10 = vpop.eup %432 }
 0x19d   : > { %v228_v12 = vmul.f32 %v433_v10, %v220_v4 }
 0x19f   : > { %v235_v14 = vmul.f32 %v359_v11, %v228_v12 }
 0x1a1   : > { %v242_v15 = vadd.f32 %v360_v13, %v235_v14 }
 0x1a3   : > { %243 = vst.msk [vmem:[%s210_s20] sm:$0xff] %vm214_vm0, %v242_v15 }
 0x1a4   : > { %533 = shalt.err (!%p530_p7)
}
 0x1a5   : > { %s534_s10 = scalar_lea.hbm %s800_s30, 128  ;;  %s538_s21 = scalar_lea.hbm %s848_s3, 256 }
 0x1a6   : > { %p535_p10 = scmp.ne.s32.totalorder %s800_s30, %s534_s10  ;;  %p539_p0 = scmp.lt.u32.totalorder %s800_s30, %s848_s3 }
 0x1a7   : > { %p540_p9 = scmp.lt.u32.totalorder %s538_s21, %s534_s10  ;;  %p542_p2 = scmp.lt.u32.totalorder %s534_s10, %s800_s30 }
 0x1a8   : > { %p536_p13 = pnand %p535_p10, %p736_p6 }
 0x1a9   : > { %p541_p11 = por %p540_p9, %p539_p0 }
 0x1aa   : > { %p537_p5 = pneg %p536_p13 }
 0x1ab   : > { %p543_p1 = por %p542_p2, %p541_p11 }
 0x1ad   : > { %p544_p4 = pnand %p543_p1, %p537_p5 }
 0x1af   : > { %547 = shalt.err (!%p544_p4)
}
 0x1b0   : > { %375 = dma.vmem_to_hbm [thread:$0]  (%p736_p6), %s802_s24, 128, %s800_s30, %s245_s5  }
 0x1b1 PF: > { %s270_s4 = sand.u32 1, %s578_s12   ;;  %p863_p8 = scmp.ne.s32.totalorder %s853_s19, 0 }
 0x1b2   : > { %p864_p12 = scmp.ge.s32.totalorder %s590_s15, 2  ;;  %s271_s22 = scalar_lea.sflag [#allocation4], %s270_s4 }
 0x1b4   : > { %p389_p3 = pnand %p864_p12, %p863_p8 }
 0x1b6   : > { %573 = dma.done.wait (!%p389_p3), %s271_s22, 128  }
 0x1b7   : > { %575 = vsyncadd (!%p389_p3), %s271_s22, 4294967168  ;;  %p17_p7 = scmp.ge.s32.totalorder %s672_s26, 4   ;;  %s865_s12 = smov %s582_s13 }
 0x1b8   : > { %s866_s13 = smov %s586_s14  ;;  %s867_s14 = smov %s732_s25 }
 0x1b9   : > { %s868_s15 = smov %s672_s26  ;;  %19 = sbr.rel (!%p17_p7) target bundleno = 6 (0x6), region = 85 }
 0x1c0   :  { %276 = vsyncpa [#allocation3], 1 }
 0x1c1   :  { %278 = vsyncpa [#allocation3 + $0x1], 1 }
 0x1c2   :  { %279 = vsyncpa [#allocation6], 1 }
 0x1c3   :  { %280 = vsyncpa [#allocation4], 1 }
 0x1c4   :  { %282 = vsyncpa [#allocation4 + $0x1], 1 }

// kernel: decoder_forward.21
= control target key start
LH: loop header
LB: loop body
LE: loop exit
PB: predicated region body
PF: predicated region fallthrough
CT: control target
= control target key end

     0   :  { %8 = vsyncpa [#allocation3], 0  ;;  %s910_s0 = inlined_call_operand.hbm [shape: f32[16,32], index: 0, kind: input, shape index: {}]   ;;  %s911_s1 = inlined_call_operand.hbm [shape: bf16[32,64], index: 1, kind: input, shape index: {}]   ;;  %s912_s2 = inlined_call_operand.hbm [shape: f32[1,64], index: 2, kind: input, shape index: {}]   ;;  %s913_s3 = inlined_call_operand.hbm [shape: bf16[16,64], index: 3, kind: output, shape index: {}]  }
   0x1   :  { %10 = vsyncpa [#allocation3 + $0x1], 0 }
   0x2   :  { %11 = vsyncpa [#allocation6], 0 }
   0x3   :  { %12 = vsyncpa [#allocation4], 0 }
   0x4   :  { %14 = vsyncpa [#allocation4 + $0x1], 0  ;;  %s679_s12 = smov 0   ;;  %s681_s13 = smov 0  }
   0x5   :  { %s683_s14 = smov 0   ;;  %s685_s15 = smov 0  }
   0x6 LB: > { %s700_s16 = sadd.s32 4294967295, %s649_s15   ;;  %s389_s17 = sadd.s32 4294967294, %s649_s15   ;;  %s649_s15 = sphi %s685_s15, %s933_s15   ;;  %s645_s14 = sphi %s683_s14, %s932_s14   ;;  %s641_s13 = sphi %s681_s13, %s931_s13   ;;  %s637_s12 = sphi %s679_s12, %s930_s12  }
   0x7   : > { %p40_p0 = scmp.ne.s32.totalorder %s641_s13, %s637_s12  ;;  %p914_p1 = scmp.eq.s32.totalorder %s700_s16, 0 }
   0x8   : > { %p112_p3 = scmp.eq.s32.totalorder %s389_s17, 1  ;;  %p390_p5 = scmp.ge.s32.totalorder %s649_s15, 1 }
   0x9   : > { %p709_p4 = por %p914_p1, %p40_p0  ;;  %p119_p7 = scmp.lt.s32.totalorder %s649_s15, 3 }
   0xa   : > { %p714_p6 = por %p112_p3, %p40_p0  ;;  %s651_s21 = smov [#allocation5]  }
   0xb   : > { %s917_s18 = scalar_select %p709_p4, 1, 0 }
   0xc   : > { %s918_s19 = scalar_select %p714_p6, 1, 0 }
   0xd   : > { %p719_p8 = pnand %p390_p5, %p119_p7  ;;  %s131_s22 = sshll.u32 %s651_s21, 4  ;;  %s723_s22 = int_to_ptr.vmem [resolvable:$true] %s131_s22 }
   0xe   : > { %s652_s24 = smov [#allocation7]   ;;  %s493_s28 = scalar_lea.hbm %s911_s1, 256 }
   0xf   : > { %p432_p9 = pneg %p719_p8  ;;  %s145_s25 = sshll.u32 %s652_s24, 4  ;;  %s734_s25 = int_to_ptr.vmem [resolvable:$true] %s145_s25 }
  0x10   : > { %p494_p12 = scmp.ne.s32.totalorder %s911_s1, %s493_s28  ;;  %p500_p5 = scmp.lt.u32.totalorder %s493_s28, %s911_s1 }
  0x11   : > { %p730_p11 = pnand %p432_p9, %p914_p1 }
  0x13   : > { %p495_p13 = pneg %p730_p11 }
  0x15   : > { %p496_p0 = pnand %p495_p13, %p494_p12 }
  0x17   : > { %p497_p3 = pneg %p496_p0 }
  0x19   : > { %p502_p7 = pnand %p500_p5, %p497_p3 }
  0x1b   : > { %505 = shalt.err (!%p502_p7)
}
  0x1c   : > { %s506_s6 = scalar_lea.vmem %s723_s22, 256  ;;  %p514_p2 = scmp.lt.s32.totalorder %s723_s22, %s723_s22 }
  0x1d   : > { %p507_p9 = scmp.ne.s32.totalorder %s723_s22, %s506_s6  ;;  %p515_p12 = scmp.lt.s32.totalorder %s506_s6, %s506_s6 }
  0x1f   : > { %p509_p10 = pnand %p507_p9, %p495_p13  ;;  %p516_p0 = por %p515_p12, %p514_p2 }
  0x21   : > { %p510_p1 = pneg %p509_p10 }
  0x23   : > { %p517_p6 = pnand %p516_p0, %p510_p1 }
  0x25   : > { %520 = shalt.err (!%p517_p6)
}
  0x26   : > { %s653_s7 = smov 64   ;;  %s654_s8 = smov 4  }
  0x27   : > { %435 = dma.hbm_to_vmem [thread:$0]  (!%p730_p11), %s911_s1, 256, %s723_s22, [#allocation6], %s653_s7, %s653_s7, %s654_s8  }
  0x28   : > { %s521_s21 = scalar_lea.hbm %s912_s2, 16 }
  0x29   : > { %p522_p2 = scmp.ne.s32.totalorder %s912_s2, %s521_s21  ;;  %p528_p10 = scmp.lt.u32.totalorder %s521_s21, %s912_s2 }
  0x2b   : > { %p524_p1 = pnand %p522_p2, %p495_p13 }
  0x2d   : > { %p525_p6 = pneg %p524_p1 }
  0x2f   : > { %p530_p3 = pnand %p528_p10, %p525_p6 }
  0x31   : > { %533 = shalt.err (!%p530_p3)
}
  0x32   : > { %s534_s22 = scalar_lea.vmem %s734_s25, 16  ;;  %s541_s29 = scalar_lea.vmem %s734_s25, 32 }
  0x33   : > { %p535_p5 = scmp.ne.s32.totalorder %s734_s25, %s534_s22  ;;  %p542_p12 = scmp.lt.s32.totalorder %s734_s25, %s734_s25 }
  0x34   : > { %p543_p0 = scmp.lt.s32.totalorder %s541_s29, %s534_s22 }
  0x35   : > { %p537_p7 = pnand %p535_p5, %p495_p13 }
  0x36   : > { %p544_p2 = por %p543_p0, %p542_p12 }
  0x37   : > { %p538_p9 = pneg %p537_p7 }
  0x39   : > { %p545_p1 = pnand %p544_p2, %p538_p9 }
  0x3b   : > { %548 = shalt.err (!%p545_p1)
}
  0x3c   : > { %438 = dma.hbm_to_vmem [thread:$0]  (!%p730_p11), %s912_s2, 16, %s734_s25, [#allocation6]  }
  0x3d   : > { %s790_s5 = sadd.s32 1, %s649_s15   ;;  %s27_s23 = sadd.s32 1, %s645_s14 }
  0x3e   : > { %s24_s6 = ssub.s32 %s649_s15, %s790_s5  ;;  %p34_p13 = scmp.ne.s32.totalorder %s645_s14, %s641_s13 }
  0x3f   : > { %p25_p6 = scmp.eq.s32.totalorder %s24_s6, 0  ;;  %p35_p10 = scmp.eq.s32.totalorder %s649_s15, 0 }
  0x40   : > { %p921_p3 = scmp.eq.s32.totalorder %s700_s16, 1  ;;  %p449_p7 = scmp.lt.s32.totalorder %s649_s15, 2 }
  0x41   : > { %s806_s8 = scalar_select %p25_p6, %s645_s14, %s27_s23  }
  0x42   : > { %p800_p5 = por %p921_p3, %p34_p13  ;;  %p36_p9 = por %p35_p10, %p34_p13 }
  0x43   : > { %s156_s9 = sand.u32 1, %s645_s14   ;;  %s395_s25 = sshll.u32 %s649_s15, 7 }
  0x44   : > { %s922_s7 = scalar_select %p800_p5, 1, 0 }
  0x45   : > { %s394_s10 = sshll.u32 %s156_s9, 3  ;;  %s813_s21 = scalar_lea.hbm %s910_s0, %s395_s25 }
  0x46   : > { %s160_s24 = scalar_lea.vmem [#allocation2], %s394_s10  ;;  %p817_p11 = pnand %p449_p7, %p36_p9 }
  0x47   : > { %s167_s26 = sshll.u32 %s160_s24, 4  ;;  %s157_s28 = scalar_lea.sflag [#allocation3], %s156_s9  ;;  %s815_s26 = int_to_ptr.vmem [resolvable:$true] %s167_s26 }
  0x48   : > { %s549_s22 = scalar_lea.hbm %s813_s21, 128  ;;  %p551_p0 = pneg %p817_p11 }
  0x49   : > { %p550_p12 = scmp.ne.s32.totalorder %s813_s21, %s549_s22  ;;  %s554_s4 = scalar_lea.hbm %s910_s0, 256 }
  0x4a   : > { %p555_p13 = scmp.lt.u32.totalorder %s813_s21, %s910_s0  ;;  %p556_p6 = scmp.lt.u32.totalorder %s554_s4, %s549_s22 }
  0x4b   : > { %p552_p2 = pnand %p551_p0, %p550_p12  ;;  %p558_p3 = scmp.lt.u32.totalorder %s549_s22, %s813_s21 }
  0x4c   : > { %p557_p10 = por %p556_p6, %p555_p13 }
  0x4d   : > { %p553_p1 = pneg %p552_p2 }
  0x4e   : > { %p559_p7 = por %p558_p3, %p557_p10 }
  0x50   : > { %p560_p9 = pnand %p559_p7, %p553_p1 }
  0x52   : > { %563 = shalt.err (!%p560_p9)
}
  0x53   : > { %s564_s9 = scalar_lea.vmem %s815_s26, 128  ;;  %s655_s10 = smov [#allocation2]  }
  0x54   : > { %p565_p12 = scmp.ne.s32.totalorder %s815_s26, %s564_s9  ;;  %s569_s25 = sshll.u32 %s655_s10, 4  ;;  %s570_s25 = int_to_ptr.vmem [resolvable:$false] %s569_s25 }
  0x55   : > { %s571_s11 = scalar_lea.vmem %s570_s25, 256  ;;  %p572_p4 = scmp.lt.s32.totalorder %s815_s26, %s570_s25 }
  0x56   : > { %p567_p2 = pnand %p565_p12, %p551_p0  ;;  %p573_p13 = scmp.lt.s32.totalorder %s571_s11, %s564_s9 }
  0x58   : > { %p568_p5 = pneg %p567_p2  ;;  %p574_p6 = por %p573_p13, %p572_p4 }
  0x5a   : > { %p575_p10 = pnand %p574_p6, %p568_p5 }
  0x5c   : > { %578 = shalt.err (!%p575_p10)
}
  0x5d   : > { %442 = dma.hbm_to_vmem [thread:$0]  (!%p817_p11), %s813_s21, 128, %s815_s26, %s157_s28  }
  0x5e   : > { %176 = sbr.rel (%p719_p8) target bundleno = 344 (0x158), region = 32  ;;  %s849_s17 = sand.u32 (!%p719_p8), 1, %s641_s13  }
  0x5f   : > { %s397_s24 = sshll.u32 (!%p719_p8), %s849_s17, 3  ;;  %s179_s22 = scalar_lea.sflag (!%p719_p8), [#allocation3], %s849_s17 }
  0x60   : > { %s182_s29 = scalar_lea.vmem (!%p719_p8), [#allocation2], %s397_s24  ;;  %p924_p4 = scmp.ne.s32.totalorder (!%p719_p8), %s917_s18, 0 }
  0x65   : > { %624 = dma.done.wait (%p924_p4), %s179_s22, 128  }
  0x66   : > { %626 = vsyncadd (%p924_p4), %s179_s22, 4294967168  ;;  %p925_p5 = scmp.eq.s32.totalorder %s700_s16, 0 }
  0x68   : > { %628 = dma.done.wait (%p925_p5), [#allocation6], 272   ;;  %p926_p11 = pmov %p925_p5 }
  0x69   : > { %v656_v0 = vmov 0.0   ;;  %vm657_vm0 = vmmov 0   ;;  %v491_v1 = vld [vmem:[#allocation5] sm:$0xff]   ;;  %v492_v2 = vld [vmem:[#allocation5 + $0x8] sm:$0xff]   ;;  %v214_v3 = vld [vmem:[%s182_s29] sm:$0xff]  ;;  %vm239_vm1 = vcmask 261120  }
  0x6a   : > { %630 = vsyncadd (%p926_p11), [#allocation6], 4294967024  ;;  %412 = vmatprep.subr.bf16.mxu0 %v656_v0  ;;  %416 = vmatprep.mubr.msk.bf16.mxu0 %vm657_vm0, %v656_v0  ;;  %v215_v4 = vpack.c.bf16 %v214_v3, %v214_v3  ;;  %s400_s18 = sshll.u32 %s849_s17, 2  ;;  %v401_v5 = vld [vmem:[#allocation7] ss:$0 sm:$0xff]  ;;  %s406_s20 = sshll.u32 %s700_s16, 6 }
  0x6b   : > { %413 = vmatpush3.bf16.msra.mxu0 %v491_v1  ;;  %s212_s21 = scalar_lea.vmem [#allocation8], %s400_s18  ;;  %vm284_vm2 = vcmask 519168   ;;  %s866_s30 = scalar_lea.hbm %s913_s3, %s406_s20 }
  0x6c   : > { %414 = vmatprep.subr.bf16.mxu0 %v656_v0  ;;  %s300_s26 = sshll.u32 %s212_s21, 4  ;;  %s287_s16 = scalar_lea.sflag [#allocation4], %s849_s17  ;;  %s868_s26 = int_to_ptr.vmem [resolvable:$true] %s300_s26 }
  0x6d   : > { %s579_s4 = scalar_lea.vmem %s868_s26, 64  ;;  %p927_p0 = scmp.ne.s32.totalorder %s922_s7, 0 }
  0x6e   : > { %p580_p8 = scmp.ne.s32.totalorder %s868_s26, %s579_s4  ;;  %s658_s23 = smov [#allocation8]  }
  0x6f   : > { %415 = vmatpush3.bf16.msra.mxu0 %v492_v2  ;;  %s583_s6 = sshll.u32 %s658_s23, 4  ;;  %s584_s6 = int_to_ptr.vmem [resolvable:$false] %s583_s6 }
  0x70   : > { %p581_p1 = pnand %p580_p8, %p927_p0  ;;  %s585_s9 = scalar_lea.vmem %s584_s6, 128 }
  0x71   : > { %p586_p7 = scmp.lt.s32.totalorder %s868_s26, %s584_s6  ;;  %p587_p9 = scmp.lt.s32.totalorder %s585_s9, %s579_s4 }
  0x72   : > { %417 = vmatmul.mubr.msk.bf16.vlgmr.msra.gmra.mrb[0].mxu0 %vm239_vm1, %v215_v4  ;;  %p582_p3 = pneg %p581_p1 }
  0x73   : > { %p588_p12 = por %p587_p9, %p586_p7 }
  0x75   : > { %p589_p2 = pnand %p588_p12, %p582_p3 }
 0x145   : > { %v277_v6 = vpop.f32.mrb[0].mxu0 }
 0x146   : > { %v278_v7 = vadd.f32 %v401_v5, %v277_v6  ;;  %v418_v8 = vpop.f32.mrb[1].mxu0 }
 0x147   : > { %v280_v9 = vpop.f32.mrb[2].mxu0 }
 0x148   : > { %v283_v10 = vpack.c.bf16 %v278_v7, %v278_v7  ;;  %v419_v11 = vpop.f32.mrb[3].mxu0 }
 0x14a   : > { %285 = vst.msk [vmem:[%s212_s21] sm:$0xf] %vm284_vm2, %v283_v10 }
 0x14b   : > { %592 = shalt.err (!%p589_p2)
}
 0x14c   : > { %s593_s10 = scalar_lea.hbm %s866_s30, 64  ;;  %s597_s17 = scalar_lea.hbm %s913_s3, 128 }
 0x14d   : > { %p594_p13 = scmp.ne.s32.totalorder %s866_s30, %s593_s10  ;;  %p598_p4 = scmp.lt.u32.totalorder %s866_s30, %s913_s3 }
 0x14e   : > { %p599_p5 = scmp.lt.u32.totalorder %s597_s17, %s593_s10  ;;  %p601_p8 = scmp.lt.u32.totalorder %s593_s10, %s866_s30 }
 0x14f   : > { %p595_p6 = pnand %p594_p13, %p927_p0 }
 0x150   : > { %p600_p11 = por %p599_p5, %p598_p4 }
 0x151   : > { %p596_p10 = pneg %p595_p6 }
 0x152   : > { %p602_p1 = por %p601_p8, %p600_p11 }
 0x154   : > { %p603_p3 = pnand %p602_p1, %p596_p10 }
 0x156   : > { %606 = shalt.err (!%p603_p3)
}
 0x157   : > { %430 = dma.vmem_to_hbm [thread:$0]  (%p927_p0), %s868_s26, 64, %s866_s30, %s287_s16  }
 0x158 PF: > { %s312_s29 = sand.u32 1, %s637_s12   ;;  %p928_p7 = scmp.ne.s32.totalorder %s918_s19, 0 }
 0x159   : > { %p929_p9 = scmp.ge.s32.totalorder %s649_s15, 2  ;;  %s313_s18 = scalar_lea.sflag [#allocation4], %s312_s29 }
 0x15b   : > { %p444_p12 = pnand %p929_p9, %p928_p7 }
 0x15d   : > { %632 = dma.done.wait (!%p444_p12), %s313_s18, 64  }
 0x15e   : > { %634 = vsyncadd (!%p444_p12), %s313_s18, 4294967232  ;;  %p17_p2 = scmp.ge.s32.totalorder %s790_s5, 4   ;;  %s930_s12 = smov %s641_s13 }
 0x15f   : > { %s931_s13 = smov %s645_s14  ;;  %s932_s14 = smov %s806_s8 }
 0x160   : > { %s933_s15 = smov %s790_s5  ;;  %19 = sbr.rel (!%p17_p2) target bundleno = 6 (0x6), region = 85 }
 0x167   :  { %318 = vsyncpa [#allocation3], 1 }
 0x168   :  { %320 = vsyncpa [#allocation3 + $0x1], 1 }
 0x169   :  { %321 = vsyncpa [#allocation6], 1 }
 0x16a   :  { %322 = vsyncpa [#allocation4], 1 }
 0x16b   :  { %324 = vsyncpa [#allocation4 + $0x1], 1 }

// kernel: decoder_forward.22
= control target key start
LH: loop header
LB: loop body
LE: loop exit
PB: predicated region body
PF: predicated region fallthrough
CT: control target
= control target key end

     0   :  { %s1538_s0 = inlined_call_operand.hbm [shape: bf16[2,8,32], index: 0, kind: input, shape index: {}]   ;;  %s1539_s1 = inlined_call_operand.hbm [shape: bf16[2,8,64], index: 1, kind: input, shape index: {}]   ;;  %s1540_s2 = inlined_call_operand.hbm [shape: bf16[2,1,1,8], index: 2, kind: input, shape index: {}]   ;;  %s1541_s3 = inlined_call_operand.hbm [shape: bf16[2,8,32], index: 3, kind: output, shape index: {}]  }
   0x1   :  { %1546 = sst [smem:[#allocation13_spill]] %s1538_s0 }
   0x2   :  { %1547 = sst [smem:[#allocation14_spill]] %s1539_s1 }
   0x3   :  { %8 = vsyncpa [#allocation3], 0 }
   0x4   :  { %10 = vsyncpa [#allocation3 + $0x1], 0 }
   0x5   :  { %11 = vsyncpa [#allocation6], 0 }
   0x6   :  { %13 = vsyncpa [#allocation6 + $0x1], 0 }
   0x7   :  { %14 = vsyncpa [#allocation4], 0 }
   0x8   :  { %16 = vsyncpa [#allocation4 + $0x1], 0  ;;  %s1240_s12 = smov 0   ;;  %s1242_s13 = smov 0  }
   0x9   :  { %s1244_s14 = smov 0   ;;  %s1246_s15 = smov 0  }
   0xa LB: > { %s1261_s16 = sadd.s32 4294967295, %s1202_s15   ;;  %s862_s17 = sadd.s32 4294967294, %s1202_s15   ;;  %s1202_s15 = sphi %s1246_s15, %s1569_s15   ;;  %s1198_s14 = sphi %s1244_s14, %s1568_s14   ;;  %s1194_s13 = sphi %s1242_s13, %s1567_s13   ;;  %s1190_s12 = sphi %s1240_s12, %s1566_s12  }
   0xb   : > { %s1265_s18 = sadd.s32 1, %s1202_s15   ;;  %s29_s19 = sadd.s32 1, %s1198_s14 }
   0xc   : > { %s26_s20 = ssub.s32 %s1202_s15, %s1265_s18  ;;  %p36_p0 = scmp.ne.s32.totalorder %s1198_s14, %s1194_s13 }
   0xd   : > { %p27_p1 = scmp.eq.s32.totalorder %s26_s20, 0  ;;  %p37_p2 = scmp.eq.s32.totalorder %s1202_s15, 0 }
   0xe   : > { %p42_p3 = scmp.ne.s32.totalorder %s1194_s13, %s1190_s12  ;;  %p43_p4 = scmp.eq.s32.totalorder %s1261_s16, 0 }
   0xf   : > { %s1277_s21 = scalar_select %p27_p1, %s1198_s14, %s29_s19  }
  0x10   : > { %p38_p5 = por %p37_p2, %p36_p0  ;;  %p1279_p6 = por %p43_p4, %p42_p3 }
  0x11   : > { %1548 = sst [smem:[#allocation12_spill]] %s1277_s21  ;;  %p118_p7 = scmp.eq.s32.totalorder %s1261_s16, 1 }
  0x12   : > { %s1549_s22 = scalar_select %p1279_p6, 1, 0 }
  0x13   : > { %p124_p8 = scmp.eq.s32.totalorder %s862_s17, 1  ;;  %p979_p10 = scmp.lt.s32.totalorder %s1202_s15, 2 }
  0x14   : > { %p1286_p11 = por %p118_p7, %p36_p0  ;;  %s1295_s25 = sand.u32 1, %s1198_s14  }
  0x15   : > { %p1290_p12 = por %p124_p8, %p42_p3  ;;  %s866_s26 = sshll.u32 %s1202_s15, 6 }
  0x16   : > { %s1550_s23 = scalar_select %p1286_p11, 1, 0 }
  0x17   : > { %s1551_s24 = scalar_select %p1290_p12, 1, 0 }
  0x18   : > { %s865_s27 = sshll.u32 %s1295_s25, 2  ;;  %p1299_p13 = pnand %p979_p10, %p38_p5 }
  0x19   : > { %s162_s29 = sand.u32 1, %s1202_s15   ;;  %s1553_s1 = sld [smem:[#allocation14_spill]] }
  0x1a   : > { %s1552_s28 = scalar_select %p1299_p13, 1, 0 }
  0x1b   : > { %s166_s6 = scalar_lea.vmem [#allocation5], %s865_s27  ;;  %s1316_s8 = scalar_lea.sflag [#allocation6], %s162_s29 }
  0x1c   : > { %s173_s7 = sshll.u32 %s166_s6, 4  ;;  %p1322_p2 = pneg %p1299_p13  ;;  %s1313_s7 = int_to_ptr.vmem [resolvable:$true] %s173_s7 }
  0x1f   : > { %s1309_s5 = scalar_lea.hbm %s1553_s1, %s866_s26  ;;  %s1047_s19 = scalar_lea.hbm %s1553_s1, 128 }
  0x20   : > { %s1042_s9 = scalar_lea.hbm %s1309_s5, 64  ;;  %p1048_p5 = scmp.lt.u32.totalorder %s1309_s5, %s1553_s1 }
  0x21   : > { %p1043_p1 = scmp.ne.s32.totalorder %s1309_s5, %s1042_s9  ;;  %p1049_p7 = scmp.lt.u32.totalorder %s1047_s19, %s1042_s9 }
  0x22   : > { %p1051_p10 = scmp.lt.u32.totalorder %s1042_s9, %s1309_s5 }
  0x23   : > { %p1045_p3 = pnand %p1322_p2, %p1043_p1  ;;  %p1050_p8 = por %p1049_p7, %p1048_p5 }
  0x25   : > { %p1046_p4 = pneg %p1045_p3  ;;  %p1052_p9 = por %p1051_p10, %p1050_p8 }
  0x27   : > { %p1053_p0 = pnand %p1052_p9, %p1046_p4 }
  0x29   : > { %1056 = shalt.err (!%p1053_p0)
}
  0x2a   : > { %s1057_s29 = scalar_lea.vmem %s1313_s7, 64  ;;  %s1204_s4 = smov [#allocation5]  }
  0x2b   : > { %p1058_p1 = scmp.ne.s32.totalorder %s1313_s7, %s1057_s29  ;;  %s1062_s6 = sshll.u32 %s1204_s4, 4  ;;  %s1063_s6 = int_to_ptr.vmem [resolvable:$false] %s1062_s6 }
  0x2c   : > { %s1064_s11 = scalar_lea.vmem %s1063_s6, 128  ;;  %p1065_p11 = scmp.lt.s32.totalorder %s1313_s7, %s1063_s6 }
  0x2d   : > { %p1060_p3 = pnand %p1058_p1, %p1322_p2  ;;  %p1066_p6 = scmp.lt.s32.totalorder %s1064_s11, %s1057_s29 }
  0x2f   : > { %p1061_p12 = pneg %p1060_p3  ;;  %p1067_p5 = por %p1066_p6, %p1065_p11 }
  0x31   : > { %p1068_p7 = pnand %p1067_p5, %p1061_p12 }
  0x33   : > { %1071 = shalt.err (!%p1068_p7)
}
  0x34   : > { %971 = dma.hbm_to_vmem [thread:$0]  (!%p1299_p13), %s1309_s5, 64, %s1313_s7, %s1316_s8  }
  0x35   : > { %p195_p9 = scmp.lt.s32.totalorder %s1202_s15, 3  ;;  %s1555_s0 = sld [smem:[#allocation13_spill]] }
  0x36   : > { %p1556_p6 = scmp.ge.s32.totalorder %s1202_s15, 1  ;;  %s148_s30 = scalar_lea.vmem [#allocation2], %s865_s27 }
  0x37   : > { %s155_s29 = sshll.u32 %s148_s30, 4  ;;  %s145_s5 = scalar_lea.sflag [#allocation3], %s1295_s25  ;;  %s156_s29 = int_to_ptr.vmem [resolvable:$true] %s155_s29 }
  0x38   : > { %p1356_p11 = pnand %p1556_p6, %p195_p9 }
  0x3a   : > { %s1557_s20 = scalar_select %p1356_p11, 1, 0 }
  0x3b   : > { %s1352_s19 = scalar_lea.hbm %s1555_s0, %s866_s26  ;;  %s1077_s6 = scalar_lea.hbm %s1555_s0, 128 }
  0x3c   : > { %s1072_s7 = scalar_lea.hbm %s1352_s19, 64  ;;  %p1078_p8 = scmp.lt.u32.totalorder %s1352_s19, %s1555_s0 }
  0x3d   : > { %p1073_p12 = scmp.ne.s32.totalorder %s1352_s19, %s1072_s7  ;;  %p1079_p10 = scmp.lt.u32.totalorder %s1077_s6, %s1072_s7 }
  0x3e   : > { %p1081_p3 = scmp.lt.u32.totalorder %s1072_s7, %s1352_s19 }
  0x3f   : > { %p1075_p0 = pnand %p1073_p12, %p1322_p2  ;;  %p1080_p1 = por %p1079_p10, %p1078_p8 }
  0x41   : > { %p1076_p4 = pneg %p1075_p0  ;;  %p1082_p5 = por %p1081_p3, %p1080_p1 }
  0x43   : > { %p1083_p7 = pnand %p1082_p5, %p1076_p4 }
  0x45   : > { %1086 = shalt.err (!%p1083_p7)
}
  0x46   : > { %s1087_s27 = scalar_lea.vmem %s156_s29, 64  ;;  %s1205_s17 = smov [#allocation2]  }
  0x47   : > { %p1088_p9 = scmp.ne.s32.totalorder %s156_s29, %s1087_s27  ;;  %s1092_s30 = sshll.u32 %s1205_s17, 4  ;;  %s1093_s30 = int_to_ptr.vmem [resolvable:$false] %s1092_s30 }
  0x48   : > { %s1094_s26 = scalar_lea.vmem %s1093_s30, 128  ;;  %p1095_p0 = scmp.lt.s32.totalorder %s156_s29, %s1093_s30 }
  0x49   : > { %p1090_p6 = pnand %p1088_p9, %p1322_p2  ;;  %p1096_p11 = scmp.lt.s32.totalorder %s1094_s26, %s1087_s27 }
  0x4b   : > { %p1091_p12 = pneg %p1090_p6  ;;  %p1097_p13 = por %p1096_p11, %p1095_p0 }
  0x4d   : > { %p1098_p8 = pnand %p1097_p13, %p1091_p12 }
  0x4f   : > { %1101 = shalt.err (!%p1098_p8)
}
  0x50   : > { %p1558_p10 = scmp.ne.s32.totalorder %s1552_s28, 0  ;;  %s869_s7 = sshll.u32 %s1202_s15, 4 }
  0x51   : > { %s183_s4 = scalar_lea.vmem [#allocation7], %s1295_s25  ;;  %s188_s17 = scalar_lea.hbm %s1540_s2, %s869_s7 }
  0x52   : > { %968 = dma.hbm_to_vmem [thread:$0]  (!%p1558_p10), %s1352_s19, 64, %s156_s29, %s145_s5  }
  0x53   : > { %s190_s6 = sshll.u32 %s183_s4, 4  ;;  %s1102_s30 = scalar_lea.hbm %s188_s17, 16  ;;  %s191_s6 = int_to_ptr.vmem [resolvable:$true] %s190_s6 }
  0x54   : > { %p1103_p4 = scmp.ne.s32.totalorder %s188_s17, %s1102_s30  ;;  %s1107_s0 = scalar_lea.hbm %s1540_s2, 32 }
  0x55   : > { %p1108_p1 = scmp.lt.u32.totalorder %s188_s17, %s1540_s2  ;;  %p1109_p3 = scmp.lt.u32.totalorder %s1107_s0, %s1102_s30 }
  0x56   : > { %p1105_p13 = pnand %p1103_p4, %p1322_p2  ;;  %p1111_p7 = scmp.lt.u32.totalorder %s1102_s30, %s188_s17 }
  0x57   : > { %p1110_p5 = por %p1109_p3, %p1108_p1 }
  0x58   : > { %p1106_p11 = pneg %p1105_p13 }
  0x59   : > { %p1112_p9 = por %p1111_p7, %p1110_p5 }
  0x5b   : > { %p1113_p6 = pnand %p1112_p9, %p1106_p11 }
  0x5d   : > { %1116 = shalt.err (!%p1113_p6)
}
  0x5e   : > { %s1117_s25 = scalar_lea.vmem %s191_s6, 16  ;;  %s1206_s19 = smov [#allocation7]  }
  0x5f   : > { %p1118_p12 = scmp.ne.s32.totalorder %s191_s6, %s1117_s25  ;;  %s1122_s29 = sshll.u32 %s1206_s19, 4  ;;  %s1123_s29 = int_to_ptr.vmem [resolvable:$false] %s1122_s29 }
  0x60   : > { %s1124_s5 = scalar_lea.vmem %s1123_s29, 32  ;;  %p1125_p4 = scmp.lt.s32.totalorder %s191_s6, %s1123_s29 }
  0x61   : > { %p1120_p0 = pnand %p1118_p12, %p1322_p2  ;;  %p1126_p13 = scmp.lt.s32.totalorder %s1124_s5, %s1117_s25 }
  0x63   : > { %p1121_p8 = pneg %p1120_p0  ;;  %p1127_p10 = por %p1126_p13, %p1125_p4 }
  0x65   : > { %p1128_p1 = pnand %p1127_p10, %p1121_p8 }
  0x67   : > { %1131 = shalt.err (!%p1128_p1)
}
  0x68   : > { %p1559_p3 = scmp.ne.s32.totalorder %s1552_s28, 0  ;;  %p1560_p11 = scmp.ne.s32.totalorder %s1557_s20, 0 }
  0x69   : > { %s1401_s0 = sand.u32 (!%p1560_p11), 1, %s1194_s13   ;;  %p1561_p2 = scmp.ne.s32.totalorder (!%p1560_p11), %s1549_s22, 0 }
  0x6a   : > { %974 = dma.hbm_to_vmem [thread:$0]  (!%p1559_p3), %s188_s17, 16, %s191_s6, %s1316_s8  }
  0x6b   : > { %199 = sbr.rel (%p1560_p11) target bundleno = 1556 (0x614), region = 32  ;;  %s1404_s1 = sshll.u32 (!%p1560_p11), %s1401_s0, 2 }
  0x6c   : > { %s202_s21 = scalar_lea.sflag (!%p1560_p11), [#allocation3], %s1401_s0  ;;  %s205_s10 = scalar_lea.vmem (!%p1560_p11), [#allocation2], %s1404_s1 }
  0x72   : > { %1177 = dma.done.wait (%p1561_p2), %s202_s21, 64  }
  0x73   : > { %1179 = vsyncadd (%p1561_p2), %s202_s21, 4294967232  ;;  %s210_s28 = sand.u32 1, %s1261_s16   ;;  %s214_s20 = scalar_lea.vmem [#allocation5], %s1404_s1 }
  0x74   : > { %s211_s8 = scalar_lea.sflag [#allocation6], %s210_s28 }
  0x75   : > { %1181 = dma.done.wait (%p1561_p2), %s211_s8, 80  }
  0x76   : > { %1183 = vsyncadd (%p1561_p2), %s211_s8, 4294967216  ;;  %v1207_v0 = vmov 0.0   ;;  %vm1208_vm0 = vmmov 0   ;;  %vm266_vm1 = vcmask 64512   ;;  %v255_v1 = vld [vmem:[%s214_s20] sm:$0xf]  ;;  %v262_v7 = vlaneseq }
  0x77   : > { %909 = vmatprep.subr.bf16.mxu0 %v1207_v0  ;;  %911 = vmatprep.mubr.msk.bf16.mxu0 %vm1208_vm0, %v1207_v0  ;;  %v256_v2 = vld [vmem:[%s205_s10] sm:$0xf]  ;;  %v271_v3 = vsel %vm266_vm1, %v255_v1, 0  ;;  %s222_s22 = scalar_lea.vmem [#allocation7], %s1401_s0  ;;  %v1434_v19 = vcombine.low %v255_v1, %v255_v1  ;;  %s1209_s7 = smov 96   ;;  %vm333_vm2 = vcmask 1043456  }
  0x78   : > { %915 = vmatprep.subr.bf16.mxu1 %v1207_v0  ;;  %917 = vmatprep.mubr.msk.bf16.mxu1 %vm1208_vm0, %v1207_v0  ;;  %v259_v4 = vunpack.c.l.bf16 %v256_v2  ;;  %v263_v8 = vshrl.u32 %v262_v7, 7  ;;  %v257_v9 = vld [vmem:[%s222_s22] sm:$0x1]  ;;  %s1210_s4 = smov 120   ;;  %s1211_s6 = smov 112   ;;  %vm378_vm3 = vcmask 60416  }
  0x79   : > { %910 = vmatpush3.bf16.xpose.msra.mxu0 %v271_v3  ;;  %v258_v10 = vunpack.c.l.bf16 %v257_v9  ;;  %328 = vrot.lane.b32.xlu1 %v1434_v19, %s1209_s7  ;;  %s1212_s11 = smov 104   ;;  %s1459_s9 = scalar_lea.vmem [#allocation8], %s1404_s1  ;;  %vm498_vm4 = vcmask 126016   ;;  %vm617_vm5 = vcmask 191616   ;;  %vm736_vm6 = vcmask 257216  }
  0x7a   : > { %v260_v5 = vmul.f32 0.35355338, %v259_v4  ;;  %927 = vmatprep.subr.bf16.mxu0 %v1207_v0  ;;  %v264_v11 = vsub.s32 0, %v263_v8  ;;  %s1213_s17 = smov 88   ;;  %s1214_s30 = smov 72  }
  0x7b   : > { %s1215_s27 = smov 80   ;;  %s1216_s26 = smov 8  }
  0x7c   : > { %v261_v6 = vpack.c.bf16 %v260_v5, %v260_v5  ;;  %v1430_v12 = vrot.slane %v258_v10, %v264_v11  ;;  %s1217_s25 = smov 16   ;;  %s1218_s19 = smov 24  }
  0x7d   : > { %383 = vrot.lane.b32.xlu1 %v1434_v19, %s1210_s4  ;;  %s887_s29 = sshll.u32 %s1261_s16, 6  ;;  %s752_s5 = sshll.u32 %s1459_s9, 4  ;;  %s1495_s5 = int_to_ptr.vmem [resolvable:$true] %s752_s5 }
  0x7e   : > { %s1493_s10 = scalar_lea.hbm %s1541_s3, %s887_s29  ;;  %s739_s28 = scalar_lea.sflag [#allocation4], %s1401_s0 }
  0x7f   : > { %s1132_s8 = scalar_lea.vmem %s1495_s5, 64  ;;  %p1562_p5 = scmp.ne.s32.totalorder %s1550_s23, 0 }
  0x80   : > { %912 = vmatmul.mubr.msk.bf16.vlgmr.msra.gmra.mrb[0].mxu0 %vm266_vm1, %v261_v6  ;;  %p1133_p10 = scmp.ne.s32.totalorder %s1495_s5, %s1132_s8  ;;  %s1219_s16 = smov [#allocation8]  }
  0x81   : > { %929 = vmatprep.mubr.msk.bf16.mxu0 %vm1208_vm0, %v1207_v0  ;;  %502 = vrot.lane.b32.xlu1 %v1434_v19, %s1211_s6  ;;  %s1136_s20 = sshll.u32 %s1219_s16, 4  ;;  %s1137_s20 = int_to_ptr.vmem [resolvable:$false] %s1136_s20 }
  0x82   : > { %p1134_p7 = pnand %p1133_p10, %p1562_p5  ;;  %s1138_s22 = scalar_lea.vmem %s1137_s20, 128 }
  0x83   : > { %p1139_p6 = scmp.lt.s32.totalorder %s1495_s5, %s1137_s20  ;;  %p1140_p12 = scmp.lt.s32.totalorder %s1138_s22, %s1132_s8 }
  0x84   : > { %p1135_p9 = pneg %p1134_p7 }
  0x85   : > { %500 = vrot.lane.b32.xlu1 %v261_v6, %s1211_s6  ;;  %p1141_p0 = por %p1140_p12, %p1139_p6 }
  0x87   : > { %p1142_p8 = pnand %p1141_p0, %p1135_p9 }
  0x89   : > { %621 = vrot.lane.b32.xlu1 %v1434_v19, %s1212_s11 }
  0x8d   : > { %619 = vrot.lane.b32.xlu1 %v261_v6, %s1212_s11 }
  0xeb   : > { %v329_v25 = vpop.permute.xlu1 %328 }
  0xec   : > { %v335_v26 = vsel %vm333_vm2, %v329_v25, 0 }
  0xed   : > { %916 = vmatpush3.bf16.msra.mxu1 %v335_v26 }
  0xee   : > { %921 = vmatprep.subr.bf16.mxu1 %v1207_v0 }
  0xef   : > { %v384_v29 = vpop.permute.xlu1 %383 }
  0xf0   : > { %v389_v31 = vsel %vm266_vm1, %v384_v29, 0 }
  0xf3   : > { %v503_v33 = vpop.permute.xlu1 %502 }
  0xf4   : > { %v508_v36 = vsel %vm266_vm1, %v503_v33, 0 }
  0xf7   : > { %v501_v35 = vpop.permute.xlu1 %500 }
  0xfb   : > { %v622_v37 = vpop.permute.xlu1 %621 }
  0xfc   : > { %v627_v38 = vsel %vm266_vm1, %v622_v37, 0 }
  0xff   : > { %v620_v39 = vpop.permute.xlu1 %619 }
 0x153   : > { %v307_v13 = vpop.f32.mrb[0].mxu0 }
 0x154   : > { %v308_v14 = vadd.f32 %v307_v13, %v1430_v12  ;;  %v913_v15 = vpop.f32.mrb[1].mxu0 }
 0x155   : > { %v310_v16 = vpop.f32.mrb[2].mxu0 }
 0x156   : > { %v914_v17 = vpop.f32.mrb[3].mxu0  ;;  %v313_v18 = vsel %vm266_vm1, %v308_v14, -inf }
 0x157   : > { %314 = vmax.xlane.f32.xlu0 %v313_v18 }
 0x1e4   : > { %v315_v20 = vpop.xlane.xlu0 %314 }
 0x1e5   : > { %v316_v21 = vsub.f32 %v308_v14, %v315_v20 }
 0x1e7   : > { %v317_v22 = vmul.f32 1.442695, %v316_v21 }
 0x1e9   : > { %1026 = vpow2.f32 %v317_v22 }
 0x1f3   : > { %v1027_v23 = vpop.eup %1026 }
 0x1f4   : > { %v319_v24 = vsel %vm266_vm1, %v1027_v23, 0.0 }
 0x1f5   : > { %320 = vadd.xlane.f32.xlu0 %v319_v24 }
 0x20b   : > { %381 = vrot.lane.b32.xlu0 %v261_v6, %s1210_s4 }
 0x282   : > { %v321_v27 = vpop.xlane.xlu0 %320 }
 0x283   : > { %1028 = vrcp.f32 %v321_v27 }
 0x286   : > { %v382_v34 = vpop.permute.xlu0 %381 }
 0x28d   : > { %v1029_v28 = vpop.eup %1028 }
 0x28e   : > { %v323_v30 = vmul.f32 %v1029_v28, %v1027_v23 }
 0x290   : > { %v324_v32 = vpack.c.bf16 %v323_v30, %v323_v30 }
 0x292   : > { %918 = vmatmul.mubr.msk.bf16.vlgmr.msra.gmra.mrb[0].mxu1 %vm266_vm1, %v324_v32 }
 0x293   : > { %922 = vmatpush3.bf16.xpose.msra.mxu1 %v389_v31  ;;  %923 = vmatprep.mubr.msk.bf16.mxu1 %vm1208_vm0, %v1207_v0 }
 0x294   : > { %933 = vmatprep.subr.bf16.mxu1 %v1207_v0 }
 0x29a   : > { %924 = vmatmul.mubr.msk.bf16.vlgmr.msra.gmra.mrb[4].mxu1 %vm266_vm1, %v382_v34 }
 0x29b   : > { %934 = vmatpush3.bf16.xpose.msra.mxu1 %v508_v36  ;;  %935 = vmatprep.mubr.msk.bf16.mxu1 %vm1208_vm0, %v1207_v0 }
 0x29c   : > { %945 = vmatprep.subr.bf16.mxu1 %v1207_v0 }
 0x2a2   : > { %936 = vmatmul.mubr.msk.bf16.vlgmr.msra.gmra.mrb[8].mxu1 %vm266_vm1, %v501_v35 }
 0x2a3   : > { %946 = vmatpush3.bf16.xpose.msra.mxu1 %v627_v38  ;;  %947 = vmatprep.mubr.msk.bf16.mxu1 %vm1208_vm0, %v1207_v0 }
 0x2aa   : > { %948 = vmatmul.mubr.msk.bf16.vlgmr.msra.gmra.mrb[12].mxu1 %vm266_vm1, %v620_v39 }
 0x365   : > { %v371_v40 = vpop.f32.mrb[0].mxu1 }
 0x366   : > { %v377_v41 = vpack.c.bf16 %v371_v40, %v371_v40  ;;  %v919_v42 = vpop.f32.mrb[1].mxu1 }
 0x367   : > { %v374_v43 = vpop.f32.mrb[2].mxu1 }
 0x368   : > { %379 = vst.msk [vmem:[%s1459_s9] sm:$0xf] %vm378_vm3, %v377_v41  ;;  %v920_v44 = vpop.f32.mrb[3].mxu1 }
 0x36d   : > { %v425_v45 = vpop.f32.mrb[4].mxu1 }
 0x36e   : > { %v426_v46 = vadd.f32 %v425_v45, %v1430_v12  ;;  %v925_v47 = vpop.f32.mrb[5].mxu1 }
 0x36f   : > { %v428_v48 = vpop.f32.mrb[6].mxu1 }
 0x370   : > { %v926_v49 = vpop.f32.mrb[7].mxu1  ;;  %v431_v50 = vsel %vm266_vm1, %v426_v46, -inf }
 0x371   : > { %432 = vmax.xlane.f32.xlu1 %v431_v50 }
 0x375   : > { %v544_v51 = vpop.f32.mrb[8].mxu1 }
 0x376   : > { %v545_v52 = vadd.f32 %v544_v51, %v1430_v12  ;;  %v937_v53 = vpop.f32.mrb[9].mxu1 }
 0x377   : > { %v547_v54 = vpop.f32.mrb[10].mxu1 }
 0x378   : > { %v938_v55 = vpop.f32.mrb[11].mxu1  ;;  %v550_v56 = vsel %vm266_vm1, %v545_v52, -inf }
 0x379   : > { %551 = vmax.xlane.f32.xlu0 %v550_v56 }
 0x37d   : > { %v663_v57 = vpop.f32.mrb[12].mxu1 }
 0x37e   : > { %v664_v58 = vadd.f32 %v663_v57, %v1430_v12  ;;  %v949_v59 = vpop.f32.mrb[13].mxu1 }
 0x37f   : > { %v666_v60 = vpop.f32.mrb[14].mxu1 }
 0x380   : > { %v950_v61 = vpop.f32.mrb[15].mxu1  ;;  %v669_v62 = vsel %vm266_vm1, %v664_v58, -inf }
 0x381   : > { %670 = vmax.xlane.f32.xlu1 %v669_v62 }
 0x392   : > { %443 = vrot.lane.b32.xlu1 %v1434_v19, %s1213_s17 }
 0x3fe   : > { %v433_v63 = vpop.xlane.xlu1 %432 }
 0x3ff   : > { %v434_v1 = vsub.f32 %v426_v46, %v433_v63 }
 0x401   : > { %v435_v2 = vmul.f32 1.442695, %v434_v1 }
 0x403   : > { %1030 = vpow2.f32 %v435_v2 }
 0x406   : > { %v552_v3 = vpop.xlane.xlu0 %551 }
 0x407   : > { %v553_v4 = vsub.f32 %v545_v52, %v552_v3 }
 0x409   : > { %v554_v5 = vmul.f32 1.442695, %v553_v4 }
 0x40b   : > { %1032 = vpow2.f32 %v554_v5 }
 0x40d   : > { %v1031_v6 = vpop.eup %1030 }
 0x40e   : > { %v671_v7 = vpop.xlane.xlu1 %670  ;;  %v437_v8 = vsel %vm266_vm1, %v1031_v6, 0.0 }
 0x40f   : > { %v672_v9 = vsub.f32 %v664_v58, %v671_v7  ;;  %438 = vadd.xlane.f32.xlu0 %v437_v8 }
 0x411   : > { %v673_v10 = vmul.f32 1.442695, %v672_v9 }
 0x412   : > { %v444_v11 = vpop.permute.xlu1 %443 }
 0x413   : > { %1034 = vpow2.f32 %v673_v10  ;;  %v449_v12 = vsel %vm333_vm2, %v444_v11, 0 }
 0x414   : > { %928 = vmatpush3.bf16.msra.mxu0 %v449_v12 }
 0x415   : > { %v1033_v13 = vpop.eup %1032  ;;  %939 = vmatprep.subr.bf16.mxu0 %v1207_v0 }
 0x416   : > { %v556_v14 = vsel %vm266_vm1, %v1033_v13, 0.0 }
 0x417   : > { %557 = vadd.xlane.f32.xlu1 %v556_v14 }
 0x41d   : > { %v1035_v15 = vpop.eup %1034 }
 0x41e   : > { %v675_v16 = vsel %vm266_vm1, %v1035_v15, 0.0 }
 0x41f   : > { %676 = vadd.xlane.f32.xlu0 %v675_v16 }
 0x428   : > { %681 = vrot.lane.b32.xlu1 %v1434_v19, %s1214_s30 }
 0x435   : > { %562 = vrot.lane.b32.xlu0 %v1434_v19, %s1215_s27 }
 0x49c   : > { %v439_v17 = vpop.xlane.xlu0 %438 }
 0x49d   : > { %1036 = vrcp.f32 %v439_v17 }
 0x4a4   : > { %v558_v18 = vpop.xlane.xlu1 %557 }
 0x4a5   : > { %1038 = vrcp.f32 %v558_v18 }
 0x4a7   : > { %v1037_v20 = vpop.eup %1036 }
 0x4a8   : > { %v441_v21 = vmul.f32 %v1037_v20, %v1031_v6  ;;  %v682_v27 = vpop.permute.xlu1 %681 }
 0x4a9   : > { %v687_v29 = vsel %vm333_vm2, %v682_v27, 0 }
 0x4aa   : > { %v442_v22 = vpack.c.bf16 %v441_v21, %v441_v21 }
 0x4ac   : > { %v677_v23 = vpop.xlane.xlu0 %676  ;;  %930 = vmatmul.mubr.msk.bf16.vlgmr.msra.gmra.mrb[4].mxu0 %vm266_vm1, %v442_v22 }
 0x4ad   : > { %1040 = vrcp.f32 %v677_v23  ;;  %941 = vmatprep.mubr.msk.bf16.mxu0 %vm1208_vm0, %v1207_v0 }
 0x4af   : > { %v1039_v24 = vpop.eup %1038 }
 0x4b0   : > { %v560_v25 = vmul.f32 %v1039_v24, %v1033_v13  ;;  %v563_v26 = vpop.permute.xlu0 %562 }
 0x4b1   : > { %v568_v19 = vsel %vm333_vm2, %v563_v26, 0 }
 0x4b2   : > { %940 = vmatpush3.bf16.msra.mxu0 %v568_v19  ;;  %v561_v28 = vpack.c.bf16 %v560_v25, %v560_v25 }
 0x4b3   : > { %951 = vmatprep.subr.bf16.mxu0 %v1207_v0 }
 0x4b5   : > { %942 = vmatmul.mubr.msk.bf16.vlgmr.msra.gmra.mrb[8].mxu0 %vm266_vm1, %v561_v28 }
 0x4b6   : > { %952 = vmatpush3.bf16.msra.mxu0 %v687_v29  ;;  %953 = vmatprep.mubr.msk.bf16.mxu0 %vm1208_vm0, %v1207_v0 }
 0x4b7   : > { %v1041_v30 = vpop.eup %1040 }
 0x4b8   : > { %v679_v31 = vmul.f32 %v1041_v30, %v1035_v15 }
 0x4ba   : > { %v680_v32 = vpack.c.bf16 %v679_v31, %v679_v31 }
 0x4bd   : > { %954 = vmatmul.mubr.msk.bf16.vlgmr.msra.gmra.mrb[12].mxu0 %vm266_vm1, %v680_v32 }
 0x57f   : > { %v485_v33 = vpop.f32.mrb[4].mxu0 }
 0x580   : > { %v890_v34 = vpack.c.bf16 %v485_v33, %v485_v33  ;;  %v931_v35 = vpop.f32.mrb[5].mxu0 }
 0x581   : > { %v488_v36 = vpop.f32.mrb[6].mxu0 }
 0x582   : > { %495 = vrot.lane.b32.xlu1 %v890_v34, %s1216_s26  ;;  %v932_v37 = vpop.f32.mrb[7].mxu0 }
 0x588   : > { %v604_v38 = vpop.f32.mrb[8].mxu0 }
 0x589   : > { %v891_v39 = vpack.c.bf16 %v604_v38, %v604_v38  ;;  %v943_v40 = vpop.f32.mrb[9].mxu0 }
 0x58a   : > { %v607_v41 = vpop.f32.mrb[10].mxu0 }
 0x58b   : > { %614 = vrot.lane.b32.xlu0 %v891_v39, %s1217_s25  ;;  %v944_v0 = vpop.f32.mrb[11].mxu0 }
 0x590   : > { %v723_v42 = vpop.f32.mrb[12].mxu0 }
 0x591   : > { %v892_v43 = vpack.c.bf16 %v723_v42, %v723_v42  ;;  %v955_v44 = vpop.f32.mrb[13].mxu0 }
 0x592   : > { %v726_v45 = vpop.f32.mrb[14].mxu0 }
 0x593   : > { %733 = vrot.lane.b32.xlu1 %v892_v43, %s1218_s19  ;;  %v956_v46 = vpop.f32.mrb[15].mxu0 }
 0x5f4   : > { %v496_v47 = vpop.permute.xlu1 %495 }
 0x5f5   : > { %499 = vst.msk [vmem:[%s1459_s9] sm:$0xf] %vm498_vm4, %v496_v47 }
 0x5fd   : > { %v615_v48 = vpop.permute.xlu0 %614 }
 0x5fe   : > { %618 = vst.msk [vmem:[%s1459_s9] sm:$0xf] %vm617_vm5, %v615_v48 }
 0x605   : > { %v734_v49 = vpop.permute.xlu1 %733 }
 0x606   : > { %737 = vst.msk [vmem:[%s1459_s9] sm:$0xf] %vm736_vm6, %v734_v49 }
 0x607   : > { %1145 = shalt.err (!%p1142_p8)
}
 0x608   : > { %s1146_s0 = scalar_lea.hbm %s1493_s10, 64  ;;  %s1150_s6 = scalar_lea.hbm %s1541_s3, 128 }
 0x609   : > { %p1147_p4 = scmp.ne.s32.totalorder %s1493_s10, %s1146_s0  ;;  %p1151_p3 = scmp.lt.u32.totalorder %s1493_s10, %s1541_s3 }
 0x60a   : > { %p1152_p11 = scmp.lt.u32.totalorder %s1150_s6, %s1146_s0  ;;  %p1154_p10 = scmp.lt.u32.totalorder %s1146_s0, %s1493_s10 }
 0x60b   : > { %p1148_p13 = pnand %p1147_p4, %p1562_p5 }
 0x60c   : > { %p1153_p2 = por %p1152_p11, %p1151_p3 }
 0x60d   : > { %p1149_p1 = pneg %p1148_p13 }
 0x60e   : > { %p1155_p7 = por %p1154_p10, %p1153_p2 }
 0x610   : > { %p1156_p9 = pnand %p1155_p7, %p1149_p1 }
 0x612   : > { %1159 = shalt.err (!%p1156_p9)
}
 0x613   : > { %963 = dma.vmem_to_hbm [thread:$0]  (%p1562_p5), %s1495_s5, 64, %s1493_s10, %s739_s28  }
 0x614 PF: > { %s764_s17 = sand.u32 1, %s1190_s12   ;;  %p1563_p6 = scmp.ne.s32.totalorder %s1551_s24, 0 }
 0x615   : > { %p1564_p12 = scmp.ge.s32.totalorder %s1202_s15, 2  ;;  %s765_s30 = scalar_lea.sflag [#allocation4], %s764_s17 }
 0x617   : > { %p976_p0 = pnand %p1564_p12, %p1563_p6 }
 0x619   : > { %1185 = dma.done.wait (!%p976_p0), %s765_s30, 64  }
 0x61a   : > { %1187 = vsyncadd (!%p976_p0), %s765_s30, 4294967232  ;;  %s1565_s27 = sld [smem:[#allocation12_spill]]  ;;  %p19_p8 = scmp.ge.s32.totalorder %s1265_s18, 4  }
 0x61b   : > { %s1566_s12 = smov %s1194_s13  ;;  %s1567_s13 = smov %s1198_s14 }
 0x61c   : > { %s1569_s15 = smov %s1265_s18  ;;  %21 = sbr.rel (!%p19_p8) target bundleno = 10 (0xa), region = 101 }
 0x620   : > { %s1568_s14 = smov %s1565_s27 }
 0x623   :  { %770 = vsyncpa [#allocation3], 1 }
 0x624   :  { %772 = vsyncpa [#allocation3 + $0x1], 1 }
 0x625   :  { %773 = vsyncpa [#allocation6], 1 }
 0x626   :  { %775 = vsyncpa [#allocation6 + $0x1], 1 }
 0x627   :  { %776 = vsyncpa [#allocation4], 1 }
 0x628   :  { %778 = vsyncpa [#allocation4 + $0x1], 1 }

// kernel: decoder_forward.24
= control target key start
LH: loop header
LB: loop body
LE: loop exit
PB: predicated region body
PF: predicated region fallthrough
CT: control target
= control target key end

     0   :  { %s1650_s0 = inlined_call_operand.hbm [shape: f32[16,32], index: 0, kind: input, shape index: {}]   ;;  %s1651_s1 = inlined_call_operand.hbm [shape: f32[1,32], index: 1, kind: input, shape index: {}]   ;;  %s1652_s2 = inlined_call_operand.hbm [shape: f32[1,32], index: 2, kind: input, shape index: {}]   ;;  %s1653_s3 = inlined_call_operand.hbm [shape: bf16[32,64], index: 3, kind: input, shape index: {}]   ;;  %s1654_s4 = inlined_call_operand.hbm [shape: f32[1,64], index: 4, kind: input, shape index: {}]   ;;  %s1655_s5 = inlined_call_operand.hbm [shape: bf16[64,32], index: 5, kind: input, shape index: {}]   ;;  %s1656_s6 = inlined_call_operand.hbm [shape: f32[1,32], index: 6, kind: input, shape index: {}]   ;;  %s1657_s7 = inlined_call_operand.hbm [shape: f32[16,32], index: 7, kind: output, shape index: {}]  }
   0x1   :  { %1663 = sst [smem:[#allocation22_spill]] %s1651_s1 }
   0x2   :  { %1664 = sst [smem:[#allocation23_spill]] %s1653_s3 }
   0x3   :  { %12 = vsyncpa [#allocation5], 0 }
   0x4   :  { %14 = vsyncpa [#allocation5 + $0x1], 0 }
   0x5   :  { %15 = vsyncpa [#allocation8], 0 }
   0x6   :  { %16 = vsyncpa [#allocation11], 0 }
   0x7   :  { %17 = vsyncpa [#allocation14], 0 }
   0x8   :  { %18 = vsyncpa [#allocation6], 0 }
   0x9   :  { %20 = vsyncpa [#allocation6 + $0x1], 0  ;;  %s1312_s24 = smov 0   ;;  %s1314_s25 = smov 0  }
   0xa   :  { %s1316_s26 = smov 0   ;;  %s1318_s27 = smov 0  }
   0xb   :  { %s1320_s28 = smov 0   ;;  %s1322_s29 = smov 0  }
   0xc LB: > { %s1661_s30 = sadd.s32 4294967295, %s1258_s29   ;;  %p768_p0 = scmp.ge.s32.totalorder %s1258_s29, 1  ;;  %s1258_s29 = sphi %s1322_s29, %s26_s29   ;;  %s1254_s28 = sphi %s1320_s28, %s1687_s28   ;;  %s1250_s27 = sphi %s1318_s27, %s1686_s27   ;;  %s1246_s26 = sphi %s1316_s26, %s1685_s26   ;;  %s1242_s25 = sphi %s1314_s25, %s1684_s25   ;;  %s1238_s24 = sphi %s1312_s24, %s1683_s24  }
   0xd   : > { %p1346_p1 = scmp.eq.s32.totalorder %s1661_s30, 0  ;;  %p236_p2 = scmp.lt.s32.totalorder %s1258_s29, 3 }
   0xe   : > { %s1260_s10 = smov [#allocation7]   ;;  %s1261_s12 = smov [#allocation10]  }
   0xf   : > { %s1665_s8 = scalar_select %p1346_p1, 1, 0 }
  0x10   : > { %p1351_p3 = pnand %p768_p0, %p236_p2  ;;  %s249_s11 = sshll.u32 %s1260_s10, 4  ;;  %s250_s11 = int_to_ptr.vmem [resolvable:$true] %s249_s11 }
  0x11   : > { %s272_s13 = sshll.u32 %s1261_s12, 4  ;;  %s1262_s15 = smov [#allocation13]   ;;  %s1364_s13 = int_to_ptr.vmem [resolvable:$true] %s272_s13 }
  0x12   : > { %s1666_s9 = scalar_select %p1351_p3, 1, 0 }
  0x13   : > { %p859_p5 = pneg %p1351_p3  ;;  %s1366_s16 = sshll.u32 %s1262_s15, 4  ;;  %s302_s16 = int_to_ptr.vmem [resolvable:$true] %s1366_s16 }
  0x14   : > { %s1668_s1 = sld [smem:[#allocation22_spill]] }
  0x15   : > { %p1360_p6 = pnand %p859_p5, %p1346_p1 }
  0x17   : > { %p1376_p8 = pneg %p1360_p6 }
  0x1a   : > { %s966_s19 = scalar_lea.hbm %s1668_s1, 16 }
  0x1b   : > { %p967_p7 = scmp.ne.s32.totalorder %s1668_s1, %s966_s19  ;;  %p973_p11 = scmp.lt.u32.totalorder %s966_s19, %s1668_s1 }
  0x1d   : > { %p969_p9 = pnand %p1376_p8, %p967_p7 }
  0x1f   : > { %p970_p10 = pneg %p969_p9 }
  0x21   : > { %p975_p12 = pnand %p973_p11, %p970_p10 }
  0x23   : > { %978 = shalt.err (!%p975_p12)
}
  0x24   : > { %s979_s12 = scalar_lea.vmem %s250_s11, 16  ;;  %s986_s15 = scalar_lea.vmem %s250_s11, 32 }
  0x25   : > { %p980_p13 = scmp.ne.s32.totalorder %s250_s11, %s979_s12  ;;  %p987_p5 = scmp.lt.s32.totalorder %s250_s11, %s250_s11 }
  0x26   : > { %p988_p4 = scmp.lt.s32.totalorder %s986_s15, %s979_s12 }
  0x27   : > { %p982_p0 = pnand %p980_p13, %p1376_p8 }
  0x28   : > { %p989_p3 = por %p988_p4, %p987_p5 }
  0x29   : > { %p983_p2 = pneg %p982_p0 }
  0x2b   : > { %p990_p1 = pnand %p989_p3, %p983_p2 }
  0x2d   : > { %993 = shalt.err (!%p990_p1)
}
  0x2e   : > { %862 = dma.hbm_to_vmem [thread:$0]  (!%p1360_p6), %s1668_s1, 16, %s250_s11, [#allocation8]  }
  0x2f   : > { %s1670_s3 = sld [smem:[#allocation23_spill]] }
  0x35   : > { %s994_s21 = scalar_lea.hbm %s1670_s3, 256 }
  0x36   : > { %p995_p7 = scmp.ne.s32.totalorder %s1670_s3, %s994_s21  ;;  %p1001_p1 = scmp.lt.u32.totalorder %s994_s21, %s1670_s3 }
  0x38   : > { %p997_p9 = pnand %p995_p7, %p1376_p8 }
  0x3a   : > { %p998_p4 = pneg %p997_p9 }
  0x3c   : > { %p1003_p3 = pnand %p1001_p1, %p998_p4 }
  0x3e   : > { %1006 = shalt.err (!%p1003_p3)
}
  0x3f   : > { %s1007_s11 = scalar_lea.vmem %s1364_s13, 256  ;;  %p1015_p13 = scmp.lt.s32.totalorder %s1364_s13, %s1364_s13 }
  0x40   : > { %p1008_p10 = scmp.ne.s32.totalorder %s1364_s13, %s1007_s11  ;;  %p1016_p0 = scmp.lt.s32.totalorder %s1007_s11, %s1007_s11 }
  0x42   : > { %p1010_p11 = pnand %p1008_p10, %p1376_p8  ;;  %p1017_p2 = por %p1016_p0, %p1015_p13 }
  0x44   : > { %p1011_p12 = pneg %p1010_p11 }
  0x46   : > { %p1018_p5 = pnand %p1017_p2, %p1011_p12 }
  0x48   : > { %1021 = shalt.err (!%p1018_p5)
}
  0x49   : > { %s1263_s17 = smov 64   ;;  %s1264_s18 = smov 4  }
  0x4a   : > { %868 = dma.hbm_to_vmem [thread:$0]  (!%p1360_p6), %s1670_s3, 256, %s1364_s13, [#allocation11], %s1263_s17, %s1263_s17, %s1264_s18  }
  0x4b   : > { %s1022_s10 = scalar_lea.hbm %s1655_s5, 512 }
  0x4c   : > { %p1023_p7 = scmp.ne.s32.totalorder %s1655_s5, %s1022_s10  ;;  %p1029_p1 = scmp.lt.u32.totalorder %s1022_s10, %s1655_s5 }
  0x4e   : > { %p1025_p9 = pnand %p1023_p7, %p1376_p8 }
  0x50   : > { %p1026_p4 = pneg %p1025_p9 }
  0x52   : > { %p1031_p3 = pnand %p1029_p1, %p1026_p4 }
  0x54   : > { %1034 = shalt.err (!%p1031_p3)
}
  0x55   : > { %s1035_s19 = scalar_lea.vmem %s302_s16, 512  ;;  %p1043_p13 = scmp.lt.s32.totalorder %s302_s16, %s302_s16 }
  0x56   : > { %p1036_p10 = scmp.ne.s32.totalorder %s302_s16, %s1035_s19  ;;  %p1044_p0 = scmp.lt.s32.totalorder %s1035_s19, %s1035_s19 }
  0x58   : > { %p1038_p11 = pnand %p1036_p10, %p1376_p8  ;;  %p1045_p2 = por %p1044_p0, %p1043_p13 }
  0x5a   : > { %p1039_p12 = pneg %p1038_p11 }
  0x5c   : > { %p1046_p5 = pnand %p1045_p2, %p1039_p12 }
  0x5e   : > { %1049 = shalt.err (!%p1046_p5)
}
  0x5f   : > { %874 = dma.hbm_to_vmem [thread:$0]  (!%p1360_p6), %s1655_s5, 512, %s302_s16, [#allocation14], %s1263_s17, %s1263_s17, %s1264_s18  }
  0x60   : > { %s1265_s30 = smov [#allocation9]   ;;  %s1266_s23 = smov [#allocation12]  }
  0x61   : > { %s260_s21 = sshll.u32 %s1265_s30, 4  ;;  %s288_s10 = sshll.u32 %s1266_s23, 4  ;;  %s261_s21 = int_to_ptr.vmem [resolvable:$true] %s260_s21  ;;  %s289_s10 = int_to_ptr.vmem [resolvable:$true] %s288_s10 }
  0x62   : > { %s1050_s11 = scalar_lea.hbm %s1652_s2, 16 }
  0x63   : > { %p1051_p7 = scmp.ne.s32.totalorder %s1652_s2, %s1050_s11  ;;  %p1057_p1 = scmp.lt.u32.totalorder %s1050_s11, %s1652_s2 }
  0x65   : > { %p1053_p9 = pnand %p1051_p7, %p1376_p8 }
  0x67   : > { %p1054_p4 = pneg %p1053_p9 }
  0x69   : > { %p1059_p3 = pnand %p1057_p1, %p1054_p4 }
  0x6b   : > { %1062 = shalt.err (!%p1059_p3)
}
  0x6c   : > { %s1063_s16 = scalar_lea.vmem %s261_s21, 16  ;;  %s1070_s17 = scalar_lea.vmem %s261_s21, 32 }
  0x6d   : > { %p1064_p10 = scmp.ne.s32.totalorder %s261_s21, %s1063_s16  ;;  %p1071_p13 = scmp.lt.s32.totalorder %s261_s21, %s261_s21 }
  0x6e   : > { %p1072_p0 = scmp.lt.s32.totalorder %s1070_s17, %s1063_s16 }
  0x6f   : > { %p1066_p11 = pnand %p1064_p10, %p1376_p8 }
  0x70   : > { %p1073_p2 = por %p1072_p0, %p1071_p13 }
  0x71   : > { %p1067_p12 = pneg %p1066_p11 }
  0x73   : > { %p1074_p5 = pnand %p1073_p2, %p1067_p12 }
  0x75   : > { %1077 = shalt.err (!%p1074_p5)
}
  0x76   : > { %865 = dma.hbm_to_vmem [thread:$0]  (!%p1360_p6), %s1652_s2, 16, %s261_s21, [#allocation8]  }
  0x77   : > { %s1078_s30 = scalar_lea.hbm %s1654_s4, 16 }
  0x78   : > { %p1079_p7 = scmp.ne.s32.totalorder %s1654_s4, %s1078_s30  ;;  %p1085_p1 = scmp.lt.u32.totalorder %s1078_s30, %s1654_s4 }
  0x7a   : > { %p1081_p9 = pnand %p1079_p7, %p1376_p8 }
  0x7c   : > { %p1082_p4 = pneg %p1081_p9 }
  0x7e   : > { %p1087_p3 = pnand %p1085_p1, %p1082_p4 }
  0x80   : > { %1090 = shalt.err (!%p1087_p3)
}
  0x81   : > { %s1091_s19 = scalar_lea.vmem %s289_s10, 16  ;;  %s1098_s21 = scalar_lea.vmem %s289_s10, 32 }
  0x82   : > { %p1092_p10 = scmp.ne.s32.totalorder %s289_s10, %s1091_s19  ;;  %p1099_p13 = scmp.lt.s32.totalorder %s289_s10, %s289_s10 }
  0x83   : > { %p1100_p0 = scmp.lt.s32.totalorder %s1098_s21, %s1091_s19 }
  0x84   : > { %p1094_p11 = pnand %p1092_p10, %p1376_p8 }
  0x85   : > { %p1101_p2 = por %p1100_p0, %p1099_p13 }
  0x86   : > { %p1095_p12 = pneg %p1094_p11 }
  0x88   : > { %p1102_p5 = pnand %p1101_p2, %p1095_p12 }
  0x8a   : > { %1105 = shalt.err (!%p1102_p5)
}
  0x8b   : > { %871 = dma.hbm_to_vmem [thread:$0]  (!%p1360_p6), %s1654_s4, 16, %s289_s10, [#allocation11]  }
  0x8c   : > { %s1267_s17 = smov [#allocation15]   ;;  %s1106_s20 = scalar_lea.hbm %s1656_s6, 16 }
  0x8d   : > { %s315_s1 = sshll.u32 %s1267_s17, 4  ;;  %p1107_p7 = scmp.ne.s32.totalorder %s1656_s6, %s1106_s20  ;;  %s316_s1 = int_to_ptr.vmem [resolvable:$true] %s315_s1 }
  0x8e   : > { %p1113_p1 = scmp.lt.u32.totalorder %s1106_s20, %s1656_s6 }
  0x8f   : > { %p1109_p9 = pnand %p1107_p7, %p1376_p8 }
  0x91   : > { %p1110_p4 = pneg %p1109_p9 }
  0x93   : > { %p1115_p3 = pnand %p1113_p1, %p1110_p4 }
  0x95   : > { %1118 = shalt.err (!%p1115_p3)
}
  0x96   : > { %s1119_s10 = scalar_lea.vmem %s316_s1, 16  ;;  %s1126_s11 = scalar_lea.vmem %s316_s1, 32 }
  0x97   : > { %p1120_p10 = scmp.ne.s32.totalorder %s316_s1, %s1119_s10  ;;  %p1127_p13 = scmp.lt.s32.totalorder %s316_s1, %s316_s1 }
  0x98   : > { %p1128_p0 = scmp.lt.s32.totalorder %s1126_s11, %s1119_s10 }
  0x99   : > { %p1122_p11 = pnand %p1120_p10, %p1376_p8 }
  0x9a   : > { %p1129_p2 = por %p1128_p0, %p1127_p13 }
  0x9b   : > { %p1123_p12 = pneg %p1122_p11 }
  0x9d   : > { %p1130_p5 = pnand %p1129_p2, %p1123_p12 }
  0x9f   : > { %1133 = shalt.err (!%p1130_p5)
}
  0xa0   : > { %877 = dma.hbm_to_vmem [thread:$0]  (!%p1360_p6), %s1656_s6, 16, %s316_s1, [#allocation14]  }
  0xa1   : > { %s767_s22 = sadd.s32 4294967294, %s1258_s29   ;;  %s38_s13 = sadd.s32 1, %s1254_s28 }
  0xa2   : > { %p40_p8 = scmp.ge.s32.totalorder %s38_s13, 2  ;;  %s45_s14 = sadd.s32 1, %s1246_s26 }
  0xa3   : > { %p52_p7 = scmp.ne.s32.totalorder %s1246_s26, %s1242_s25  ;;  %p53_p9 = scmp.eq.s32.totalorder %s1258_s29, 0 }
  0xa4   : > { %s1689_s13 = smov (%p40_p8, %s38_s13), 0  ;;  %p58_p1 = scmp.ne.s32.totalorder %s1242_s25, %s1238_s24 }
  0xa5   : > { %p1496_p4 = por %p53_p9, %p52_p7  ;;  %s42_s17 = ssub.s32 %s1254_s28, %s1689_s13 }
  0xa6   : > { %s1672_s1 = sadd.s32 4294967295, %s1258_s29   ;;  %p43_p3 = scmp.eq.s32.totalorder %s42_s17, 0 }
  0xa7   : > { %p223_p6 = scmp.eq.s32.totalorder %s1672_s1, 1  ;;  %p1673_p10 = scmp.ne.s32.totalorder %s1665_s8, 0 }
  0xa8   : > { %p229_p13 = scmp.eq.s32.totalorder %s767_s22, 1  ;;  %p892_p2 = scmp.lt.s32.totalorder %s1258_s29, 2 }
  0xa9   : > { %p1508_p11 = por %p1673_p10, %p58_p1  ;;  %p1512_p12 = por %p223_p6, %p52_p7 }
  0xaa   : > { %s1517_s20 = scalar_select %p43_p3, %s1246_s26, %s45_s14  }
  0xab   : > { %s1675_s3 = scalar_select %p1512_p12, 1, 0 }
  0xac   : > { %p1519_p0 = por %p229_p13, %p58_p1  ;;  %s326_s23 = sand.u32 1, %s1246_s26  }
  0xad   : > { %s777_s12 = sshll.u32 %s1254_s28, 7  ;;  %s776_s15 = sshll.u32 %s326_s23, 3 }
  0xae   : > { %s1676_s30 = scalar_select %p1519_p0, 1, 0 }
  0xaf   : > { %s1529_s19 = scalar_lea.hbm %s1650_s0, %s777_s12  ;;  %s330_s21 = scalar_lea.vmem [#allocation4], %s776_s15 }
  0xb0   : > { %s337_s22 = sshll.u32 %s330_s21, 4  ;;  %p1533_p5 = pnand %p892_p2, %p1496_p4  ;;  %s1537_s22 = int_to_ptr.vmem [resolvable:$true] %s337_s22 }
  0xb1   : > { %s327_s17 = scalar_lea.sflag [#allocation5], %s326_s23  ;;  %s1134_s1 = scalar_lea.hbm %s1529_s19, 128 }
  0xb2   : > { %p1135_p8 = scmp.ne.s32.totalorder %s1529_s19, %s1134_s1  ;;  %p1136_p7 = pneg %p1533_p5 }
  0xb3   : > { %s1139_s16 = scalar_lea.hbm %s1650_s0, 256  ;;  %p1140_p4 = scmp.lt.u32.totalorder %s1529_s19, %s1650_s0 }
  0xb4   : > { %p1137_p9 = pnand %p1136_p7, %p1135_p8  ;;  %p1141_p6 = scmp.lt.u32.totalorder %s1139_s16, %s1134_s1 }
  0xb5   : > { %p1143_p10 = scmp.lt.u32.totalorder %s1134_s1, %s1529_s19 }
  0xb6   : > { %p1138_p1 = pneg %p1137_p9  ;;  %p1142_p3 = por %p1141_p6, %p1140_p4 }
  0xb8   : > { %p1144_p13 = por %p1143_p10, %p1142_p3 }
  0xba   : > { %p1145_p2 = pnand %p1144_p13, %p1138_p1 }
  0xbc   : > { %1148 = shalt.err (!%p1145_p2)
}
  0xbd   : > { %s1149_s23 = scalar_lea.vmem %s1537_s22, 128  ;;  %s1268_s21 = smov [#allocation4]  }
  0xbe   : > { %p1150_p8 = scmp.ne.s32.totalorder %s1537_s22, %s1149_s23  ;;  %s1154_s12 = sshll.u32 %s1268_s21, 4  ;;  %s1155_s12 = int_to_ptr.vmem [resolvable:$false] %s1154_s12 }
  0xbf   : > { %s1156_s15 = scalar_lea.vmem %s1155_s12, 256  ;;  %p1157_p12 = scmp.lt.s32.totalorder %s1537_s22, %s1155_s12 }
  0xc0   : > { %p1152_p9 = pnand %p1150_p8, %p1136_p7  ;;  %p1158_p4 = scmp.lt.s32.totalorder %s1156_s15, %s1149_s23 }
  0xc2   : > { %p1153_p0 = pneg %p1152_p9  ;;  %p1159_p6 = por %p1158_p4, %p1157_p12 }
  0xc4   : > { %p1160_p3 = pnand %p1159_p6, %p1153_p0 }
  0xc6   : > { %1163 = shalt.err (!%p1160_p3)
}
  0xc7   : > { %881 = dma.hbm_to_vmem [thread:$0]  (!%p1533_p5), %s1529_s19, 128, %s1537_s22, %s327_s17  }
  0xc8   : > { %p1678_p1 = scmp.ne.s32.totalorder %s1666_s9, 0 }
  0xc9   : > { %s1567_s1 = sand.u32 (!%p1678_p1), 1, %s1242_s25  }
  0xca   : > { %346 = sbr.rel (%p1678_p1) target bundleno = 995 (0x3e3), region = 48  ;;  %s779_s16 = sshll.u32 (!%p1678_p1), %s1567_s1, 3 }
  0xcb   : > { %s349_s10 = scalar_lea.sflag (!%p1678_p1), [#allocation5], %s1567_s1  ;;  %s352_s11 = scalar_lea.vmem (!%p1678_p1), [#allocation4], %s779_s16 }
  0xd1   : > { %1217 = dma.done.wait (%p1508_p11), %s349_s10, 128  }
  0xd2   : > { %1219 = vsyncadd (%p1508_p11), %s349_s10, 4294967168  ;;  %p1679_p12 = scmp.ne.s32.totalorder %s1665_s8, 0 }
  0xd4   : > { %1221 = dma.done.wait (%p1679_p12), [#allocation8], 32  }
  0xd5   : > { %1223 = vsyncadd (%p1679_p12), [#allocation8], 4294967264 }
  0xd6   : > { %1225 = dma.done.wait (%p1679_p12), [#allocation11], 272  }
  0xd7   : > { %1227 = vsyncadd (%p1679_p12), [#allocation11], 4294967024 }
  0xd8   : > { %1229 = dma.done.wait (%p1679_p12), [#allocation14], 528  }
  0xd9   : > { %1231 = vsyncadd (%p1679_p12), [#allocation14], 4294966768  ;;  %vm416_vm0 = vcmask 261120   ;;  %v413_v0 = vld [vmem:[%s352_s11] sm:$0xff]  ;;  %v958_v9 = vld [vmem:[#allocation10] sm:$0xff]   ;;  %v1269_v10 = vmov 0.0  }
  0xda   : > { %v789_v1 = vld [vmem:[#allocation15] ss:$0 sm:$0xff]  ;;  %v417_v2 = vsel %vm416_vm0, %v413_v0, 0.0  ;;  %811 = vmatprep.subr.bf16.mxu0 %v1269_v10  ;;  %819 = vmatprep.subr.bf16.mxu1 %v1269_v10  ;;  %v959_v11 = vld [vmem:[#allocation10 + $0x8] sm:$0xff]   ;;  %vm1270_vm1 = vmmov 0   ;;  %v961_v13 = vld [vmem:[#allocation13 + $0x8] sm:$0xff]  }
  0xdb   : > { %v455_v3 = vadd.f32 %v789_v1, %v413_v0  ;;  %418 = vadd.xlane.f32.xlu0 %v417_v2  ;;  %812 = vmatpush3.bf16.msra.mxu0 %v958_v9  ;;  %v960_v12 = vld [vmem:[#allocation13] sm:$0xff]   ;;  %v787_v18 = vld [vmem:[#allocation7] ss:$0 sm:$0xff]  ;;  %v788_v20 = vld [vmem:[#allocation9] ss:$0 sm:$0xff]  ;;  %vm446_vm2 = vcmask 257024  }
  0xdc   : > { %815 = vmatprep.mubr.msk.bf16.mxu0 %vm1270_vm1, %v1269_v10  ;;  %813 = vmatprep.subr.bf16.mxu0 %v1269_v10  ;;  %v962_v25 = vld [vmem:[#allocation13 + $0x10] sm:$0xff]   ;;  %v963_v26 = vld [vmem:[#allocation13 + $0x18] sm:$0xff]   ;;  %vm560_vm3 = vcmask 523264   ;;  %s800_s8 = sshll.u32 %s1250_s27, 7  ;;  %s406_s9 = scalar_lea.vmem [#allocation16], %s779_s16 }
  0xdd   : > { %456 = vst.msk [vmem:[#allocation3] sm:$0xff] %vm416_vm0, %v455_v3  ;;  %827 = vmatprep.mubr.msk.bf16.mxu1 %vm1270_vm1, %v1269_v10  ;;  %820 = vmatpush3.bf16.msra.mxu1 %v960_v12  ;;  %v790_v27 = vld [vmem:[#allocation12] ss:$0 sm:$0xff]  ;;  %s625_s18 = sshll.u32 %s406_s9, 4  ;;  %s1600_s14 = scalar_lea.hbm %s1657_s7, %s800_s8  ;;  %s1602_s18 = int_to_ptr.vmem [resolvable:$true] %s625_s18 }
  0xde   : > { %821 = vmatprep.subr.bf16.mxu1 %v1269_v10  ;;  %s612_s17 = scalar_lea.sflag [#allocation6], %s1567_s1  ;;  %s1164_s23 = scalar_lea.vmem %s1602_s18, 128 }
  0xdf   : > { %814 = vmatpush3.bf16.msra.mxu0 %v959_v11  ;;  %p1165_p11 = scmp.ne.s32.totalorder %s1602_s18, %s1164_s23  ;;  %p1680_p0 = scmp.ne.s32.totalorder %s1675_s3, 0 }
  0xe0   : > { %s1271_s27 = smov [#allocation16]  }
  0xe1   : > { %822 = vmatpush3.bf16.msra.mxu1 %v961_v13  ;;  %p1166_p5 = pnand %p1165_p11, %p1680_p0  ;;  %s1168_s21 = sshll.u32 %s1271_s27, 4  ;;  %s1169_s21 = int_to_ptr.vmem [resolvable:$false] %s1168_s21 }
  0xe2   : > { %823 = vmatprep.subr.bf16.mxu1 %v1269_v10  ;;  %s1170_s12 = scalar_lea.vmem %s1169_s21, 256  ;;  %p1171_p10 = scmp.lt.s32.totalorder %s1602_s18, %s1169_s21 }
  0xe3   : > { %p1167_p7 = pneg %p1166_p5  ;;  %p1172_p13 = scmp.lt.s32.totalorder %s1170_s12, %s1164_s23 }
  0xe4   : > { %v526_v35 = vld [vmem:[#allocation3] sm:$0xff] }
  0xe5   : > { %824 = vmatpush3.bf16.msra.mxu1 %v962_v25  ;;  %p1173_p2 = por %p1172_p13, %p1171_p10 }
  0xe6   : > { %825 = vmatprep.subr.bf16.mxu1 %v1269_v10 }
  0xe7   : > { %p1174_p8 = pnand %p1173_p2, %p1167_p7 }
  0xe9   : > { %826 = vmatpush3.bf16.msra.mxu1 %v963_v26 }
 0x168   : > { %v419_v4 = vpop.xlane.xlu0 %418 }
 0x169   : > { %v421_v5 = vmul.f32 0.03125, %v419_v4 }
 0x16b   : > { %v422_v6 = vsub.f32 %v413_v0, %v421_v5 }
 0x16d   : > { %v423_v7 = vmul.f32 %v422_v6, %v422_v6 }
 0x16f   : > { %v424_v8 = vsel %vm416_vm0, %v423_v7, 0.0 }
 0x170   : > { %425 = vadd.xlane.f32.xlu0 %v424_v8 }
 0x1fd   : > { %v426_v14 = vpop.xlane.xlu0 %425 }
 0x1fe   : > { %v427_v15 = vmul.f32 0.03125, %v426_v14 }
 0x200   : > { %v428_v16 = vadd.f32 1e-05, %v427_v15 }
 0x202   : > { %964 = vrsqrt.f32 %v428_v16 }
 0x20c   : > { %v965_v17 = vpop.eup %964 }
 0x20d   : > { %v430_v19 = vmul.f32 %v965_v17, %v422_v6 }
 0x20f   : > { %v437_v21 = vmul.f32 %v787_v18, %v430_v19 }
 0x211   : > { %v444_v22 = vadd.f32 %v788_v20, %v437_v21 }
 0x213   : > { %v445_v23 = vpack.c.bf16 %v444_v22, %v444_v22 }
 0x215   : > { %447 = vst.msk [vmem:[#allocation2] sm:$0xf] %vm446_vm2, %v445_v23 }
 0x21c   : > { %v457_v24 = vld [vmem:[#allocation2] sm:$0xf] }
 0x21d   : > { %816 = vmatmul.mubr.msk.bf16.vlgmr.msra.gmra.mrb[0].mxu0 %vm416_vm0, %v457_v24 }
 0x2f0   : > { %v519_v28 = vpop.f32.mrb[0].mxu0 }
 0x2f1   : > { %v520_v29 = vadd.f32 %v790_v27, %v519_v28  ;;  %v817_v30 = vpop.f32.mrb[1].mxu0 }
 0x2f2   : > { %v522_v31 = vpop.f32.mrb[2].mxu0 }
 0x2f3   : > { %v525_v32 = vmax.f32 %v520_v29, 0.0  ;;  %v818_v33 = vpop.f32.mrb[3].mxu0 }
 0x2f5   : > { %v527_v34 = vpack.c.bf16 %v525_v32, %v525_v32 }
 0x2f7   : > { %828 = vmatmul.mubr.msk.bf16.vlgmr.msra.gmra.mrb[0].mxu1 %vm560_vm3, %v527_v34 }
 0x3ca   : > { %v598_v36 = vpop.f32.mrb[0].mxu1 }
 0x3cb   : > { %v604_v37 = vadd.f32 %v598_v36, %v526_v35  ;;  %v829_v38 = vpop.f32.mrb[1].mxu1 }
 0x3cc   : > { %v601_v39 = vpop.f32.mrb[2].mxu1 }
 0x3cd   : > { %605 = vst.msk [vmem:[#allocation3] sm:$0xff] %vm416_vm0, %v604_v37  ;;  %v830_v40 = vpop.f32.mrb[3].mxu1 }
 0x3d4   : > { %v609_v41 = vld [vmem:[#allocation3] sm:$0xff] }
 0x3d5   : > { %610 = vst.msk [vmem:[%s406_s9] sm:$0xff] %vm416_vm0, %v609_v41 }
 0x3d6   : > { %1177 = shalt.err (!%p1174_p8)
}
 0x3d7   : > { %s1178_s15 = scalar_lea.hbm %s1600_s14, 128  ;;  %s1182_s10 = scalar_lea.hbm %s1657_s7, 256 }
 0x3d8   : > { %p1179_p9 = scmp.ne.s32.totalorder %s1600_s14, %s1178_s15  ;;  %p1183_p3 = scmp.lt.u32.totalorder %s1600_s14, %s1657_s7 }
 0x3d9   : > { %p1184_p1 = scmp.lt.u32.totalorder %s1182_s10, %s1178_s15  ;;  %p1186_p11 = scmp.lt.u32.totalorder %s1178_s15, %s1600_s14 }
 0x3da   : > { %p1180_p4 = pnand %p1179_p9, %p1680_p0 }
 0x3db   : > { %p1185_p12 = por %p1184_p1, %p1183_p3 }
 0x3dc   : > { %p1181_p6 = pneg %p1180_p4 }
 0x3dd   : > { %p1187_p5 = por %p1186_p11, %p1185_p12 }
 0x3df   : > { %p1188_p7 = pnand %p1187_p5, %p1181_p6 }
 0x3e1   : > { %1191 = shalt.err (!%p1188_p7)
}
 0x3e2   : > { %857 = dma.vmem_to_hbm [thread:$0]  (%p1680_p0), %s1602_s18, 128, %s1600_s14, %s612_s17  }
 0x3e3 PF: > { %s637_s9 = sand.u32 1, %s1238_s24   ;;  %p1681_p10 = scmp.ne.s32.totalorder %s1676_s30, 0 }
 0x3e4   : > { %p1682_p13 = scmp.ge.s32.totalorder %s1258_s29, 2  ;;  %s638_s19 = scalar_lea.sflag [#allocation6], %s637_s9 }
 0x3e6   : > { %p883_p2 = pnand %p1682_p13, %p1681_p10 }
 0x3e8   : > { %1233 = dma.done.wait (!%p883_p2), %s638_s19, 128  }
 0x3e9   : > { %1235 = vsyncadd (!%p883_p2), %s638_s19, 4294967168  ;;  %s26_s29 = sadd.s32 1, %s1258_s29   ;;  %s1683_s24 = smov %s1242_s25 }
 0x3ea   : > { %p23_p8 = scmp.ge.s32.totalorder %s26_s29, 4   ;;  %s1684_s25 = smov %s1246_s26 }
 0x3eb   : > { %s1685_s26 = smov %s1517_s20  ;;  %s1686_s27 = smov %s1254_s28 }
 0x3ec   : > { %s1687_s28 = smov %s1689_s13  ;;  %25 = sbr.rel (!%p23_p8) target bundleno = 12 (0xc), region = 128 }
 0x3f3   :  { %643 = vsyncpa [#allocation5], 1 }
 0x3f4   :  { %645 = vsyncpa [#allocation5 + $0x1], 1 }
 0x3f5   :  { %646 = vsyncpa [#allocation8], 1 }
 0x3f6   :  { %647 = vsyncpa [#allocation11], 1 }
 0x3f7   :  { %648 = vsyncpa [#allocation14], 1 }
 0x3f8   :  { %649 = vsyncpa [#allocation6], 1 }
 0x3f9   :  { %651 = vsyncpa [#allocation6 + $0x1], 1 }

</bundles_post_ra>
